<compile_context>
chip_gen: v7x
topology: tpu7x:2x2x1
jax: 0.10.0
libtpu: 0.0.40
codegen_flags: <defaults>
</compile_context>

<pallas_src>
import functools

import jax
import jax.numpy as jnp
from jax import lax
from jax.experimental import pallas as pl
from jax.experimental.pallas import tpu as pltpu


def _im2col_3x3(src, H, W):
    """src: (H*W, Cp).  Returns (H*W, 9*Cp) zero-padded 3x3 patches.

    Tap k = 3*kh + kw holds input pixel (i+kh-1, j+kw-1) for output pixel
    (i, j) — a stride-1, pad-1 cross-correlation (matches nn.Conv2d).
    Row under/overflow falls into the zero slabs concatenated at the ends of
    the flattened image; column overflow needs an explicit mask because a
    flat shift of +-1 wraps into the neighbouring row.  (With one batch
    element per grid step the flat shift never crosses a batch boundary.)
    """
    HW, Cp = src.shape
    col = lax.broadcasted_iota(jnp.int32, (HW, 1), 0) % W
    taps = []
    for kh in range(3):
        for kw in range(3):
            oy, ox = kh - 1, kw - 1
            s = oy * W + ox                      # flattened (row-major) shift
            if s > 0:
                sh = jnp.concatenate(
                    [src[s:, :], jnp.zeros((s, Cp), src.dtype)], axis=0)
            elif s < 0:
                sh = jnp.concatenate(
                    [jnp.zeros((-s, Cp), src.dtype), src[:s, :]], axis=0)
            else:
                sh = src
            if ox != 0:
                valid = (col + ox >= 0) & (col + ox < W)
                sh = jnp.where(valid, sh, jnp.zeros_like(sh))
            taps.append(sh)
    return jnp.concatenate(taps, axis=1)         # (HW, 9*Cp), lane-aligned


def basic_block_kernel(x_ref, w1_ref, b1_ref, w2_ref, b2_ref, out_ref, *, H, W):
    """One batch element per grid step.

    x_ref  : (H*W, Cp)  f32   channel-padded input activations
    w1_ref : (9*Cp, Cp) bf16  conv1 weights with BN1 scale folded in
    b1_ref : (1, Cp)    f32   BN1 bias
    w2_ref : (9*Cp, Cp) bf16  conv2 weights with BN2 scale folded in
    b2_ref : (1, Cp)    f32   BN2 bias
    out_ref: (H*W, Cp)  f32
    """
    x = x_ref[...]                                           # keep f32 residual

    # conv1 (BN1 scale pre-folded) -> bias -> ReLU : single fused MXU matmul
    p1 = _im2col_3x3(x.astype(jnp.bfloat16), H, W)
    y = jnp.dot(p1, w1_ref[...], preferred_element_type=jnp.float32)
    y = jnp.maximum(y + b1_ref[...], 0.0)

    # conv2 (BN2 scale pre-folded) -> bias -> residual add -> ReLU
    p2 = _im2col_3x3(y.astype(jnp.bfloat16), H, W)
    z = jnp.dot(p2, w2_ref[...], preferred_element_type=jnp.float32)
    out_ref[...] = jnp.maximum(z + b2_ref[...] + x, 0.0)


def _round_up(v, m):
    return (v + m - 1) // m * m


@jax.jit
def basic_block(x, w1_hwio, sb1, w2_hwio, sb2):
    """x: (N, H, W, C) f32 NHWC.  w*: (3, 3, C, C) HWIO.  sb*: (2, C) = (scale, bias)."""
    N, H, W, C = x.shape
    HW = H * W
    Cp = _round_up(max(C, 128), 128)             # lane-dense channel padding

    def prep_w(w_hwio, scale):
        w = w_hwio * scale[None, None, None, :]  # fold BN scale into conv
        w = jnp.pad(w, ((0, 0), (0, 0), (0, Cp - C), (0, Cp - C)))
        return w.reshape(9 * Cp, Cp).astype(jnp.bfloat16)

    def prep_b(bias):
        return jnp.pad(bias, (0, Cp - C)).reshape(1, Cp).astype(jnp.float32)

    w1 = prep_w(w1_hwio, sb1[0]); b1 = prep_b(sb1[1])
    w2 = prep_w(w2_hwio, sb2[0]); b2 = prep_b(sb2[1])

    xp = jnp.pad(x, ((0, 0), (0, 0), (0, 0), (0, Cp - C))).reshape(N, HW, Cp)

    grid_spec = pltpu.PrefetchScalarGridSpec(
        num_scalar_prefetch=0,
        grid=(N,),
        in_specs=[
            pl.BlockSpec((None, HW, Cp), lambda n: (n, 0, 0)),
            pl.BlockSpec((9 * Cp, Cp), lambda n: (0, 0)),
            pl.BlockSpec((1, Cp), lambda n: (0, 0)),
            pl.BlockSpec((9 * Cp, Cp), lambda n: (0, 0)),
            pl.BlockSpec((1, Cp), lambda n: (0, 0)),
        ],
        out_specs=pl.BlockSpec((None, HW, Cp), lambda n: (n, 0, 0)),
    )

    out = pl.pallas_call(
        functools.partial(basic_block_kernel, H=H, W=W),
        out_shape=jax.ShapeDtypeStruct((N, HW, Cp), jnp.float32),
        grid_spec=grid_spec,
        compiler_params=pltpu.CompilerParams(
            dimension_semantics=("parallel",)),   # batch is independent -> 2 TCs on v7x
    )(xp, w1, b1, w2, b2)

    return out.reshape(N, H, W, Cp)[..., :C]


def _fold_bn(gamma, beta, mean, var, eps=1e-5):
    scale = gamma / jnp.sqrt(var + eps)
    bias = beta - mean * scale
    return jnp.stack([scale, bias], axis=0)       # (2, C)


def _reference(x, w1_hwio, sb1, w2_hwio, sb2):
    """Pure-JAX f32 reference (NHWC conv via lax) for validation."""
    dn = ('NHWC', 'HWIO', 'NHWC')
    y = lax.conv_general_dilated(x, w1_hwio, (1, 1), 'SAME',
                                 dimension_numbers=dn)
    y = jnp.maximum(y * sb1[0] + sb1[1], 0.0)
    y = lax.conv_general_dilated(y, w2_hwio, (1, 1), 'SAME',
                                 dimension_numbers=dn)
    y = y * sb2[0] + sb2[1] + x
    return jnp.maximum(y, 0.0)


if __name__ == "__main__":
    N, C, H, W = 2, 4, 16, 16  # inplanes = planes = 4, stride=1, downsample=None
    key = jax.random.PRNGKey(0)
    keys = jax.random.split(key, 8)

    x = jax.random.normal(keys[0], (N, H, W, C), jnp.float32)

    # Conv weights in HWIO = (kh, kw, Cin, Cout).
    w1_hwio = 0.1 * jax.random.normal(keys[1], (3, 3, C, C), jnp.float32)
    w2_hwio = 0.1 * jax.random.normal(keys[2], (3, 3, C, C), jnp.float32)

    # BatchNorm (eval mode) parameters, folded to per-channel scale/bias.
    g1 = 1.0 + 0.1 * jax.random.normal(keys[3], (C,), jnp.float32)
    b1 = 0.1 * jax.random.normal(keys[4], (C,), jnp.float32)
    m1 = 0.1 * jax.random.normal(keys[5], (C,), jnp.float32)
    v1 = jnp.abs(0.1 * jax.random.normal(keys[6], (C,), jnp.float32)) + 1.0
    g2 = 1.0 + 0.05 * jnp.arange(C, dtype=jnp.float32)
    b2 = 0.02 * jnp.arange(C, dtype=jnp.float32)
    m2 = 0.03 * jnp.arange(C, dtype=jnp.float32)
    v2 = 1.0 + 0.1 * jnp.arange(C, dtype=jnp.float32)

    sb1 = _fold_bn(g1, b1, m1, v1)
    sb2 = _fold_bn(g2, b2, m2, v2)

    out = jax.block_until_ready(basic_block(x, w1_hwio, sb1, w2_hwio, sb2))

    ref = _reference(x, w1_hwio, sb1, w2_hwio, sb2)
    assert out.shape == (N, H, W, C)
    max_diff = float(jnp.max(jnp.abs(out - ref)))
    # bf16 matmul operands (f32 accumulation) -> relaxed tolerance vs f32 ref.
    assert max_diff < 5e-2, f"max abs diff {max_diff}"

    print("KERNEL_OK")
</pallas_src>

<mosaic_0001>
module attributes {stable_mosaic.version = 11 : i64} {
  func.func @basic_block_kernel(%arg0: i32, %arg1: memref<1x256x128xf32, #tpu.memory_space<vmem>>, %arg2: memref<1152x128xbf16, #tpu.memory_space<vmem>>, %arg3: memref<1x128xf32, #tpu.memory_space<vmem>>, %arg4: memref<1152x128xbf16, #tpu.memory_space<vmem>>, %arg5: memref<1x128xf32, #tpu.memory_space<vmem>>, %arg6: memref<1x256x128xf32, #tpu.memory_space<vmem>>) attributes {dimension_semantics = [#tpu.dimension_semantics<parallel>], iteration_bounds = array<i64: 2>, scalar_prefetch = 0 : i64, scratch_operands = 0 : i64, tpu.core_type = #tpu.core_type<tc>, window_params = [{transform_indices = @transform_0, window_bounds = array<i64: 1, 256, 128>}, {pipeline_mode = #tpu.pipeline_mode<synchronous>, transform_indices = @transform_1, window_bounds = array<i64: 1152, 128>}, {pipeline_mode = #tpu.pipeline_mode<synchronous>, transform_indices = @transform_2, window_bounds = array<i64: 1, 128>}, {pipeline_mode = #tpu.pipeline_mode<synchronous>, transform_indices = @transform_3, window_bounds = array<i64: 1152, 128>}, {pipeline_mode = #tpu.pipeline_mode<synchronous>, transform_indices = @transform_4, window_bounds = array<i64: 1, 128>}, {transform_indices = @transform_5, window_bounds = array<i64: 1, 256, 128>}]} {
    %c0 = arith.constant 0 : index
    %c0_0 = arith.constant 0 : index
    %c0_1 = arith.constant 0 : index
    %0 = vector.load %arg1[%c0, %c0_0, %c0_1] : memref<1x256x128xf32, #tpu.memory_space<vmem>>, vector<1x256x128xf32>
    %1 = vector.shape_cast %0 : vector<1x256x128xf32> to vector<256x128xf32>
    %2 = arith.truncf %1 : vector<256x128xf32> to vector<256x128xbf16>
    %3 = tpu.iota {dimensions = array<i32: 0>} : vector<256x1xi32>
    %c16_i32 = arith.constant 16 : i32
    %c0_i32 = arith.constant 0 : i32
    %4 = arith.cmpi eq, %c16_i32, %c0_i32 : i32
    %c1_i32 = arith.constant 1 : i32
    %5 = arith.select %4, %c1_i32, %c16_i32 : i32
    %6 = vector.broadcast %5 : i32 to vector<256x1xi32>
    %7 = arith.remsi %3, %6 : vector<256x1xi32>
    %c0_i32_2 = arith.constant 0 : i32
    %8 = vector.broadcast %c0_i32_2 : i32 to vector<256x1xi32>
    %9 = arith.cmpi ne, %7, %8 : vector<256x1xi32>
    %c0_i32_3 = arith.constant 0 : i32
    %10 = vector.broadcast %c0_i32_3 : i32 to vector<256x1xi32>
    %11 = arith.cmpi slt, %7, %10 : vector<256x1xi32>
    %c0_i32_4 = arith.constant 0 : i32
    %12 = arith.cmpi slt, %5, %c0_i32_4 : i32
    %13 = vector.broadcast %12 : i1 to vector<256x1xi1>
    %14 = vector.broadcast %13 : vector<256x1xi1> to vector<256x1xi1>
    %15 = arith.xori %11, %14 : vector<256x1xi1>
    %16 = arith.andi %15, %9 : vector<256x1xi1>
    %17 = vector.broadcast %5 : i32 to vector<256x1xi32>
    %18 = arith.addi %7, %17 : vector<256x1xi32>
    %19 = arith.select %16, %18, %7 : vector<256x1xi1>, vector<256x1xi32>
    %cst = arith.constant 0.000000e+00 : bf16
    %20 = vector.broadcast %cst : bf16 to vector<17x128xbf16>
    %21 = vector.extract_strided_slice %2 {offsets = [0, 0], sizes = [239, 128], strides = [1, 1]} : vector<256x128xbf16> to vector<239x128xbf16>
    %22 = tpu.concatenate %20, %21 in 0 : vector<17x128xbf16>, vector<239x128xbf16> -> vector<256x128xbf16>
    %c-1_i32 = arith.constant -1 : i32
    %23 = vector.broadcast %c-1_i32 : i32 to vector<256x1xi32>
    %24 = arith.addi %19, %23 : vector<256x1xi32>
    %c0_i32_5 = arith.constant 0 : i32
    %25 = vector.broadcast %c0_i32_5 : i32 to vector<256x1xi32>
    %26 = arith.cmpi sge, %24, %25 : vector<256x1xi32>
    %c-1_i32_6 = arith.constant -1 : i32
    %27 = vector.broadcast %c-1_i32_6 : i32 to vector<256x1xi32>
    %28 = arith.addi %19, %27 : vector<256x1xi32>
    %c16_i32_7 = arith.constant 16 : i32
    %29 = vector.broadcast %c16_i32_7 : i32 to vector<256x1xi32>
    %30 = arith.cmpi slt, %28, %29 : vector<256x1xi32>
    %31 = arith.andi %26, %30 : vector<256x1xi1>
    %cst_8 = arith.constant 0.000000e+00 : bf16
    %32 = vector.broadcast %cst_8 : bf16 to vector<256x128xbf16>
    %33 = vector.shape_cast %31 : vector<256x1xi1> to vector<256x1xi1>
    %34 = vector.broadcast %33 : vector<256x1xi1> to vector<256x128xi1>
    %35 = arith.select %34, %22, %32 : vector<256x128xi1>, vector<256x128xbf16>
    %cst_9 = arith.constant 0.000000e+00 : bf16
    %36 = vector.broadcast %cst_9 : bf16 to vector<16x128xbf16>
    %37 = vector.extract_strided_slice %2 {offsets = [0, 0], sizes = [240, 128], strides = [1, 1]} : vector<256x128xbf16> to vector<240x128xbf16>
    %38 = tpu.concatenate %36, %37 in 0 : vector<16x128xbf16>, vector<240x128xbf16> -> vector<256x128xbf16>
    %cst_10 = arith.constant 0.000000e+00 : bf16
    %39 = vector.broadcast %cst_10 : bf16 to vector<15x128xbf16>
    %40 = vector.extract_strided_slice %2 {offsets = [0, 0], sizes = [241, 128], strides = [1, 1]} : vector<256x128xbf16> to vector<241x128xbf16>
    %41 = tpu.concatenate %39, %40 in 0 : vector<15x128xbf16>, vector<241x128xbf16> -> vector<256x128xbf16>
    %c1_i32_11 = arith.constant 1 : i32
    %42 = vector.broadcast %c1_i32_11 : i32 to vector<256x1xi32>
    %43 = arith.addi %19, %42 : vector<256x1xi32>
    %c0_i32_12 = arith.constant 0 : i32
    %44 = vector.broadcast %c0_i32_12 : i32 to vector<256x1xi32>
    %45 = arith.cmpi sge, %43, %44 : vector<256x1xi32>
    %c1_i32_13 = arith.constant 1 : i32
    %46 = vector.broadcast %c1_i32_13 : i32 to vector<256x1xi32>
    %47 = arith.addi %19, %46 : vector<256x1xi32>
    %c16_i32_14 = arith.constant 16 : i32
    %48 = vector.broadcast %c16_i32_14 : i32 to vector<256x1xi32>
    %49 = arith.cmpi slt, %47, %48 : vector<256x1xi32>
    %50 = arith.andi %45, %49 : vector<256x1xi1>
    %cst_15 = arith.constant 0.000000e+00 : bf16
    %51 = vector.broadcast %cst_15 : bf16 to vector<256x128xbf16>
    %52 = vector.shape_cast %50 : vector<256x1xi1> to vector<256x1xi1>
    %53 = vector.broadcast %52 : vector<256x1xi1> to vector<256x128xi1>
    %54 = arith.select %53, %41, %51 : vector<256x128xi1>, vector<256x128xbf16>
    %cst_16 = arith.constant 0.000000e+00 : bf16
    %55 = vector.broadcast %cst_16 : bf16 to vector<1x128xbf16>
    %56 = vector.extract_strided_slice %2 {offsets = [0, 0], sizes = [255, 128], strides = [1, 1]} : vector<256x128xbf16> to vector<255x128xbf16>
    %57 = tpu.concatenate %55, %56 in 0 : vector<1x128xbf16>, vector<255x128xbf16> -> vector<256x128xbf16>
    %c-1_i32_17 = arith.constant -1 : i32
    %58 = vector.broadcast %c-1_i32_17 : i32 to vector<256x1xi32>
    %59 = arith.addi %19, %58 : vector<256x1xi32>
    %c0_i32_18 = arith.constant 0 : i32
    %60 = vector.broadcast %c0_i32_18 : i32 to vector<256x1xi32>
    %61 = arith.cmpi sge, %59, %60 : vector<256x1xi32>
    %c-1_i32_19 = arith.constant -1 : i32
    %62 = vector.broadcast %c-1_i32_19 : i32 to vector<256x1xi32>
    %63 = arith.addi %19, %62 : vector<256x1xi32>
    %c16_i32_20 = arith.constant 16 : i32
    %64 = vector.broadcast %c16_i32_20 : i32 to vector<256x1xi32>
    %65 = arith.cmpi slt, %63, %64 : vector<256x1xi32>
    %66 = arith.andi %61, %65 : vector<256x1xi1>
    %cst_21 = arith.constant 0.000000e+00 : bf16
    %67 = vector.broadcast %cst_21 : bf16 to vector<256x128xbf16>
    %68 = vector.shape_cast %66 : vector<256x1xi1> to vector<256x1xi1>
    %69 = vector.broadcast %68 : vector<256x1xi1> to vector<256x128xi1>
    %70 = arith.select %69, %57, %67 : vector<256x128xi1>, vector<256x128xbf16>
    %71 = vector.extract_strided_slice %2 {offsets = [1, 0], sizes = [255, 128], strides = [1, 1]} : vector<256x128xbf16> to vector<255x128xbf16>
    %cst_22 = arith.constant 0.000000e+00 : bf16
    %72 = vector.broadcast %cst_22 : bf16 to vector<1x128xbf16>
    %73 = tpu.concatenate %71, %72 in 0 : vector<255x128xbf16>, vector<1x128xbf16> -> vector<256x128xbf16>
    %c1_i32_23 = arith.constant 1 : i32
    %74 = vector.broadcast %c1_i32_23 : i32 to vector<256x1xi32>
    %75 = arith.addi %19, %74 : vector<256x1xi32>
    %c0_i32_24 = arith.constant 0 : i32
    %76 = vector.broadcast %c0_i32_24 : i32 to vector<256x1xi32>
    %77 = arith.cmpi sge, %75, %76 : vector<256x1xi32>
    %c1_i32_25 = arith.constant 1 : i32
    %78 = vector.broadcast %c1_i32_25 : i32 to vector<256x1xi32>
    %79 = arith.addi %19, %78 : vector<256x1xi32>
    %c16_i32_26 = arith.constant 16 : i32
    %80 = vector.broadcast %c16_i32_26 : i32 to vector<256x1xi32>
    %81 = arith.cmpi slt, %79, %80 : vector<256x1xi32>
    %82 = arith.andi %77, %81 : vector<256x1xi1>
    %cst_27 = arith.constant 0.000000e+00 : bf16
    %83 = vector.broadcast %cst_27 : bf16 to vector<256x128xbf16>
    %84 = vector.shape_cast %82 : vector<256x1xi1> to vector<256x1xi1>
    %85 = vector.broadcast %84 : vector<256x1xi1> to vector<256x128xi1>
    %86 = arith.select %85, %73, %83 : vector<256x128xi1>, vector<256x128xbf16>
    %87 = vector.extract_strided_slice %2 {offsets = [15, 0], sizes = [241, 128], strides = [1, 1]} : vector<256x128xbf16> to vector<241x128xbf16>
    %cst_28 = arith.constant 0.000000e+00 : bf16
    %88 = vector.broadcast %cst_28 : bf16 to vector<15x128xbf16>
    %89 = tpu.concatenate %87, %88 in 0 : vector<241x128xbf16>, vector<15x128xbf16> -> vector<256x128xbf16>
    %c-1_i32_29 = arith.constant -1 : i32
    %90 = vector.broadcast %c-1_i32_29 : i32 to vector<256x1xi32>
    %91 = arith.addi %19, %90 : vector<256x1xi32>
    %c0_i32_30 = arith.constant 0 : i32
    %92 = vector.broadcast %c0_i32_30 : i32 to vector<256x1xi32>
    %93 = arith.cmpi sge, %91, %92 : vector<256x1xi32>
    %c-1_i32_31 = arith.constant -1 : i32
    %94 = vector.broadcast %c-1_i32_31 : i32 to vector<256x1xi32>
    %95 = arith.addi %19, %94 : vector<256x1xi32>
    %c16_i32_32 = arith.constant 16 : i32
    %96 = vector.broadcast %c16_i32_32 : i32 to vector<256x1xi32>
    %97 = arith.cmpi slt, %95, %96 : vector<256x1xi32>
    %98 = arith.andi %93, %97 : vector<256x1xi1>
    %cst_33 = arith.constant 0.000000e+00 : bf16
    %99 = vector.broadcast %cst_33 : bf16 to vector<256x128xbf16>
    %100 = vector.shape_cast %98 : vector<256x1xi1> to vector<256x1xi1>
    %101 = vector.broadcast %100 : vector<256x1xi1> to vector<256x128xi1>
    %102 = arith.select %101, %89, %99 : vector<256x128xi1>, vector<256x128xbf16>
    %103 = vector.extract_strided_slice %2 {offsets = [16, 0], sizes = [240, 128], strides = [1, 1]} : vector<256x128xbf16> to vector<240x128xbf16>
    %cst_34 = arith.constant 0.000000e+00 : bf16
    %104 = vector.broadcast %cst_34 : bf16 to vector<16x128xbf16>
    %105 = tpu.concatenate %103, %104 in 0 : vector<240x128xbf16>, vector<16x128xbf16> -> vector<256x128xbf16>
    %106 = vector.extract_strided_slice %2 {offsets = [17, 0], sizes = [239, 128], strides = [1, 1]} : vector<256x128xbf16> to vector<239x128xbf16>
    %cst_35 = arith.constant 0.000000e+00 : bf16
    %107 = vector.broadcast %cst_35 : bf16 to vector<17x128xbf16>
    %108 = tpu.concatenate %106, %107 in 0 : vector<239x128xbf16>, vector<17x128xbf16> -> vector<256x128xbf16>
    %c1_i32_36 = arith.constant 1 : i32
    %109 = vector.broadcast %c1_i32_36 : i32 to vector<256x1xi32>
    %110 = arith.addi %19, %109 : vector<256x1xi32>
    %c0_i32_37 = arith.constant 0 : i32
    %111 = vector.broadcast %c0_i32_37 : i32 to vector<256x1xi32>
    %112 = arith.cmpi sge, %110, %111 : vector<256x1xi32>
    %c1_i32_38 = arith.constant 1 : i32
    %113 = vector.broadcast %c1_i32_38 : i32 to vector<256x1xi32>
    %114 = arith.addi %19, %113 : vector<256x1xi32>
    %c16_i32_39 = arith.constant 16 : i32
    %115 = vector.broadcast %c16_i32_39 : i32 to vector<256x1xi32>
    %116 = arith.cmpi slt, %114, %115 : vector<256x1xi32>
    %117 = arith.andi %112, %116 : vector<256x1xi1>
    %cst_40 = arith.constant 0.000000e+00 : bf16
    %118 = vector.broadcast %cst_40 : bf16 to vector<256x128xbf16>
    %119 = vector.shape_cast %117 : vector<256x1xi1> to vector<256x1xi1>
    %120 = vector.broadcast %119 : vector<256x1xi1> to vector<256x128xi1>
    %121 = arith.select %120, %108, %118 : vector<256x128xi1>, vector<256x128xbf16>
    %122 = tpu.concatenate %35, %38, %54, %70, %2, %86, %102, %105, %121 in 1 : vector<256x128xbf16>, vector<256x128xbf16>, vector<256x128xbf16>, vector<256x128xbf16>, vector<256x128xbf16>, vector<256x128xbf16>, vector<256x128xbf16>, vector<256x128xbf16>, vector<256x128xbf16> -> vector<256x1152xbf16>
    %c0_41 = arith.constant 0 : index
    %c0_42 = arith.constant 0 : index
    %123 = vector.load %arg2[%c0_41, %c0_42] : memref<1152x128xbf16, #tpu.memory_space<vmem>>, vector<1152x128xbf16>
    %cst_43 = arith.constant dense<0.000000e+00> : vector<256x128xf32>
    %124 = tpu.matmul %122, %123, %cst_43 {dimension_numbers = #tpu.dot_dimension_numbers<[1], [0], [0], [1], [0, 0, 1, 1], [], []>} : vector<256x1152xbf16>, vector<1152x128xbf16>, vector<256x128xf32> -> vector<256x128xf32>
    %c0_44 = arith.constant 0 : index
    %c0_45 = arith.constant 0 : index
    %125 = vector.load %arg3[%c0_44, %c0_45] : memref<1x128xf32, #tpu.memory_space<vmem>>, vector<1x128xf32>
    %126 = vector.broadcast %125 : vector<1x128xf32> to vector<256x128xf32>
    %127 = arith.addf %124, %126 : vector<256x128xf32>
    %cst_46 = arith.constant 0.000000e+00 : f32
    %128 = vector.broadcast %cst_46 : f32 to vector<256x128xf32>
    %129 = arith.maximumf %127, %128 : vector<256x128xf32>
    %130 = arith.truncf %129 : vector<256x128xf32> to vector<256x128xbf16>
    %131 = tpu.iota {dimensions = array<i32: 0>} : vector<256x1xi32>
    %c16_i32_47 = arith.constant 16 : i32
    %c0_i32_48 = arith.constant 0 : i32
    %132 = arith.cmpi eq, %c16_i32_47, %c0_i32_48 : i32
    %c1_i32_49 = arith.constant 1 : i32
    %133 = arith.select %132, %c1_i32_49, %c16_i32_47 : i32
    %134 = vector.broadcast %133 : i32 to vector<256x1xi32>
    %135 = arith.remsi %131, %134 : vector<256x1xi32>
    %c0_i32_50 = arith.constant 0 : i32
    %136 = vector.broadcast %c0_i32_50 : i32 to vector<256x1xi32>
    %137 = arith.cmpi ne, %135, %136 : vector<256x1xi32>
    %c0_i32_51 = arith.constant 0 : i32
    %138 = vector.broadcast %c0_i32_51 : i32 to vector<256x1xi32>
    %139 = arith.cmpi slt, %135, %138 : vector<256x1xi32>
    %c0_i32_52 = arith.constant 0 : i32
    %140 = arith.cmpi slt, %133, %c0_i32_52 : i32
    %141 = vector.broadcast %140 : i1 to vector<256x1xi1>
    %142 = vector.broadcast %141 : vector<256x1xi1> to vector<256x1xi1>
    %143 = arith.xori %139, %142 : vector<256x1xi1>
    %144 = arith.andi %143, %137 : vector<256x1xi1>
    %145 = vector.broadcast %133 : i32 to vector<256x1xi32>
    %146 = arith.addi %135, %145 : vector<256x1xi32>
    %147 = arith.select %144, %146, %135 : vector<256x1xi1>, vector<256x1xi32>
    %cst_53 = arith.constant 0.000000e+00 : bf16
    %148 = vector.broadcast %cst_53 : bf16 to vector<17x128xbf16>
    %149 = vector.extract_strided_slice %130 {offsets = [0, 0], sizes = [239, 128], strides = [1, 1]} : vector<256x128xbf16> to vector<239x128xbf16>
    %150 = tpu.concatenate %148, %149 in 0 : vector<17x128xbf16>, vector<239x128xbf16> -> vector<256x128xbf16>
    %c-1_i32_54 = arith.constant -1 : i32
    %151 = vector.broadcast %c-1_i32_54 : i32 to vector<256x1xi32>
    %152 = arith.addi %147, %151 : vector<256x1xi32>
    %c0_i32_55 = arith.constant 0 : i32
    %153 = vector.broadcast %c0_i32_55 : i32 to vector<256x1xi32>
    %154 = arith.cmpi sge, %152, %153 : vector<256x1xi32>
    %c-1_i32_56 = arith.constant -1 : i32
    %155 = vector.broadcast %c-1_i32_56 : i32 to vector<256x1xi32>
    %156 = arith.addi %147, %155 : vector<256x1xi32>
    %c16_i32_57 = arith.constant 16 : i32
    %157 = vector.broadcast %c16_i32_57 : i32 to vector<256x1xi32>
    %158 = arith.cmpi slt, %156, %157 : vector<256x1xi32>
    %159 = arith.andi %154, %158 : vector<256x1xi1>
    %cst_58 = arith.constant 0.000000e+00 : bf16
    %160 = vector.broadcast %cst_58 : bf16 to vector<256x128xbf16>
    %161 = vector.shape_cast %159 : vector<256x1xi1> to vector<256x1xi1>
    %162 = vector.broadcast %161 : vector<256x1xi1> to vector<256x128xi1>
    %163 = arith.select %162, %150, %160 : vector<256x128xi1>, vector<256x128xbf16>
    %cst_59 = arith.constant 0.000000e+00 : bf16
    %164 = vector.broadcast %cst_59 : bf16 to vector<16x128xbf16>
    %165 = vector.extract_strided_slice %130 {offsets = [0, 0], sizes = [240, 128], strides = [1, 1]} : vector<256x128xbf16> to vector<240x128xbf16>
    %166 = tpu.concatenate %164, %165 in 0 : vector<16x128xbf16>, vector<240x128xbf16> -> vector<256x128xbf16>
    %cst_60 = arith.constant 0.000000e+00 : bf16
    %167 = vector.broadcast %cst_60 : bf16 to vector<15x128xbf16>
    %168 = vector.extract_strided_slice %130 {offsets = [0, 0], sizes = [241, 128], strides = [1, 1]} : vector<256x128xbf16> to vector<241x128xbf16>
    %169 = tpu.concatenate %167, %168 in 0 : vector<15x128xbf16>, vector<241x128xbf16> -> vector<256x128xbf16>
    %c1_i32_61 = arith.constant 1 : i32
    %170 = vector.broadcast %c1_i32_61 : i32 to vector<256x1xi32>
    %171 = arith.addi %147, %170 : vector<256x1xi32>
    %c0_i32_62 = arith.constant 0 : i32
    %172 = vector.broadcast %c0_i32_62 : i32 to vector<256x1xi32>
    %173 = arith.cmpi sge, %171, %172 : vector<256x1xi32>
    %c1_i32_63 = arith.constant 1 : i32
    %174 = vector.broadcast %c1_i32_63 : i32 to vector<256x1xi32>
    %175 = arith.addi %147, %174 : vector<256x1xi32>
    %c16_i32_64 = arith.constant 16 : i32
    %176 = vector.broadcast %c16_i32_64 : i32 to vector<256x1xi32>
    %177 = arith.cmpi slt, %175, %176 : vector<256x1xi32>
    %178 = arith.andi %173, %177 : vector<256x1xi1>
    %cst_65 = arith.constant 0.000000e+00 : bf16
    %179 = vector.broadcast %cst_65 : bf16 to vector<256x128xbf16>
    %180 = vector.shape_cast %178 : vector<256x1xi1> to vector<256x1xi1>
    %181 = vector.broadcast %180 : vector<256x1xi1> to vector<256x128xi1>
    %182 = arith.select %181, %169, %179 : vector<256x128xi1>, vector<256x128xbf16>
    %cst_66 = arith.constant 0.000000e+00 : bf16
    %183 = vector.broadcast %cst_66 : bf16 to vector<1x128xbf16>
    %184 = vector.extract_strided_slice %130 {offsets = [0, 0], sizes = [255, 128], strides = [1, 1]} : vector<256x128xbf16> to vector<255x128xbf16>
    %185 = tpu.concatenate %183, %184 in 0 : vector<1x128xbf16>, vector<255x128xbf16> -> vector<256x128xbf16>
    %c-1_i32_67 = arith.constant -1 : i32
    %186 = vector.broadcast %c-1_i32_67 : i32 to vector<256x1xi32>
    %187 = arith.addi %147, %186 : vector<256x1xi32>
    %c0_i32_68 = arith.constant 0 : i32
    %188 = vector.broadcast %c0_i32_68 : i32 to vector<256x1xi32>
    %189 = arith.cmpi sge, %187, %188 : vector<256x1xi32>
    %c-1_i32_69 = arith.constant -1 : i32
    %190 = vector.broadcast %c-1_i32_69 : i32 to vector<256x1xi32>
    %191 = arith.addi %147, %190 : vector<256x1xi32>
    %c16_i32_70 = arith.constant 16 : i32
    %192 = vector.broadcast %c16_i32_70 : i32 to vector<256x1xi32>
    %193 = arith.cmpi slt, %191, %192 : vector<256x1xi32>
    %194 = arith.andi %189, %193 : vector<256x1xi1>
    %cst_71 = arith.constant 0.000000e+00 : bf16
    %195 = vector.broadcast %cst_71 : bf16 to vector<256x128xbf16>
    %196 = vector.shape_cast %194 : vector<256x1xi1> to vector<256x1xi1>
    %197 = vector.broadcast %196 : vector<256x1xi1> to vector<256x128xi1>
    %198 = arith.select %197, %185, %195 : vector<256x128xi1>, vector<256x128xbf16>
    %199 = vector.extract_strided_slice %130 {offsets = [1, 0], sizes = [255, 128], strides = [1, 1]} : vector<256x128xbf16> to vector<255x128xbf16>
    %cst_72 = arith.constant 0.000000e+00 : bf16
    %200 = vector.broadcast %cst_72 : bf16 to vector<1x128xbf16>
    %201 = tpu.concatenate %199, %200 in 0 : vector<255x128xbf16>, vector<1x128xbf16> -> vector<256x128xbf16>
    %c1_i32_73 = arith.constant 1 : i32
    %202 = vector.broadcast %c1_i32_73 : i32 to vector<256x1xi32>
    %203 = arith.addi %147, %202 : vector<256x1xi32>
    %c0_i32_74 = arith.constant 0 : i32
    %204 = vector.broadcast %c0_i32_74 : i32 to vector<256x1xi32>
    %205 = arith.cmpi sge, %203, %204 : vector<256x1xi32>
    %c1_i32_75 = arith.constant 1 : i32
    %206 = vector.broadcast %c1_i32_75 : i32 to vector<256x1xi32>
    %207 = arith.addi %147, %206 : vector<256x1xi32>
    %c16_i32_76 = arith.constant 16 : i32
    %208 = vector.broadcast %c16_i32_76 : i32 to vector<256x1xi32>
    %209 = arith.cmpi slt, %207, %208 : vector<256x1xi32>
    %210 = arith.andi %205, %209 : vector<256x1xi1>
    %cst_77 = arith.constant 0.000000e+00 : bf16
    %211 = vector.broadcast %cst_77 : bf16 to vector<256x128xbf16>
    %212 = vector.shape_cast %210 : vector<256x1xi1> to vector<256x1xi1>
    %213 = vector.broadcast %212 : vector<256x1xi1> to vector<256x128xi1>
    %214 = arith.select %213, %201, %211 : vector<256x128xi1>, vector<256x128xbf16>
    %215 = vector.extract_strided_slice %130 {offsets = [15, 0], sizes = [241, 128], strides = [1, 1]} : vector<256x128xbf16> to vector<241x128xbf16>
    %cst_78 = arith.constant 0.000000e+00 : bf16
    %216 = vector.broadcast %cst_78 : bf16 to vector<15x128xbf16>
    %217 = tpu.concatenate %215, %216 in 0 : vector<241x128xbf16>, vector<15x128xbf16> -> vector<256x128xbf16>
    %c-1_i32_79 = arith.constant -1 : i32
    %218 = vector.broadcast %c-1_i32_79 : i32 to vector<256x1xi32>
    %219 = arith.addi %147, %218 : vector<256x1xi32>
    %c0_i32_80 = arith.constant 0 : i32
    %220 = vector.broadcast %c0_i32_80 : i32 to vector<256x1xi32>
    %221 = arith.cmpi sge, %219, %220 : vector<256x1xi32>
    %c-1_i32_81 = arith.constant -1 : i32
    %222 = vector.broadcast %c-1_i32_81 : i32 to vector<256x1xi32>
    %223 = arith.addi %147, %222 : vector<256x1xi32>
    %c16_i32_82 = arith.constant 16 : i32
    %224 = vector.broadcast %c16_i32_82 : i32 to vector<256x1xi32>
    %225 = arith.cmpi slt, %223, %224 : vector<256x1xi32>
    %226 = arith.andi %221, %225 : vector<256x1xi1>
    %cst_83 = arith.constant 0.000000e+00 : bf16
    %227 = vector.broadcast %cst_83 : bf16 to vector<256x128xbf16>
    %228 = vector.shape_cast %226 : vector<256x1xi1> to vector<256x1xi1>
    %229 = vector.broadcast %228 : vector<256x1xi1> to vector<256x128xi1>
    %230 = arith.select %229, %217, %227 : vector<256x128xi1>, vector<256x128xbf16>
    %231 = vector.extract_strided_slice %130 {offsets = [16, 0], sizes = [240, 128], strides = [1, 1]} : vector<256x128xbf16> to vector<240x128xbf16>
    %cst_84 = arith.constant 0.000000e+00 : bf16
    %232 = vector.broadcast %cst_84 : bf16 to vector<16x128xbf16>
    %233 = tpu.concatenate %231, %232 in 0 : vector<240x128xbf16>, vector<16x128xbf16> -> vector<256x128xbf16>
    %234 = vector.extract_strided_slice %130 {offsets = [17, 0], sizes = [239, 128], strides = [1, 1]} : vector<256x128xbf16> to vector<239x128xbf16>
    %cst_85 = arith.constant 0.000000e+00 : bf16
    %235 = vector.broadcast %cst_85 : bf16 to vector<17x128xbf16>
    %236 = tpu.concatenate %234, %235 in 0 : vector<239x128xbf16>, vector<17x128xbf16> -> vector<256x128xbf16>
    %c1_i32_86 = arith.constant 1 : i32
    %237 = vector.broadcast %c1_i32_86 : i32 to vector<256x1xi32>
    %238 = arith.addi %147, %237 : vector<256x1xi32>
    %c0_i32_87 = arith.constant 0 : i32
    %239 = vector.broadcast %c0_i32_87 : i32 to vector<256x1xi32>
    %240 = arith.cmpi sge, %238, %239 : vector<256x1xi32>
    %c1_i32_88 = arith.constant 1 : i32
    %241 = vector.broadcast %c1_i32_88 : i32 to vector<256x1xi32>
    %242 = arith.addi %147, %241 : vector<256x1xi32>
    %c16_i32_89 = arith.constant 16 : i32
    %243 = vector.broadcast %c16_i32_89 : i32 to vector<256x1xi32>
    %244 = arith.cmpi slt, %242, %243 : vector<256x1xi32>
    %245 = arith.andi %240, %244 : vector<256x1xi1>
    %cst_90 = arith.constant 0.000000e+00 : bf16
    %246 = vector.broadcast %cst_90 : bf16 to vector<256x128xbf16>
    %247 = vector.shape_cast %245 : vector<256x1xi1> to vector<256x1xi1>
    %248 = vector.broadcast %247 : vector<256x1xi1> to vector<256x128xi1>
    %249 = arith.select %248, %236, %246 : vector<256x128xi1>, vector<256x128xbf16>
    %250 = tpu.concatenate %163, %166, %182, %198, %130, %214, %230, %233, %249 in 1 : vector<256x128xbf16>, vector<256x128xbf16>, vector<256x128xbf16>, vector<256x128xbf16>, vector<256x128xbf16>, vector<256x128xbf16>, vector<256x128xbf16>, vector<256x128xbf16>, vector<256x128xbf16> -> vector<256x1152xbf16>
    %c0_91 = arith.constant 0 : index
    %c0_92 = arith.constant 0 : index
    %251 = vector.load %arg4[%c0_91, %c0_92] : memref<1152x128xbf16, #tpu.memory_space<vmem>>, vector<1152x128xbf16>
    %cst_93 = arith.constant dense<0.000000e+00> : vector<256x128xf32>
    %252 = tpu.matmul %250, %251, %cst_93 {dimension_numbers = #tpu.dot_dimension_numbers<[1], [0], [0], [1], [0, 0, 1, 1], [], []>} : vector<256x1152xbf16>, vector<1152x128xbf16>, vector<256x128xf32> -> vector<256x128xf32>
    %c0_94 = arith.constant 0 : index
    %c0_95 = arith.constant 0 : index
    %253 = vector.load %arg5[%c0_94, %c0_95] : memref<1x128xf32, #tpu.memory_space<vmem>>, vector<1x128xf32>
    %254 = vector.broadcast %253 : vector<1x128xf32> to vector<256x128xf32>
    %255 = arith.addf %252, %254 : vector<256x128xf32>
    %256 = arith.addf %255, %1 : vector<256x128xf32>
    %cst_96 = arith.constant 0.000000e+00 : f32
    %257 = vector.broadcast %cst_96 : f32 to vector<256x128xf32>
    %258 = arith.maximumf %256, %257 : vector<256x128xf32>
    %c0_97 = arith.constant 0 : index
    %c0_98 = arith.constant 0 : index
    %c0_99 = arith.constant 0 : index
    %259 = vector.load %arg6[%c0_97, %c0_98, %c0_99] : memref<1x256x128xf32, #tpu.memory_space<vmem>>, vector<1x256x128xf32>
    %260 = vector.shape_cast %259 : vector<1x256x128xf32> to vector<256x128xf32>
    %261 = vector.shape_cast %258 : vector<256x128xf32> to vector<1x256x128xf32>
    tpu.vector_store %arg6[%c0_97, %c0_98, %c0_99], %261 {strides = array<i32>} : memref<1x256x128xf32, #tpu.memory_space<vmem>>, vector<1x256x128xf32>,
    return
  }
  func.func @transform_0(%arg0: i32) -> (i32, i32, i32) {
    %c0_i32 = arith.constant 0 : i32
    %c0_i32_0 = arith.constant 0 : i32
    %c0_i32_1 = arith.constant 0 : i32
    return %arg0, %c0_i32, %c0_i32_0 : i32, i32, i32
  }
  func.func @transform_1(%arg0: i32) -> (i32, i32) {
    %c0_i32 = arith.constant 0 : i32
    %c0_i32_0 = arith.constant 0 : i32
    %c0_i32_1 = arith.constant 0 : i32
    return %c0_i32, %c0_i32_0 : i32, i32
  }
  func.func @transform_2(%arg0: i32) -> (i32, i32) {
    %c0_i32 = arith.constant 0 : i32
    %c0_i32_0 = arith.constant 0 : i32
    %c0_i32_1 = arith.constant 0 : i32
    return %c0_i32, %c0_i32_0 : i32, i32
  }
  func.func @transform_3(%arg0: i32) -> (i32, i32) {
    %c0_i32 = arith.constant 0 : i32
    %c0_i32_0 = arith.constant 0 : i32
    %c0_i32_1 = arith.constant 0 : i32
    return %c0_i32, %c0_i32_0 : i32, i32
  }
  func.func @transform_4(%arg0: i32) -> (i32, i32) {
    %c0_i32 = arith.constant 0 : i32
    %c0_i32_0 = arith.constant 0 : i32
    %c0_i32_1 = arith.constant 0 : i32
    return %c0_i32, %c0_i32_0 : i32, i32
  }
  func.func @transform_5(%arg0: i32) -> (i32, i32, i32) {
    %c0_i32 = arith.constant 0 : i32
    %c0_i32_0 = arith.constant 0 : i32
    %c0_i32_1 = arith.constant 0 : i32
    return %arg0, %c0_i32, %c0_i32_0 : i32, i32, i32
  }
}

</mosaic_0001>

<bundles_post_ra>
// kernel: basic_block.1
= control target key start
LH: loop header
LB: loop body
LE: loop exit
PB: predicated region body
PF: predicated region fallthrough
CT: control target
= control target key end

     0   :  { %s6571_s18 = smov 0   ;;  %s9168_s0 = inlined_call_operand.vmem [shape: f32[2,256,128], index: 0, kind: input, shape index: {}]   ;;  %s9169_s1 = inlined_call_operand.vmem [shape: bf16[1152,128], index: 1, kind: input, shape index: {}]   ;;  %s9170_s2 = inlined_call_operand.vmem [shape: f32[1,128], index: 2, kind: input, shape index: {}]   ;;  %s9171_s3 = inlined_call_operand.vmem [shape: bf16[1152,128], index: 3, kind: input, shape index: {}]   ;;  %s9172_s4 = inlined_call_operand.vmem [shape: f32[1,128], index: 4, kind: input, shape index: {}]   ;;  %s9173_s5 = inlined_call_operand.vmem [shape: f32[2,256,128], index: 5, kind: output, shape index: {}]  }
   0x1 LB: > { %s4926_s19 = sadd.s32 4294967295, %s6537_s18   ;;  %p4930_p0 = scmp.ge.s32.totalorder %s6537_s18, 1  ;;  %s6537_s18 = sphi %s6571_s18, %s15_s18  }
   0x2   : > { %p187_p1 = scmp.lt.s32.totalorder %s6537_s18, 3 }
   0x4   : > { %p188_p2 = pnand %p4930_p0, %p187_p1 }
   0x6   : > { %191 = sbr.rel (%p188_p2) target bundleno = 1056 (0x420), region = 40 }
   0xd   : > { %v6355_v0 = vld [vmem:[%s9169_s1 + $0x40] sm:$0xff]   ;;  %v9189_v2 = vmov 0   ;;  %v6359_v5 = vld [vmem:[%s9169_s1 + $0x48] sm:$0xff]   ;;  %v276_v7 = vlaneseq  ;;  %p215_p3 = scmp.lt.s32.totalorder %s4926_s19, 1  ;;  %v6363_v10 = vld [vmem:[%s9169_s1 + $0x50] sm:$0xff]   ;;  %vm828_vm0 = vcmask 1040384  }
   0xe   : > { %v6356_v1 = vld [vmem:[%s9169_s1] sm:$0xff]   ;;  %2260 = vmatprep.mubr.bf16.mxu0 %v9189_v2  ;;  %5305 = vmatprep.subr.bf16.mxu0 %v6355_v0  ;;  %v6360_v6 = vld [vmem:[%s9169_s1 + $0x8] sm:$0xff]   ;;  %v6364_v11 = vld [vmem:[%s9169_s1 + $0x10] sm:$0xff]   ;;  %vm1224_vm2 = vcmask 1047552   ;;  %vm9174_vm3 = vsmask.f32 256 }
   0xf   : > { %v6357_v3 = vld [vmem:[%s9169_s1 + $0xc0] sm:$0xff]   ;;  %5306 = vmatpush3.bf16.msra.mxu0 %v6356_v1  ;;  %v6361_v8 = vld [vmem:[%s9169_s1 + $0xc8] sm:$0xff]   ;;  %v6612_v12 = vshrl.u32 %v276_v7, 7  ;;  %v6365_v13 = vld [vmem:[%s9169_s1 + $0xd0] sm:$0xff]   ;;  %s9761_s19 = smov (!%p215_p3, %s4926_s19), 1  ;;  %vm6540_vm4 = vmmov 1  }
  0x10   : > { %v6358_v4 = vld [vmem:[%s9169_s1 + $0x80] sm:$0xff]   ;;  %5417 = vmatprep.subr.bf16.mxu1 %v6357_v3  ;;  %5307 = vmatprep.subr.bf16.mxu0 %v6359_v5  ;;  %v6362_v9 = vld [vmem:[%s9169_s1 + $0x88] sm:$0xff]   ;;  %v6366_v14 = vld [vmem:[%s9169_s1 + $0x90] sm:$0xff]   ;;  %s5303_s29 = sshll.u32 %s9761_s19, 8  ;;  %vm9175_vm6 = vsmask.f32 7424 }
  0x11   : > { %5418 = vmatpush3.bf16.msra.mxu1 %v6358_v4  ;;  %v6367_v15 = vld [vmem:[%s9169_s1 + $0x58] sm:$0xff]   ;;  %v313_v17 = vand.u32 15, %v6612_v12  ;;  %v278_v19 = vadd.s32 8, %v6612_v12  ;;  %v6371_v21 = vld [vmem:[%s9169_s1 + $0x60] sm:$0xff]   ;;  %v279_v22 = vadd.s32 16, %v6612_v12  ;;  %v280_v28 = vadd.s32 24, %v6612_v12  ;;  %s6697_s15 = scalar_lea.vmem %s9168_s0, %s5303_s29  ;;  %vm1024_vm5 = vmpackc.low %vm6540_vm4, %vm6540_vm4  ;;  %s9067_s17 = scalar_lea.vmem %s9173_s5, %s5303_s29 }
  0x12   : > { %5419 = vmatprep.subr.bf16.mxu1 %v6361_v8  ;;  %v6368_v16 = vld [vmem:[%s9169_s1 + $0x18] sm:$0xff]   ;;  %v6372_v23 = vld [vmem:[%s9169_s1 + $0x20] sm:$0xff]   ;;  %v6375_v29 = vld [vmem:[%s9169_s1 + $0x68] sm:$0xff]   ;;  %v281_v32 = vadd.s32 32, %v6612_v12  ;;  %v282_v42 = vadd.s32 40, %v6612_v12  ;;  %v283_v48 = vadd.s32 48, %v6612_v12 }
  0x13   : > { %5308 = vmatpush3.bf16.msra.mxu0 %v6360_v6  ;;  %v6369_v18 = vld [vmem:[%s9169_s1 + $0xd8] sm:$0xff]   ;;  %v6646_v24 = vadd.s32 4294967295, %v313_v17  ;;  %v6373_v25 = vld [vmem:[%s9169_s1 + $0xe0] sm:$0xff]   ;;  %v320_v26 = vand.u32 15, %v278_v19  ;;  %v327_v30 = vand.u32 15, %v279_v22  ;;  %v6376_v31 = vld [vmem:[%s9169_s1 + $0x28] sm:$0xff]  }
  0x14   : > { %5309 = vmatprep.subr.bf16.mxu0 %v6363_v10  ;;  %v6370_v20 = vld [vmem:[%s9169_s1 + $0x98] sm:$0xff]   ;;  %v6374_v27 = vld [vmem:[%s9169_s1 + $0xa0] sm:$0xff]   ;;  %v6377_v33 = vld [vmem:[%s9169_s1 + $0xe8] sm:$0xff]   ;;  %v334_v36 = vand.u32 15, %v280_v28  ;;  %v341_v40 = vand.u32 15, %v281_v32  ;;  %v348_v46 = vand.u32 15, %v282_v42 }
  0x15   : > { %5420 = vmatpush3.bf16.msra.mxu1 %v6362_v9  ;;  %v1228_v34 = vadd.s32 1, %v320_v26  ;;  %v6378_v35 = vld [vmem:[%s9169_s1 + $0xa8] sm:$0xff]   ;;  %v6379_v37 = vld [vmem:[%s9169_s1 + $0x70] sm:$0xff]   ;;  %vm863_vm1 = vcmp.ge.s32.totalorder %v6646_v24, 0  ;;  %v833_v38 = vadd.s32 4294967295, %v327_v30  ;;  %v6383_v45 = vld [vmem:[%s9169_s1 + $0x78] sm:$0xff]  }
  0x16   : > { %5421 = vmatprep.subr.bf16.mxu1 %v6365_v13  ;;  %v6380_v39 = vld [vmem:[%s9169_s1 + $0x30] sm:$0xff]   ;;  %v1230_v44 = vadd.s32 1, %v334_v36  ;;  %v6384_v47 = vld [vmem:[%s9169_s1 + $0x38] sm:$0xff]   ;;  %v835_v50 = vadd.s32 4294967295, %v341_v40  ;;  %v6702_v52 = vadd.s32 1, %v348_v46  ;;  %v6387_v53 = vld [vmem:[%s9169_s1 + $0x140] sm:$0xff]  }
  0x17   : > { %5310 = vmatpush3.bf16.msra.mxu0 %v6364_v11  ;;  %v6381_v41 = vld [vmem:[%s9169_s1 + $0xf0] sm:$0xff]   ;;  %v6385_v49 = vld [vmem:[%s9169_s1 + $0xf8] sm:$0xff]   ;;  %v355_v54 = vand.u32 15, %v283_v48  ;;  %v228_v55 = vld [vmem:[%s6697_s15] sm:$0xff]  ;;  %v9378_v58 = vmov 0  ;;  %v6719_v59 = vsel %vm1024_vm5, 65537, %v9189_v2 }
  0x18   : > { %5311 = vmatprep.subr.bf16.mxu0 %v6367_v15  ;;  %v6382_v43 = vld [vmem:[%s9169_s1 + $0xb0] sm:$0xff]   ;;  %v6386_v51 = vld [vmem:[%s9169_s1 + $0xb8] sm:$0xff]   ;;  %v229_v56 = vld [vmem:[%s6697_s15 + $0x8] sm:$0xff]  ;;  %vm1292_vm8 = vcmp.lt.s32.totalorder %v1228_v34, 16  ;;  %vm865_vm10 = vcmp.ge.s32.totalorder %v833_v38, 0  ;;  %vm1294_vm11 = vcmp.lt.s32.totalorder %v1230_v44, 16 }
  0x19   : > { %5422 = vmatpush3.bf16.msra.mxu1 %v6366_v14  ;;  %v6710_v57 = vpack.c.bf16 %v229_v56, %v228_v55  ;;  %vm6714_vm7 = vmand %vm828_vm0, %vm9174_vm3  ;;  %v6388_v60 = vld [vmem:[%s9169_s1 + $0x100] sm:$0xff]   ;;  %v230_v61 = vld [vmem:[%s6697_s15 + $0x10] sm:$0xff]  ;;  %vm867_vm12 = vcmp.ge.s32.totalorder %v835_v50, 0  ;;  %v9381_v1 = vmov 0  ;;  %vm1296_vm15 = vcmp.lt.s32.totalorder %v6702_v52, 16 }
  0x1a   : > { %5423 = vmatprep.subr.bf16.mxu1 %v6369_v18  ;;  %v9379_v58 = vsel %vm6714_vm7, 4294967295, %v9378_v58  ;;  %vm1569_vm9 = vmpackc.low %vm863_vm1, %vm863_vm1  ;;  %v231_v3 = vld [vmem:[%s6697_s15 + $0x18] sm:$0xff]  ;;  %v6389_v6 = vld [vmem:[%s9169_s1 + $0x148] sm:$0xff]   ;;  %v837_v7 = vadd.s32 4294967295, %v355_v54  ;;  %v284_v14 = vadd.s32 56, %v6612_v12  ;;  %v285_v19 = vadd.s32 64, %v6612_v12 }
  0x1b   : > { %5312 = vmatpush3.bf16.msra.mxu0 %v6368_v16  ;;  %9380 = vst [vmem:[#allocation2_spill] sm:$0xff] %v9379_v58  ;;  %v695_v62 = vshrl.u32 %v6710_v57, 16  ;;  %v698_v63 = vshll.u32 %v6710_v57, 16  ;;  %v1571_v0 = vsel %vm1569_vm9, 65537, %v9189_v2  ;;  %vm6733_vm13 = vmand %vm1224_vm2, %vm9175_vm6  ;;  %v6740_v5 = vpack.c.bf16 %v231_v3, %v230_v61  ;;  %v232_v11 = vld [vmem:[%s6697_s15 + $0x20] sm:$0xff]  ;;  %v233_v13 = vld [vmem:[%s6697_s15 + $0x28] sm:$0xff] }
  0x1c   : > { %5313 = vmatprep.subr.bf16.mxu0 %v6371_v21  ;;  %v9382_v1 = vsel %vm6733_vm13, 4294967295, %v9381_v1  ;;  %v4966_v4 = vcombine.low %v1571_v0, %v6719_v59  ;;  %vm1420_vm14 = vmpackc.low %vm1292_vm8, %vm1292_vm8  ;;  %v6390_v18 = vld [vmem:[%s9169_s1 + $0x108] sm:$0xff]   ;;  %v9384_v21 = vmov 0  ;;  %v234_v24 = vld [vmem:[%s6697_s15 + $0x30] sm:$0xff]  ;;  %v9388_v32 = vmov 0 }
  0x1d   : > { %5424 = vmatpush3.bf16.msra.mxu1 %v6370_v20  ;;  %9383 = vst [vmem:[#allocation3_spill] sm:$0xff] %v9382_v1  ;;  %v697_v8 = vrot.slane %v695_v62, 7  ;;  %v1159_v9 = vrot.slane %v698_v63, 1  ;;  %v1452_v10 = vsel %vm1420_vm14, 65537, %v9189_v2  ;;  %vm1023_vm0 = vmpackc.low %vm865_vm10, %vm865_vm10  ;;  %v702_v17 = vshrl.u32 %v6740_v5, 16  ;;  %v6391_v30 = vld [vmem:[%s9169_s1 + $0x150] sm:$0xff]  }
  0x1e   : > { %5425 = vmatprep.subr.bf16.mxu1 %v6373_v25  ;;  %v4950_v15 = vcombine.low %v6719_v59, %v1452_v10  ;;  %v1053_v16 = vsel %vm1023_vm0, 65537, %v9189_v2  ;;  %vm1422_vm1 = vmpackc.low %vm1294_vm11, %vm1294_vm11  ;;  %vm6761_vm2 = vcmp.ne.s16.totalorder %v4966_v4, 0  ;;  %v9386_v25 = vmov 0  ;;  %v6392_v42 = vld [vmem:[%s9169_s1 + $0x110] sm:$0xff]   ;;  %v237_v56 = vld [vmem:[%s6697_s15 + $0x48] sm:$0xff] }
  0x1f   : > { %5314 = vmatpush3.bf16.msra.mxu0 %v6372_v23  ;;  %v700_v20 = vor.u32 %v698_v63, %v697_v8  ;;  %v9385_v21 = vsel %vm6761_vm2, 4294967295, %v9384_v21  ;;  %v1226_v22 = vsel %vm6733_vm13, 0, %v1159_v9  ;;  %v4935_v23 = vcombine.low %v1053_v16, %v6719_v59  ;;  %vm1025_vm4 = vmpackc.low %vm867_vm12, %vm867_vm12  ;;  %v248_v58 = vld [vmem:[%s6697_s15 + $0xa0] sm:$0xff]  ;;  %v249_v1 = vld [vmem:[%s6697_s15 + $0xa8] sm:$0xff] }
  0x20   : > { %5315 = vmatprep.subr.bf16.mxu0 %v6375_v29  ;;  %vm6771_vm5 = vcmp.ne.s16.totalorder %v4950_v15, 0  ;;  %v704_v26 = vrot.slane %v702_v17, 7  ;;  %v1454_v28 = vsel %vm1422_vm1, 65537, %v9189_v2  ;;  %v235_v29 = vld [vmem:[%s6697_s15 + $0x38] sm:$0xff]  ;;  %vm869_vm9 = vcmp.ge.s32.totalorder %v837_v7, 0  ;;  %vm6804_vm10 = vmpackc.low %vm1296_vm15, %vm1296_vm15  ;;  %v6395_v15 = vld [vmem:[%s9169_s1 + $0x160] sm:$0xff]  }
  0x21   : > { %5426 = vmatpush3.bf16.msra.mxu1 %v6374_v27  ;;  %v9387_v25 = vsel %vm6771_vm5, 4294967295, %v9386_v25  ;;  %v705_v27 = vshll.u32 %v6740_v5, 16  ;;  %vm6785_vm8 = vcmp.ne.s16.totalorder %v4935_v23, 0  ;;  %v362_v36 = vand.u32 15, %v284_v14  ;;  %vm6819_vm11 = vmpackc.low %vm869_vm9, %vm869_vm9 }
  0x22   : > { %5427 = vmatprep.subr.bf16.mxu1 %v6377_v33  ;;  %v9389_v32 = vsel %vm6785_vm8, 4294967295, %v9388_v32  ;;  %v1055_v33 = vsel %vm1025_vm4, 65537, %v9189_v2  ;;  %v6808_v40 = vpack.c.bf16 %v235_v29, %v234_v24  ;;  %v286_v50 = vadd.s32 72, %v6612_v12 }
  0x23   : > { %5316 = vmatpush3.bf16.msra.mxu0 %v6376_v31  ;;  %v830_v31 = vsel %vm6714_vm7, 0, %v700_v20  ;;  %v707_v34 = vor.u32 %v705_v27, %v704_v26  ;;  %v4936_v38 = vcombine.low %v1055_v33, %v6719_v59  ;;  %v1234_v55 = vadd.s32 1, %v362_v36 }
  0x24   : > { %5317 = vmatprep.subr.bf16.mxu0 %v6379_v37  ;;  %5055 = vmatprep.mubr.msk.bf16.mxu1 %vm6761_vm2, %v830_v31  ;;  %v4951_v37 = vcombine.low %v6719_v59, %v1454_v28  ;;  %v718_v54 = vshrl.u32 %v6808_v40, 16  ;;  %v1057_v63 = vsel %vm6819_vm11, 65537, %v9189_v2  ;;  %v721_v7 = vshll.u32 %v6808_v40, 16  ;;  %v6397_v28 = vld [vmem:[%s9169_s1 + $0x168] sm:$0xff]  }
  0x25   : > { %5428 = vmatpush3.bf16.msra.mxu1 %v6378_v35  ;;  %v6794_v35 = vpack.c.bf16 %v233_v13, %v232_v11  ;;  %v6814_v44 = vsel %vm9174_vm3, %v697_v8, %v707_v34  ;;  %vm6846_vm14 = vcmp.ne.s16.totalorder %v4936_v38, 0  ;;  %vm1298_vm15 = vcmp.lt.s32.totalorder %v1234_v55, 16  ;;  %v240_v55 = vld [vmem:[%s6697_s15 + $0x60] sm:$0xff] }
  0x26   : > { %5429 = vmatprep.subr.bf16.mxu1 %v6381_v41  ;;  %v369_v41 = vand.u32 15, %v285_v19  ;;  %vm6842_vm12 = vcmp.ne.s16.totalorder %v4951_v37, 0  ;;  %v287_v10 = vadd.s32 80, %v6612_v12  ;;  %v4937_v13 = vcombine.low %v1057_v63, %v6719_v59  ;;  %v238_v19 = vld [vmem:[%s6697_s15 + $0x50] sm:$0xff]  ;;  %vm1426_vm1 = vmpackc.low %vm1298_vm15, %vm1298_vm15 }
  0x27   : > { %5318 = vmatpush3.bf16.msra.mxu0 %v6380_v39  ;;  %v710_v46 = vshrl.u32 %v6794_v35, 16  ;;  %v713_v48 = vshll.u32 %v6794_v35, 16  ;;  %v376_v14 = vand.u32 15, %v286_v50  ;;  %v1458_v34 = vsel %vm1426_vm1, 65537, %v9189_v2  ;;  %v6399_v50 = vld [vmem:[%s9169_s1 + $0x170] sm:$0xff]  }
  0x28   : > { %5319 = vmatprep.subr.bf16.mxu0 %v6383_v45  ;;  %v1161_v45 = vrot.slane %v705_v27, 1  ;;  %v839_v0 = vadd.s32 4294967295, %v369_v41  ;;  %v239_v27 = vld [vmem:[%s6697_s15 + $0x58] sm:$0xff]  ;;  %v289_v37 = vadd.s32 96, %v6612_v12 }
  0x29   : > { %5430 = vmatpush3.bf16.msra.mxu1 %v6382_v43  ;;  %v1160_v43 = vor.u32 %v1159_v9, %v695_v62  ;;  %v712_v52 = vrot.slane %v710_v46, 7  ;;  %v9396_v62 = vmov 0  ;;  %v1236_v24 = vadd.s32 1, %v376_v14 }
  0x2a   : > { %5431 = vmatprep.subr.bf16.mxu1 %v6385_v49  ;;  %v236_v49 = vld [vmem:[%s6697_s15 + $0x40] sm:$0xff]  ;;  %v9397_v62 = vsel %vm6846_vm14, 4294967295, %v9396_v62  ;;  %vm871_vm0 = vcmp.ge.s32.totalorder %v839_v0, 0  ;;  %v1163_v16 = vor.u32 %v1161_v45, %v702_v17  ;;  %v6920_v41 = vpack.c.bf16 %v239_v27, %v238_v19 }
  0x2b   : > { %5320 = vmatpush3.bf16.msra.mxu0 %v6384_v47  ;;  %v6854_v3 = vsel %vm9175_vm6, %v1160_v43, %v1161_v45  ;;  %v715_v4 = vor.u32 %v713_v48, %v712_v52  ;;  %v6862_v9 = vpack.c.bf16 %v237_v56, %v236_v49  ;;  %vm6891_vm4 = vmpackc.low %vm871_vm0, %vm871_vm0  ;;  %v6398_v43 = vld [vmem:[%s9169_s1 + $0x128] sm:$0xff]   ;;  %vm1300_vm11 = vcmp.lt.s32.totalorder %v1236_v24, 16  ;;  %v6402_v24 = vld [vmem:[%s9169_s1 + $0x180] sm:$0xff]  }
  0x2c   : > { %5529 = vmatprep.subr.bf16.mxu0 %v6387_v53  ;;  %v1456_v53 = vsel %vm6804_vm10, 65537, %v9189_v2  ;;  %vm6904_vm10 = vcmp.ne.s16.totalorder %v4937_v13, 0  ;;  %v1059_v39 = vsel %vm6891_vm4, 65537, %v9189_v2  ;;  %9405 = vst [vmem:[#allocation5_spill] sm:$0xff] %v6920_v41  ;;  %v1167_v49 = vrot.slane %v721_v7, 1  ;;  %vm1428_vm1 = vmpackc.low %vm1300_vm11, %vm1300_vm11 }
  0x2d   : > { %5432 = vmatpush3.bf16.msra.mxu1 %v6386_v51  ;;  %v6393_v51 = vld [vmem:[%s9169_s1 + $0x158] sm:$0xff]   ;;  %v4952_v8 = vcombine.low %v6719_v59, %v1456_v53  ;;  %v6869_v11 = vsel %vm9174_vm3, %v704_v26, %v715_v4  ;;  %v726_v23 = vshrl.u32 %v6862_v9, 16  ;;  %v383_v26 = vand.u32 15, %v287_v10  ;;  %v241_v4 = vld [vmem:[%s6697_s15 + $0x68] sm:$0xff]  ;;  %v6401_v10 = vld [vmem:[%s9169_s1 + $0x1c0] sm:$0xff]  }
  0x2e   : > { %2261 = vmatmul.mubr.bf16.vlgmr.msra.gmra.mrb[0].mxu0 %v9189_v2  ;;  %v729_v47 = vshll.u32 %v6862_v9, 16  ;;  %v734_v56 = vshrl.u32 %v6920_v41, 16  ;;  %v737_v19 = vshll.u32 %v6920_v41, 16  ;;  %5641 = vmatprep.subr.bf16.mxu1 %v6401_v10  ;;  %v291_v17 = vadd.s32 112, %v6612_v12 }
  0x2f   : > { %2268 = vmatprep.mubr.bf16.mxu0 %v6710_v57  ;;  %5530 = vmatpush3.bf16.msra.mxu0 %v6388_v60  ;;  %v6394_v60 = vld [vmem:[%s9169_s1 + $0x118] sm:$0xff]   ;;  %vm6900_vm9 = vcmp.ne.s16.totalorder %v4952_v8, 0  ;;  %v841_v36 = vadd.s32 4294967295, %v383_v26  ;;  %v6927_v45 = vrot.slane %v726_v23, 7  ;;  %v6400_v8 = vld [vmem:[%s9169_s1 + $0x130] sm:$0xff]  }
  0x30   : > { %5531 = vmatprep.subr.bf16.mxu0 %v6389_v6  ;;  %5056 = vmatmul.mubr.msk.bf16.vlgmr.msra.gmra.mrb[0].mxu1 %vm6771_vm5, %v1226_v22  ;;  %v6858_v6 = vrot.slane %v718_v54, 7  ;;  %v6396_v22 = vld [vmem:[%s9169_s1 + $0x120] sm:$0xff]  }
  0x31   : > { %5057 = vmatprep.mubr.msk.bf16.mxu1 %vm6785_vm8, %v6814_v44  ;;  %vm873_vm15 = vcmp.ge.s32.totalorder %v841_v36, 0  ;;  %v731_v63 = vor.u32 %v729_v47, %v6927_v45  ;;  %5642 = vmatpush3.bf16.msra.mxu1 %v6402_v24  ;;  %v6403_v36 = vld [vmem:[%s9169_s1 + $0x1c8] sm:$0xff]  }
  0x32   : > { %v723_v20 = vor.u32 %v721_v7, %v6858_v6  ;;  %vm6944_vm0 = vmpackc.low %vm873_vm15, %vm873_vm15  ;;  %v290_v7 = vadd.s32 104, %v6612_v12  ;;  %5643 = vmatprep.subr.bf16.mxu1 %v6403_v36  ;;  %v1173_v36 = vrot.slane %v737_v19, 1 }
  0x33   : > { %5532 = vmatpush3.bf16.msra.mxu0 %v6390_v18  ;;  %v1164_v18 = vrot.slane %v713_v48, 1  ;;  %v1061_v14 = vsel %vm6944_vm0, 65537, %v9189_v2  ;;  %v6990_v26 = vsel %vm9174_vm3, %v6858_v6, %v731_v63  ;;  %v292_v6 = vadd.s32 120, %v6612_v12 }
  0x34   : > { %5533 = vmatprep.subr.bf16.mxu0 %v6391_v30  ;;  %v9402_v30 = vmov 0  ;;  %v6915_v38 = vsel %vm9174_vm3, %v712_v52, %v723_v20  ;;  %v4938_v52 = vcombine.low %v1059_v39, %v6719_v59  ;;  %v6980_v20 = vrot.slane %v734_v56, 7 }
  0x35   : > { %v9403_v30 = vsel %vm6904_vm10, 4294967295, %v9402_v30  ;;  %v6910_v33 = vsel %vm9175_vm6, %v1163_v16, %v1164_v18  ;;  %v1166_v48 = vor.u32 %v1164_v18, %v710_v46  ;;  %v397_v46 = vand.u32 15, %v289_v37  ;;  %v6404_v37 = vld [vmem:[%s9169_s1 + $0x188] sm:$0xff]  }
  0x36   : > { %5040 = vmatmul.mubr.msk.bf16.gmra.mrb[4].mxu0 %vm6785_vm8, %v830_v31  ;;  %9404 = vst [vmem:[#allocation4_spill] sm:$0xff] %v9403_v30  ;;  %v288_v31 = vadd.s32 88, %v6612_v12  ;;  %vm6972_vm11 = vcmp.ne.s16.totalorder %v4938_v52, 0  ;;  %v9410_v16 = vmov 0  ;;  %v1460_v18 = vsel %vm1428_vm1, 65537, %v9189_v2  ;;  %5644 = vmatpush3.bf16.msra.mxu1 %v6404_v37 }
  0x37   : > { %2276 = vmatprep.mubr.bf16.mxu0 %v6740_v5  ;;  %5534 = vmatpush3.bf16.msra.mxu0 %v6392_v42  ;;  %v843_v0 = vadd.s32 4294967295, %v397_v46  ;;  %v6963_v13 = vsel %vm9175_vm6, %v1166_v48, %v1167_v49  ;;  %v9411_v16 = vsel %vm6972_vm11, 4294967295, %v9410_v16  ;;  %v4939_v27 = vcombine.low %v1061_v14, %v6719_v59  ;;  %v6407_v14 = vld [vmem:[%s9169_s1 + $0x1d8] sm:$0xff]  }
  0x38   : > { %5535 = vmatprep.subr.bf16.mxu0 %v6393_v51  ;;  %5058 = vmatmul.mubr.msk.bf16.gmra.mrb[4].mxu1 %vm6842_vm12, %v6854_v3  ;;  %v390_v42 = vand.u32 15, %v288_v31  ;;  %v4953_v51 = vcombine.low %v6719_v59, %v1458_v34  ;;  %9412 = vst [vmem:[#allocation6_spill] sm:$0xff] %v9411_v16  ;;  %v411_v31 = vand.u32 15, %v291_v17  ;;  %v242_v34 = vld [vmem:[%s6697_s15 + $0x70] sm:$0xff]  ;;  %v1169_v39 = vor.u32 %v1167_v49, %v718_v54 }
  0x39   : > { %5059 = vmatprep.mubr.msk.bf16.mxu1 %vm6846_vm14, %v6869_v11  ;;  %vm875_vm0 = vcmp.ge.s32.totalorder %v843_v0, 0  ;;  %v9414_v52 = vmov 0  ;;  %v739_v54 = vor.u32 %v737_v19, %v6980_v20  ;;  %v293_v46 = vadd.s32 128, %v6612_v12 }
  0x3a   : > { %vm6968_vm4 = vcmp.ne.s16.totalorder %v4953_v51, 0  ;;  %vm1033_vm3 = vmpackc.low %vm875_vm0, %vm875_vm0  ;;  %v6405_v51 = vld [vmem:[%s9169_s1 + $0x1d0] sm:$0xff]   ;;  %v845_v53 = vadd.s32 4294967295, %v411_v31  ;;  %v418_v0 = vand.u32 15, %v292_v6  ;;  %v6409_v31 = vld [vmem:[%s9169_s1 + $0x178] sm:$0xff]   ;;  %v9425_v19 = vmov 0 }
  0x3b   : > { %5536 = vmatpush3.bf16.msra.mxu0 %v6394_v60  ;;  %v1238_v60 = vadd.s32 1, %v390_v42  ;;  %v1170_v42 = vrot.slane %v729_v47, 1  ;;  %5645 = vmatprep.subr.bf16.mxu1 %v6405_v51  ;;  %v425_v24 = vand.u32 15, %v293_v46  ;;  %v245_v51 = vld [vmem:[%s6697_s15 + $0x88] sm:$0xff]  ;;  %v6410_v46 = vld [vmem:[%s9169_s1 + $0x138] sm:$0xff]  }
  0x3c   : > { %5537 = vmatprep.subr.bf16.mxu0 %v6395_v15  ;;  %v9408_v15 = vmov 0  ;;  %v1242_v37 = vadd.s32 1, %v418_v0  ;;  %vm9428_vm7 = vcmp.ge.s32.totalorder %v845_v53, 0  ;;  %v6411_v0 = vld [vmem:[%s9169_s1 + $0x1e0] sm:$0xff]  }
  0x3d   : > { %v9409_v15 = vsel %vm6968_vm4, 4294967295, %v9408_v15  ;;  %vm1302_vm15 = vcmp.lt.s32.totalorder %v1238_v60, 16  ;;  %v1063_v60 = vsel %vm1033_vm3, 65537, %v9189_v2  ;;  %vm9421_vm3 = vsmask.f32 256  ;;  %vm7093_vm13 = vmpackc.low %vm9428_vm7, %vm9428_vm7 }
  0x3e   : > { %5041 = vmatmul.mubr.msk.bf16.gmra.mrb[8].mxu0 %vm6846_vm14, %v6814_v44  ;;  %vm1430_vm1 = vmpackc.low %vm1302_vm15, %vm1302_vm15  ;;  %vm7023_vm15 = vcmp.ne.s16.totalorder %v4939_v27, 0  ;;  %v4940_v27 = vcombine.low %v1063_v60, %v6719_v59  ;;  %vm9434_vm7 = vsmask.f32 7424 }
  0x3f   : > { %2284 = vmatprep.mubr.bf16.mxu0 %v6794_v35  ;;  %5538 = vmatpush3.bf16.msra.mxu0 %v6396_v22  ;;  %v6982_v22 = vpack.c.bf16 %v241_v4, %v240_v55  ;;  %v9415_v52 = vsel %vm7023_vm15, 4294967295, %v9414_v52  ;;  %v1462_v49 = vsel %vm1430_vm1, 65537, %v9189_v2  ;;  %v6406_v55 = vld [vmem:[%s9169_s1 + $0x190] sm:$0xff]   ;;  %v7037_v4 = vsel %vm9175_vm6, %v1169_v39, %v1170_v42  ;;  %v244_v39 = vld [vmem:[%s6697_s15 + $0x80] sm:$0xff] }
  0x40   : > { %5539 = vmatprep.subr.bf16.mxu0 %v6397_v28  ;;  %5060 = vmatmul.mubr.msk.bf16.gmra.mrb[8].mxu1 %vm6900_vm9, %v6910_v33  ;;  %v404_v28 = vand.u32 15, %v290_v7  ;;  %9416 = vst [vmem:[#allocation8_spill] sm:$0xff] %v9415_v52  ;;  %v9418_v7 = vmov 0  ;;  %v4955_v17 = vcombine.low %v6719_v59, %v1462_v49  ;;  %v296_v49 = vadd.s32 152, %v6612_v12 }
  0x41   : > { %5061 = vmatprep.mubr.msk.bf16.mxu1 %vm6904_vm10, %v6915_v38  ;;  %9413 = vst [vmem:[#allocation7_spill] sm:$0xff] %v6982_v22  ;;  %v742_v48 = vshrl.u32 %v6982_v22, 16  ;;  %v745_v10 = vshll.u32 %v6982_v22, 16  ;;  %5646 = vmatpush3.bf16.msra.mxu1 %v6406_v55  ;;  %v9431_v55 = vmov 0 }
  0x42   : > { %v1240_v47 = vadd.s32 1, %v404_v28  ;;  %v294_v28 = vadd.s32 136, %v6612_v12  ;;  %5647 = vmatprep.subr.bf16.mxu1 %v6407_v14  ;;  %vm7086_vm6 = vcmp.ne.s16.totalorder %v4955_v17, 0 }
  0x43   : > { %5540 = vmatpush3.bf16.msra.mxu0 %v6398_v43  ;;  %v4954_v43 = vcombine.low %v6719_v59, %v1460_v18  ;;  %v7053_v18 = vsel %vm9421_vm3, %v6927_v45, %v739_v54  ;;  %v6408_v45 = vld [vmem:[%s9169_s1 + $0x198] sm:$0xff]   ;;  %v9426_v19 = vsel %vm7086_vm6, 4294967295, %v9425_v19 }
  0x44   : > { %5541 = vmatprep.subr.bf16.mxu0 %v6399_v50  ;;  %v243_v50 = vld [vmem:[%s6697_s15 + $0x78] sm:$0xff]  ;;  %9422 = vst [vmem:[#allocation11_spill] sm:$0xff] %v7053_v18  ;;  %vm1304_vm1 = vcmp.lt.s32.totalorder %v1240_v47, 16  ;;  %9427 = vst [vmem:[#allocation12_spill] sm:$0xff] %v9426_v19  ;;  %v847_v47 = vadd.s32 4294967295, %v425_v24  ;;  %v432_v53 = vand.u32 15, %v294_v28 }
  0x45   : > { %v7034_v63 = vpack.c.bf16 %v243_v50, %v242_v34  ;;  %vm7039_vm0 = vcmp.ne.s16.totalorder %v4954_v43, 0  ;;  %v1172_v34 = vor.u32 %v1170_v42, %v726_v23  ;;  %v1176_v43 = vrot.slane %v745_v10, 1  ;;  %vm7080_vm3 = vmpackc.low %vm1304_vm1, %vm1304_vm1  ;;  %5648 = vmatpush3.bf16.msra.mxu1 %v6408_v45  ;;  %v6412_v24 = vld [vmem:[%s9169_s1 + $0x1a0] sm:$0xff]  }
  0x46   : > { %5042 = vmatmul.mubr.msk.bf16.gmra.mrb[12].mxu0 %vm6904_vm10, %v6869_v11  ;;  %v9419_v7 = vsel %vm7039_vm0, 4294967295, %v9418_v7  ;;  %v295_v23 = vadd.s32 144, %v6612_v12  ;;  %vm7101_vm1 = vcmp.ne.s16.totalorder %v4940_v27, 0  ;;  %v1464_v14 = vsel %vm7080_vm3, 65537, %v9189_v2  ;;  %5649 = vmatprep.subr.bf16.mxu1 %v6411_v0 }
  0x47   : > { %2292 = vmatprep.mubr.bf16.mxu0 %v6808_v40  ;;  %5542 = vmatpush3.bf16.msra.mxu0 %v6400_v8  ;;  %9417 = vst [vmem:[#allocation9_spill] sm:$0xff] %v7034_v63  ;;  %9420 = vst [vmem:[#allocation10_spill] sm:$0xff] %v9419_v7  ;;  %v7045_v8 = vrot.slane %v742_v48, 7  ;;  %v9182_v6 = vshrl.u32 %v7034_v63, 16  ;;  %v9432_v55 = vsel %vm7101_vm1, 4294967295, %v9431_v55  ;;  %v753_v60 = vshll.u32 %v7034_v63, 16 }
  0x48   : > { %5062 = vmatmul.mubr.msk.bf16.gmra.mrb[12].mxu1 %vm6968_vm4, %v6963_v13  ;;  %5543 = vmatprep.subr.bf16.mxu0 %v6409_v31  ;;  %9433 = vst [vmem:[#allocation13_spill] sm:$0xff] %v9432_v55  ;;  %v1175_v27 = vor.u32 %v1173_v36, %v734_v56  ;;  %v1065_v28 = vsel %vm7093_vm13, 65537, %v9189_v2  ;;  %v7127_v45 = vpack.c.bf16 %v245_v51, %v244_v39  ;;  %v439_v31 = vand.u32 15, %v295_v23  ;;  %v246_v39 = vld [vmem:[%s6697_s15 + $0x90] sm:$0xff]  ;;  %v6413_v51 = vld [vmem:[%s9169_s1 + $0x1e8] sm:$0xff]  }
  0x49   : > { %5063 = vmatprep.mubr.msk.bf16.mxu1 %vm6972_vm11, %v6990_v26  ;;  %v747_v42 = vor.u32 %v745_v10, %v7045_v8  ;;  %v7110_v10 = vsel %vm9434_vm7, %v1172_v34, %v1173_v36  ;;  %v7117_v17 = vrot.slane %v9182_v6, 7  ;;  %vm9436_vm3 = vsmask.f32 256  ;;  %5650 = vmatpush3.bf16.msra.mxu1 %v6412_v24  ;;  %v6414_v23 = vld [vmem:[%s9169_s1 + $0x1a8] sm:$0xff]  }
  0x4a   : > { %9435 = vst [vmem:[#allocation14_spill] sm:$0xff] %v7127_v45  ;;  %vm879_vm7 = vcmp.ge.s32.totalorder %v847_v47, 0  ;;  %v297_v50 = vadd.s32 160, %v6612_v12  ;;  %v4956_v56 = vcombine.low %v6719_v59, %v1464_v14  ;;  %v1244_v36 = vadd.s32 1, %v432_v53  ;;  %v247_v14 = vld [vmem:[%s6697_s15 + $0x98] sm:$0xff]  ;;  %5651 = vmatprep.subr.bf16.mxu1 %v6413_v51  ;;  %v6415_v47 = vld [vmem:[%s9169_s1 + $0x1f0] sm:$0xff]  }
  0x4b   : > { %5544 = vmatpush3.bf16.msra.mxu0 %v6410_v46  ;;  %v7131_v34 = vsel %vm9436_vm3, %v6980_v20, %v747_v42  ;;  %v4941_v20 = vcombine.low %v1065_v28, %v6719_v59  ;;  %v755_v54 = vor.u32 %v753_v60, %v7117_v17  ;;  %vm7159_vm3 = vmpackc.low %vm879_vm7, %vm879_vm7  ;;  %v849_v53 = vadd.s32 4294967295, %v439_v31 }
  0x4c   : > { %9437 = vst [vmem:[#allocation15_spill] sm:$0xff] %v7131_v34  ;;  %v453_v28 = vand.u32 15, %v297_v50  ;;  %vm7170_vm7 = vcmp.ne.s16.totalorder %v4956_v56, 0  ;;  %v9442_v6 = vmov 0  ;;  %v1178_v31 = vor.u32 %v1176_v43, %v742_v48 }
  0x4d   : > { %v9443_v6 = vsel %vm7170_vm7, 4294967295, %v9442_v6  ;;  %v1179_v46 = vrot.slane %v753_v60, 1  ;;  %5652 = vmatpush3.bf16.msra.mxu1 %v6414_v23  ;;  %v9445_v50 = vmov 0  ;;  %v1067_v56 = vsel %vm7159_vm3, 65537, %v9189_v2  ;;  %v6417_v23 = vld [vmem:[%s9169_s1 + $0x1f8] sm:$0xff]  }
  0x4e   : > { %5043 = vmatmul.mubr.msk.bf16.gmra.mrb[16].mxu0 %vm6972_vm11, %v6915_v38  ;;  %9444 = vst [vmem:[#allocation17_spill] sm:$0xff] %v9443_v6  ;;  %v761_v51 = vshll.u32 %v7127_v45, 16  ;;  %v299_v48 = vadd.s32 176, %v6612_v12  ;;  %5653 = vmatprep.subr.bf16.mxu1 %v6415_v47  ;;  %vm9452_vm3 = vcmp.lt.s32.totalorder %v1244_v36, 16  ;;  %v302_v47 = vadd.s32 200, %v6612_v12 }
  0x4f   : > { %2300 = vmatprep.mubr.bf16.mxu0 %v6862_v9  ;;  %vm7206_vm11 = vmpackc.low %vm9452_vm3, %vm9452_vm3  ;;  %vm9457_vm3 = vcmp.ge.s32.totalorder %v849_v53, 0  ;;  %vm9490_vm10 = vsmask.f32 256 }
  0x50   : > { %5064 = vmatmul.mubr.msk.bf16.gmra.mrb[16].mxu1 %vm7039_vm0, %v7037_v4 }
  0x51   : > { %5065 = vmatprep.mubr.msk.bf16.mxu1 %vm7023_vm15, %v7053_v18 }
  0x56   : > { %5044 = vmatmul.mubr.msk.bf16.gmra.mrb[20].mxu0 %vm7023_vm15, %v6990_v26  ;;  %vm1306_vm15 = vcmp.lt.s32.totalorder %v1242_v37, 16  ;;  %v446_v37 = vand.u32 15, %v296_v49  ;;  %v9451_v49 = vshrl.u32 %v7127_v45, 16 }
  0x57   : > { %2308 = vmatprep.mubr.bf16.mxu0 %v6920_v41  ;;  %vm1434_vm13 = vmpackc.low %vm1306_vm15, %vm1306_vm15  ;;  %vm9438_vm15 = vsmask.f32 7424  ;;  %v257_v41 = vld [vmem:[%s6697_s15 + $0xe8] sm:$0xff] }
  0x58   : > { %5066 = vmatmul.mubr.msk.bf16.gmra.mrb[20].mxu1 %vm7086_vm6, %v7110_v10  ;;  %v7154_v42 = vsel %vm9438_vm15, %v1175_v27, %v1176_v43  ;;  %v1466_v0 = vsel %vm1434_vm13, 65537, %v9189_v2  ;;  %v1246_v24 = vadd.s32 1, %v446_v37  ;;  %v298_v27 = vadd.s32 168, %v6612_v12  ;;  %v6416_v37 = vld [vmem:[%s9169_s1 + $0x1b0] sm:$0xff]  }
  0x59   : > { %5067 = vmatprep.mubr.msk.bf16.mxu1 %vm7101_vm1, %v7131_v34  ;;  %9439 = vst [vmem:[#allocation16_spill] sm:$0xff] %v7154_v42  ;;  %vm7179_vm15 = vcmp.ne.s16.totalorder %v4941_v20, 0  ;;  %vm9448_vm13 = vsmask.f32 256  ;;  %v4957_v60 = vcombine.low %v6719_v59, %v1466_v0  ;;  %v7195_v20 = vpack.c.bf16 %v247_v14, %v246_v39  ;;  %5654 = vmatpush3.bf16.msra.mxu1 %v6416_v37 }
  0x5a   : > { %v9446_v50 = vsel %vm7179_vm15, 4294967295, %v9445_v50  ;;  %v7192_v43 = vsel %vm9448_vm13, %v7045_v8, %v755_v54  ;;  %v7202_v2 = vrot.slane %v9451_v49, 7  ;;  %v851_v8 = vadd.s32 4294967295, %v453_v28  ;;  %vm1039_vm13 = vmpackc.low %vm9457_vm3, %vm9457_vm3  ;;  %5655 = vmatprep.subr.bf16.mxu1 %v6417_v23  ;;  %v7245_v49 = vld [vmem:[%s9169_s1 + $0x200] sm:$0xff]  }
  0x5b   : > { %9447 = vst [vmem:[#allocation18_spill] sm:$0xff] %v9446_v50  ;;  %9449 = vst [vmem:[#allocation19_spill] sm:$0xff] %v7192_v43  ;;  %v460_v54 = vand.u32 15, %v298_v27  ;;  %v467_v39 = vand.u32 15, %v299_v48  ;;  %v300_v0 = vadd.s32 184, %v6612_v12  ;;  %v4942_v14 = vcombine.low %v1067_v56, %v6719_v59  ;;  %v6418_v27 = vld [vmem:[%s9169_s1 + $0x1b8] sm:$0xff]   ;;  %6249 = vmatprep.subr.bf16.mxu0 %v7245_v49 }
  0x5c   : > { %9450 = vst [vmem:[#allocation20_spill] sm:$0xff] %v7195_v20  ;;  %v7222_v28 = vrot.slane %v761_v51, 1  ;;  %v9461_v37 = vmov 0   ;;  %v7240_v48 = vpack.c.bf16 %v249_v1, %v248_v58  ;;  %v9462_v50 = vshrl.u32 %v7034_v63, 16  ;;  %v250_v1 = vld [vmem:[%s6697_s15 + $0xb0] sm:$0xff] }
  0x5d   : > { %v1468_v56 = vsel %vm7206_vm11, 65537, %v9461_v37  ;;  %vm9463_vm3 = vcmp.lt.s32.totalorder %v1246_v24, 16  ;;  %v1248_v58 = vadd.s32 1, %v460_v54  ;;  %v301_v23 = vadd.s32 192, %v6612_v12  ;;  %5656 = vmatpush3.bf16.msra.mxu1 %v6418_v27  ;;  %v252_v27 = vld [vmem:[%s6697_s15 + $0xc0] sm:$0xff] }
  0x5e   : > { %5045 = vmatmul.mubr.msk.bf16.gmra.mrb[24].mxu0 %vm7101_vm1, %v7053_v18  ;;  %vm9455_vm1 = vsmask.f32 7424  ;;  %v1181_v55 = vor.u32 %v1179_v46, %v9462_v50  ;;  %v1069_v53 = vsel %vm1039_vm13, 65537, %v9461_v37  ;;  %vm883_vm11 = vcmp.ge.s32.totalorder %v851_v8, 0 }
  0x5f   : > { %2316 = vmatprep.mubr.bf16.mxu0 %v6982_v22  ;;  %v7218_v36 = vsel %vm9455_vm1, %v1178_v31, %v1179_v46  ;;  %vm7232_vm1 = vcmp.ne.s16.totalorder %v4957_v60, 0  ;;  %v9458_v31 = vmov 0  ;;  %v763_v60 = vor.u32 %v761_v51, %v7202_v2  ;;  %v251_v51 = vld [vmem:[%s6697_s15 + $0xb8] sm:$0xff] }
  0x60   : > { %5068 = vmatmul.mubr.msk.bf16.gmra.mrb[24].mxu1 %vm7170_vm7, %v7154_v42  ;;  %9456 = vst [vmem:[#allocation21_spill] sm:$0xff] %v7218_v36  ;;  %v9459_v31 = vsel %vm7232_vm1, 4294967295, %v9458_v31  ;;  %v853_v52 = vadd.s32 4294967295, %v467_v39  ;;  %vm7260_vm7 = vcmp.ne.s16.totalorder %v4942_v14, 0  ;;  %v9466_v46 = vmov 0 }
  0x61   : > { %5069 = vmatprep.mubr.msk.bf16.mxu1 %vm7179_vm15, %v7192_v43  ;;  %9460 = vst [vmem:[#allocation22_spill] sm:$0xff] %v9459_v31  ;;  %v9467_v46 = vsel %vm7260_vm7, 4294967295, %v9466_v46  ;;  %v4958_v24 = vcombine.low %v6719_v59, %v1468_v56  ;;  %v769_v50 = vshll.u32 %v7195_v20, 16  ;;  %v481_v54 = vand.u32 15, %v301_v23 }
  0x62   : > { %9468 = vst [vmem:[#allocation23_spill] sm:$0xff] %v9467_v46  ;;  %v777_v14 = vshll.u32 %v7240_v48, 16  ;;  %vm9470_vm13 = vsmask.f32 256  ;;  %v4943_v6 = vcombine.low %v1069_v53, %v6719_v59  ;;  %vm1312_vm6 = vcmp.lt.s32.totalorder %v1248_v58, 16 }
  0x63   : > { %v7279_v56 = vsel %vm9470_vm13, %v7117_v17, %v763_v60  ;;  %v7292_v23 = vpack.c.bf16 %v251_v51, %v250_v1  ;;  %v253_v60 = vld [vmem:[%s6697_s15 + $0xc8] sm:$0xff]  ;;  %v303_v53 = vadd.s32 208, %v6612_v12  ;;  %vm7303_vm13 = vcmp.ne.s16.totalorder %v4958_v24, 0  ;;  %v256_v24 = vld [vmem:[%s6697_s15 + $0xe0] sm:$0xff] }
  0x64   : > { %9471 = vst [vmem:[#allocation24_spill] sm:$0xff] %v7279_v56  ;;  %v7308_v1 = vrot.slane %v769_v50, 1  ;;  %v9481_v46 = vmov 0  ;;  %v7335_v58 = vpack.c.bf16 %v253_v60, %v252_v27  ;;  %v7337_v31 = vrot.slane %v777_v14, 1  ;;  %v254_v27 = vld [vmem:[%s6697_s15 + $0xd0] sm:$0xff]  ;;  %v255_v60 = vld [vmem:[%s6697_s15 + $0xd8] sm:$0xff] }
  0x65   : > { %v495_v16 = vand.u32 15, %v303_v53  ;;  %v7406_v42 = vpack.c.bf16 %v257_v41, %v256_v24 }
  0x66   : > { %5046 = vmatmul.mubr.msk.bf16.gmra.mrb[28].mxu0 %vm7179_vm15, %v7131_v34  ;;  %vm7252_vm15 = vmpackc.low %vm9463_vm3, %vm9463_vm3  ;;  %v474_v34 = vand.u32 15, %v300_v0  ;;  %v9476_v0 = vmov 0 }
  0x67   : > { %2324 = vmatprep.mubr.bf16.mxu0 %v7034_v63  ;;  %v9469_v63 = vshrl.u32 %v7195_v20, 16  ;;  %v1470_v39 = vsel %vm7252_vm15, 65537, %v9461_v37  ;;  %vm7284_vm3 = vmpackc.low %vm883_vm11, %vm883_vm11  ;;  %vm9474_vm11 = vsmask.f32 7424  ;;  %v9477_v0 = vsel %vm7303_vm13, 4294967295, %v9476_v0 }
  0x68   : > { %v1250_v17 = vadd.s32 1, %v474_v34  ;;  %5070 = vmatmul.mubr.msk.bf16.gmra.mrb[28].mxu1 %vm7232_vm1, %v7218_v36  ;;  %v7301_v8 = vsel %vm9474_vm11, %v1181_v55, %v7222_v28  ;;  %9478 = vst [vmem:[#allocation26_spill] sm:$0xff] %v9477_v0  ;;  %v855_v34 = vadd.s32 4294967295, %v481_v54  ;;  %v1071_v55 = vsel %vm7284_vm3, 65537, %v9461_v37  ;;  %vm7320_vm11 = vmpackc.low %vm1312_vm6, %vm1312_vm6 }
  0x69   : > { %v7269_v22 = vrot.slane %v9469_v63, 7  ;;  %9475 = vst [vmem:[#allocation25_spill] sm:$0xff] %v7301_v8  ;;  %5071 = vmatprep.mubr.msk.bf16.mxu1 %vm7260_vm7, %v7279_v56  ;;  %v304_v54 = vadd.s32 216, %v6612_v12  ;;  %vm7325_vm15 = vcmp.ne.s16.totalorder %v4943_v6, 0  ;;  %v488_v63 = vand.u32 15, %v302_v47 }
  0x6a   : > { %v9482_v46 = vsel %vm7325_vm15, 4294967295, %v9481_v46  ;;  %vm1314_vm6 = vcmp.lt.s32.totalorder %v1250_v17, 16  ;;  %v9486_v6 = vshrl.u32 %v7127_v45, 16  ;;  %v9487_v47 = vmov 0 }
  0x6b   : > { %v771_v51 = vor.u32 %v769_v50, %v7269_v22  ;;  %9483 = vst [vmem:[#allocation27_spill] sm:$0xff] %v9482_v46  ;;  %v9484_v50 = vshrl.u32 %v7240_v48, 16  ;;  %v1472_v17 = vsel %vm7320_vm11, 65537, %v9461_v37  ;;  %v9499_v36 = vshll.u32 %v7292_v23, 16 }
  0x6c   : > { %v1184_v18 = vor.u32 %v7222_v28, %v9486_v6  ;;  %v502_v28 = vand.u32 15, %v304_v54  ;;  %v305_v6 = vadd.s32 224, %v6612_v12  ;;  %v9494_v54 = vshrl.u32 %v7292_v23, 16 }
  0x6e   : > { %5047 = vmatmul.mubr.msk.bf16.gmra.mrb[32].mxu0 %vm7260_vm7, %v7192_v43  ;;  %v4959_v43 = vcombine.low %v6719_v59, %v1470_v39  ;;  %v7331_v39 = vrot.slane %v9484_v50, 7  ;;  %vm9485_vm7 = vcmp.ge.s32.totalorder %v853_v52, 0  ;;  %v4944_v50 = vcombine.low %v1071_v55, %v6719_v59 }
  0x6f   : > { %2332 = vmatprep.mubr.bf16.mxu0 %v7127_v45  ;;  %vm1043_vm3 = vmpackc.low %vm9485_vm7, %vm9485_vm7  ;;  %v7358_v55 = vsel %vm9490_vm10, %v7202_v2, %v771_v51  ;;  %v1252_v45 = vadd.s32 1, %v488_v63  ;;  %v7373_v19 = vrot.slane %v9494_v54, 7  ;;  %vm9495_vm10 = vcmp.ge.s32.totalorder %v855_v34, 0 }
  0x70   : > { %vm7347_vm1 = vcmp.ne.s16.totalorder %v4959_v43, 0  ;;  %v1073_v53 = vsel %vm1043_vm3, 65537, %v9461_v37  ;;  %9491 = vst [vmem:[#allocation29_spill] sm:$0xff] %v7358_v55  ;;  %v779_v52 = vor.u32 %v777_v14, %v7331_v39  ;;  %vm7361_vm7 = vmpackc.low %vm1314_vm6, %vm1314_vm6  ;;  %v857_v2 = vadd.s32 4294967295, %v495_v16  ;;  %5072 = vmatmul.mubr.msk.bf16.gmra.mrb[32].mxu1 %vm7303_vm13, %v7301_v8 }
  0x71   : > { %v9488_v47 = vsel %vm7347_vm1, 4294967295, %v9487_v47  ;;  %vm1045_vm11 = vmpackc.low %vm9495_vm10, %vm9495_vm10  ;;  %v509_v14 = vand.u32 15, %v305_v6  ;;  %v306_v51 = vadd.s32 232, %v6612_v12  ;;  %vm7382_vm3 = vcmp.ne.s16.totalorder %v4944_v50, 0  ;;  %5073 = vmatprep.mubr.msk.bf16.mxu1 %vm7325_vm15, %v7358_v55 }
  0x72   : > { %9489 = vst [vmem:[#allocation28_spill] sm:$0xff] %v9488_v47  ;;  %v9496_v63 = vmov 0  ;;  %v4960_v54 = vcombine.low %v6719_v59, %v1472_v17  ;;  %v4945_v34 = vcombine.low %v1073_v53, %v6719_v59  ;;  %v7390_v16 = vrot.slane %v9499_v36, 1 }
  0x73   : > { %v9497_v63 = vsel %vm7382_vm3, 4294967295, %v9496_v63  ;;  %v1474_v6 = vsel %vm7361_vm7, 65537, %v9461_v37  ;;  %v7398_v50 = vpack.c.bf16 %v255_v60, %v254_v27  ;;  %v516_v0 = vand.u32 15, %v306_v51 }
  0x74   : > { %9498 = vst [vmem:[#allocation30_spill] sm:$0xff] %v9497_v63  ;;  %v1075_v17 = vsel %vm1045_vm11, 65537, %v9461_v37  ;;  %v9500_v53 = vshrl.u32 %v7335_v58, 16  ;;  %v9249_v36 = vshll.u32 %v7335_v58, 16  ;;  %vm1316_vm6 = vcmp.lt.s32.totalorder %v1252_v45, 16 }
  0x75   : > { %v859_v46 = vadd.s32 4294967295, %v509_v14  ;;  %v307_v43 = vadd.s32 240, %v6612_v12  ;;  %vm9501_vm7 = vsmask.f32 7424  ;;  %v1256_v60 = vadd.s32 1, %v516_v0  ;;  %vm7422_vm10 = vmpackc.low %vm1316_vm6, %vm1316_vm6 }
  0x76   : > { %5048 = vmatmul.mubr.msk.bf16.gmra.mrb[36].mxu0 %vm7325_vm15, %v7279_v56  ;;  %v1254_v56 = vadd.s32 1, %v502_v28  ;;  %v7403_v8 = vrot.slane %v9500_v53, 7  ;;  %v7411_v27 = vsel %vm9501_vm7, %v1184_v18, %v7308_v1  ;;  %v308_v28 = vadd.s32 248, %v6612_v12 }
  0x77   : > { %2340 = vmatprep.mubr.bf16.mxu0 %v7195_v20  ;;  %vm7414_vm11 = vcmp.ne.s16.totalorder %v4960_v54, 0  ;;  %v9502_v51 = vmov 0  ;;  %vm7418_vm15 = vcmp.ne.s16.totalorder %v4945_v34, 0  ;;  %v9505_v45 = vmov 0  ;;  %v258_v54 = vld [vmem:[%s6697_s15 + $0xf0] sm:$0xff] }
  0x78   : > { %v9503_v51 = vsel %vm7414_vm11, 4294967295, %v9502_v51  ;;  %v9506_v45 = vsel %vm7418_vm15, 4294967295, %v9505_v45  ;;  %v523_v18 = vand.u32 15, %v307_v43  ;;  %vm9510_vm13 = vsmask.f32 256  ;;  %v259_v43 = vld [vmem:[%s6697_s15 + $0xf8] sm:$0xff]  ;;  %5074 = vmatmul.mubr.msk.bf16.gmra.mrb[36].mxu1 %vm7347_vm1, %v7411_v27 }
  0x79   : > { %9504 = vst [vmem:[#allocation31_spill] sm:$0xff] %v9503_v51  ;;  %9507 = vst [vmem:[#allocation32_spill] sm:$0xff] %v9506_v45  ;;  %v7429_v12 = vsel %vm9510_vm13, %v7269_v22, %v779_v52  ;;  %v7433_v0 = vrot.slane %v9249_v36, 1  ;;  %v801_v14 = vshll.u32 %v7398_v50, 16  ;;  %v4946_v34 = vcombine.low %v1075_v17, %v6719_v59 }
  0x7a   : > { %9511 = vst [vmem:[#allocation33_spill] sm:$0xff] %v7429_v12  ;;  %vm9512_vm6 = vcmp.ge.s32.totalorder %v857_v2, 0  ;;  %v861_v52 = vadd.s32 4294967295, %v523_v18  ;;  %v1476_v2 = vsel %vm7422_vm10, 65537, %v9461_v37  ;;  %vm9515_vm0 = vcmp.lt.s32.totalorder %v1254_v56, 16  ;;  %5075 = vmatprep.mubr.msk.bf16.mxu1 %vm7382_vm3, %v7429_v12 }
  0x7b   : > { %vm7443_vm7 = vmpackc.low %vm9512_vm6, %vm9512_vm6  ;;  %vm1320_vm13 = vcmp.lt.s32.totalorder %v1256_v60, 16  ;;  %v530_v36 = vand.u32 15, %v308_v28  ;;  %v9516_v18 = vshrl.u32 %v7195_v20, 16  ;;  %v4961_v24 = vcombine.low %v6719_v59, %v1474_v6 }
  0x7c   : > { %vm1446_vm6 = vmpackc.low %vm9515_vm0, %vm9515_vm0  ;;  %v9517_v41 = vshrl.u32 %v7398_v50, 16  ;;  %vm893_vm10 = vcmp.ge.s32.totalorder %v861_v52, 0  ;;  %v9518_v56 = vshll.u32 %v7292_v23, 16  ;;  %v1077_v60 = vsel %vm7443_vm7, 65537, %v9461_v37 }
  0x7d   : > { %v1187_v22 = vor.u32 %v7308_v1, %v9516_v18  ;;  %v1197_v28 = vrot.slane %v801_v14, 1  ;;  %vm9519_vm0 = vcmp.ge.s32.totalorder %v859_v46, 0  ;;  %v1478_v1 = vsel %vm1446_vm6, 65537, %v9461_v37  ;;  %vm1448_vm1 = vmpackc.low %vm1320_vm13, %vm1320_vm13 }
  0x7e   : > { %5049 = vmatmul.mubr.msk.bf16.gmra.mrb[40].mxu0 %vm7382_vm3, %v7358_v55  ;;  %v800_v55 = vrot.slane %v9517_v41, 7  ;;  %v787_v17 = vor.u32 %v9518_v56, %v7373_v19  ;;  %vm1049_vm3 = vmpackc.low %vm9519_vm0, %vm9519_vm0  ;;  %v9520_v6 = vshrl.u32 %v7406_v42, 16  ;;  %v7481_v52 = vpack.c.bf16 %v259_v43, %v258_v54 }
  0x7f   : > { %2348 = vmatprep.mubr.bf16.mxu0 %v7240_v48  ;;  %vm7483_vm14 = vcmp.ne.s16.totalorder %v4946_v34, 0  ;;  %v9522_v41 = vmov 0  ;;  %v9525_v53 = vshll.u32 %v7406_v42, 16  ;;  %vm1051_vm7 = vmpackc.low %vm893_vm10, %vm893_vm10  ;;  %v1258_v46 = vadd.s32 1, %v530_v36 }
  0x80   : > { %v7479_v18 = vrot.slane %v9520_v6, 7  ;;  %9521 = vst [vmem:[#allocation34_spill] sm:$0xff] %v7481_v52  ;;  %v9523_v41 = vsel %vm7483_vm14, 4294967295, %v9522_v41  ;;  %vm9526_vm0 = vsmask.f32 7424  ;;  %vm7495_vm6 = vcmp.ne.s16.totalorder %v4961_v24, 0 }
  0x81   : > { %9524 = vst [vmem:[#allocation35_spill] sm:$0xff] %v9523_v41  ;;  %v7489_v56 = vrot.slane %v9525_v53, 1  ;;  %v7493_v63 = vsel %vm9526_vm0, %v1187_v22, %v7337_v31  ;;  %v9527_v6 = vmov 0  ;;  %vm9530_vm13 = vsmask.f32 256 }
  0x82   : > { %v9528_v6 = vsel %vm7495_vm6, 4294967295, %v9527_v6  ;;  %v7501_v54 = vsel %vm9530_vm13, %v7331_v39, %v787_v17  ;;  %v1079_v34 = vsel %vm1049_vm3, 65537, %v9461_v37  ;;  %v1204_v43 = vshll.u32 %v7481_v52, 16  ;;  %5076 = vmatmul.mubr.msk.bf16.gmra.mrb[40].mxu1 %vm7414_vm11, %v7493_v63 }
  0x83   : > { %9529 = vst [vmem:[#allocation36_spill] sm:$0xff] %v9528_v6  ;;  %v1480_v36 = vsel %vm1448_vm1, 65537, %v9461_v37  ;;  %v1563_v22 = vshrl.u32 %v7481_v52, 16  ;;  %v4947_v39 = vcombine.low %v1077_v60, %v6719_v59  ;;  %v1081_v24 = vsel %vm1051_vm7, 65537, %v9461_v37  ;;  %5077 = vmatprep.mubr.msk.bf16.mxu1 %vm7418_vm15, %v7501_v54  ;;  %vm9538_vm7 = vmmov %vm9526_vm0 }
  0x84   : > { %vm1322_vm3 = vcmp.lt.s32.totalorder %v1258_v46, 16  ;;  %v9531_v17 = vshrl.u32 %v7240_v48, 16  ;;  %v4962_v52 = vcombine.low %v6719_v59, %v1476_v2  ;;  %v9533_v20 = vmov 0 }
  0x85   : > { %vm7526_vm1 = vcmp.ne.s16.totalorder %v4947_v39, 0  ;;  %vm7530_vm10 = vmpackc.low %vm1322_vm3, %vm1322_vm3  ;;  %v803_v39 = vor.u32 %v801_v14, %v800_v55  ;;  %v9551_v60 = vshll.u32 %v7406_v42, 16 }
  0x86   : > { %5050 = vmatmul.mubr.msk.bf16.gmra.mrb[44].mxu0 %vm7418_vm15, %v7429_v12  ;;  %v1190_v53 = vor.u32 %v7337_v31, %v9531_v17  ;;  %v9532_v12 = vshll.u32 %v7335_v58, 16  ;;  %v9534_v20 = vsel %vm7526_vm1, 4294967295, %v9533_v20  ;;  %vm7538_vm0 = vcmp.ne.s16.totalorder %v4962_v52, 0 }
  0x87   : > { %2356 = vmatprep.mubr.bf16.mxu0 %v7292_v23  ;;  %9535 = vst [vmem:[#allocation37_spill] sm:$0xff] %v9534_v20  ;;  %v9539_v31 = vmov 0  ;;  %v9542_v52 = vshrl.u32 %v7292_v23, 16  ;;  %v9543_v17 = vmov 0  ;;  %v1482_v14 = vsel %vm7530_vm10, 65537, %v9461_v37  ;;  %vm9555_vm10 = vmmov %vm9538_vm7 }
  0x88   : > { %v795_v51 = vor.u32 %v9532_v12, %v7403_v8  ;;  %v7536_v46 = vsel %vm9538_vm7, %v1190_v53, %v7390_v16  ;;  %v9540_v31 = vsel %vm7538_vm0, 4294967295, %v9539_v31  ;;  %v4948_v12 = vcombine.low %v1079_v34, %v6719_v59  ;;  %v9609_v45 = vld [vmem:[#allocation35_spill] sm:$0xff] }
  0x89   : > { %9541 = vst [vmem:[#allocation38_spill] sm:$0xff] %v9540_v31  ;;  %v9546_v34 = vmov 0 }
  0x8a   : > { %v7544_v2 = vsel %vm9530_vm13, %v7373_v19, %v795_v51  ;;  %5078 = vmatmul.mubr.msk.bf16.gmra.mrb[44].mxu1 %vm7495_vm6, %v7536_v46  ;;  %v1193_v19 = vor.u32 %v7390_v16, %v9542_v52  ;;  %v4963_v51 = vcombine.low %v6719_v59, %v1478_v1  ;;  %vm7561_vm3 = vcmp.ne.s16.totalorder %v4948_v12, 0 }
  0x8b   : > { %5079 = vmatprep.mubr.msk.bf16.mxu1 %vm7483_vm14, %v7544_v2  ;;  %v9544_v17 = vsel %vm7561_vm3, 4294967295, %v9543_v17  ;;  %v7580_v16 = vrot.slane %v1563_v22, 7  ;;  %v4949_v1 = vcombine.low %v1081_v24, %v6719_v59  ;;  %v4964_v52 = vcombine.low %v6719_v59, %v1480_v36 }
  0x8c   : > { %9545 = vst [vmem:[#allocation39_spill] sm:$0xff] %v9544_v17  ;;  %v7567_v53 = vsel %vm9538_vm7, %v1193_v19, %v7433_v0  ;;  %vm7569_vm13 = vcmp.ne.s16.totalorder %v4963_v51, 0  ;;  %v811_v19 = vor.u32 %v9551_v60, %v7479_v18  ;;  %v9552_v51 = vmov 0 }
  0x8d   : > { %v9547_v34 = vsel %vm7569_vm13, 4294967295, %v9546_v34  ;;  %vm7607_vm7 = vcmp.ne.s16.totalorder %v4964_v52, 0 }
  0x8e   : > { %5051 = vmatmul.mubr.msk.bf16.gmra.mrb[48].mxu0 %vm7483_vm14, %v7501_v54  ;;  %9548 = vst [vmem:[#allocation40_spill] sm:$0xff] %v9547_v34  ;;  %vm9549_vm14 = vsmask.f32 256 }
  0x8f   : > { %2364 = vmatprep.mubr.bf16.mxu0 %v7335_v58  ;;  %v7575_v41 = vsel %vm9549_vm14, %v7403_v8, %v803_v39  ;;  %v9550_v8 = vshrl.u32 %v7335_v58, 16  ;;  %vm7600_vm14 = vcmp.ne.s16.totalorder %v4949_v1, 0  ;;  %v9556_v39 = vmov 0 }
  0x90   : > { %v9553_v51 = vsel %vm7600_vm14, 4294967295, %v9552_v51  ;;  %v9557_v39 = vsel %vm7607_vm7, 4294967295, %v9556_v39 }
  0x91   : > { %v1196_v12 = vor.u32 %v7433_v0, %v9550_v8  ;;  %9554 = vst [vmem:[#allocation41_spill] sm:$0xff] %v9553_v51  ;;  %9558 = vst [vmem:[#allocation42_spill] sm:$0xff] %v9557_v39  ;;  %v9560_v0 = vshrl.u32 %v7398_v50, 16 }
  0x92   : > { %5080 = vmatmul.mubr.msk.bf16.gmra.mrb[48].mxu1 %vm7538_vm0, %v7567_v53 }
  0x93   : > { %5081 = vmatprep.mubr.msk.bf16.mxu1 %vm7526_vm1, %v7575_v41  ;;  %v7605_v24 = vsel %vm9555_vm10, %v1196_v12, %v1197_v28  ;;  %v1199_v36 = vor.u32 %v1197_v28, %v9560_v0  ;;  %v1206_v12 = vrot.slane %v1204_v43, 1  ;;  %v4965_v28 = vcombine.low %v6719_v59, %v1482_v14  ;;  %v6420_v59 = vld [vmem:[%s9169_s1 + $0x208] sm:$0xff]   ;;  %v9576_v14 = vld [vmem:[#allocation6_spill] sm:$0xff]  ;;  %v9579_v0 = vld [vmem:[#allocation17_spill] sm:$0xff] }
  0x95   : > { %v7651_v60 = vor.u32 %v1563_v22, %v1206_v12  ;;  %v9575_v22 = vld [vmem:[#allocation11_spill] sm:$0xff] }
  0x96   : > { %5052 = vmatmul.mubr.msk.bf16.gmra.mrb[52].mxu0 %vm7526_vm1, %v7544_v2  ;;  %vm9559_vm1 = vsmask.f32 256 }
  0x97   : > { %2372 = vmatprep.mubr.bf16.mxu0 %v7398_v50  ;;  %v7612_v37 = vsel %vm9559_vm1, %v800_v55, %v811_v19  ;;  %v1566_v55 = vor.u32 %v7580_v16, %v1204_v43  ;;  %vm9561_vm1 = vmmov %vm9555_vm10  ;;  %vm9562_vm10 = vsmask.f32 256  ;;  %v9564_v43 = vmov 0  ;;  %v9578_v19 = vld [vmem:[#allocation21_spill] sm:$0xff] }
  0x98   : > { %v7629_v1 = vsel %vm9561_vm1, %v1199_v36, %v7489_v56  ;;  %vm7653_vm1 = vcmp.ne.s16.totalorder %v4965_v28, 0  ;;  %v9583_v36 = vld [vmem:[#allocation8_spill] sm:$0xff]  ;;  %v9588_v28 = vld [vmem:[#allocation9_spill] sm:$0xff] }
  0x99   : > { %v7633_v8 = vsel %vm9562_vm10, %v7479_v18, %v1566_v55  ;;  %v9563_v18 = vshrl.u32 %v7406_v42, 16  ;;  %v9565_v43 = vsel %vm7653_vm1, 4294967295, %v9564_v43  ;;  %vm9567_vm10 = vsmask.f32 7424  ;;  %v9585_v55 = vld [vmem:[#allocation25_spill] sm:$0xff] }
  0x9a   : > { %5082 = vmatmul.mubr.msk.bf16.gmra.mrb[52].mxu1 %vm7569_vm13, %v7605_v24  ;;  %9566 = vst [vmem:[#allocation43_spill] sm:$0xff] %v9565_v43 }
  0x9b   : > { %5083 = vmatprep.mubr.msk.bf16.mxu1 %vm7561_vm3, %v7612_v37  ;;  %v1202_v52 = vor.u32 %v7489_v56, %v9563_v18  ;;  %v6421_v56 = vld [vmem:[%s9169_s1 + $0x210] sm:$0xff]   ;;  %v9589_v18 = vld [vmem:[#allocation19_spill] sm:$0xff] }
  0x9e   : > { %5053 = vmatmul.mubr.msk.bf16.gmra.mrb[56].mxu0 %vm7561_vm3, %v7575_v41 }
  0x9f   : > { %2380 = vmatprep.mubr.bf16.mxu0 %v7406_v42 }
  0xa2   : > { %5084 = vmatmul.mubr.msk.bf16.gmra.mrb[56].mxu1 %vm7607_vm7, %v7629_v1 }
  0xa3   : > { %5085 = vmatprep.mubr.msk.bf16.mxu1 %vm7600_vm14, %v7633_v8 }
  0xa6   : > { %5054 = vmatmul.mubr.msk.bf16.gmra.mrb[60].mxu0 %vm7600_vm14, %v7612_v37 }
  0xa7   : > { %5087 = vmatprep.mubr.msk.bf16.mxu0 %vm6771_vm5, %v6854_v3  ;;  %v7661_v3 = vsel %vm9567_vm10, %v1202_v52, %v1206_v12  ;;  %vm9568_vm10 = vnez %v9397_v62  ;;  %v9586_v12 = vld [vmem:[#allocation22_spill] sm:$0xff]  ;;  %v9590_v52 = vld [vmem:[#allocation13_spill] sm:$0xff] }
  0xaa   : > { %5086 = vmatmul.mubr.msk.bf16.gmra.mrb[60].mxu1 %vm7653_vm1, %v7661_v3 }
  0xab   : > { %2743 = vmatprep.mubr.bf16.mxu1 %v6740_v5 }
  0xae   : > { %2583 = vmatmul.mubr.bf16.vlgmr.msra.gmra.mrb[64].mxu0 %v6710_v57  ;;  %v6422_v57 = vld [vmem:[%s9169_s1 + $0x218] sm:$0xff]  }
  0xaf   : > { %6250 = vmatpush3.bf16.msra.mxu0 %v7245_v49  ;;  %5088 = vmatprep.mubr.msk.bf16.mxu0 %vm6842_vm12, %v6910_v33  ;;  %v6423_v49 = vld [vmem:[%s9169_s1 + $0x220] sm:$0xff]  }
  0xb0   : > { %6251 = vmatprep.subr.bf16.mxu0 %v6420_v59 }
  0xb2   : > { %5103 = vmatmul.mubr.msk.bf16.vlgmr.msra.gmra.mrb[64].mxu1 %vm6761_vm2, %v6814_v44  ;;  %v6425_v44 = vld [vmem:[%s9169_s1 + $0x230] sm:$0xff]   ;;  %vm9569_vm2 = vnez %v9419_v7 }
  0xb3   : > { %6252 = vmatpush3.bf16.msra.mxu0 %v6420_v59  ;;  %2751 = vmatprep.mubr.bf16.mxu1 %v6794_v35  ;;  %v9592_v59 = vld [vmem:[#allocation26_spill] sm:$0xff] }
  0xb4   : > { %6253 = vmatprep.subr.bf16.mxu0 %v6421_v56 }
  0xb6   : > { %2591 = vmatmul.mubr.bf16.gmra.mrb[68].mxu0 %v6740_v5  ;;  %v6424_v5 = vld [vmem:[%s9169_s1 + $0x228] sm:$0xff]  }
  0xb7   : > { %5089 = vmatprep.mubr.msk.bf16.mxu0 %vm6900_vm9, %v6963_v13  ;;  %6254 = vmatpush3.bf16.msra.mxu0 %v6421_v56  ;;  %v9594_v56 = vld [vmem:[#allocation14_spill] sm:$0xff] }
  0xb8   : > { %6255 = vmatprep.subr.bf16.mxu0 %v6422_v57 }
  0xba   : > { %5104 = vmatmul.mubr.msk.bf16.gmra.mrb[68].mxu1 %vm6785_vm8, %v6869_v11  ;;  %vm9570_vm8 = vnez %v9403_v30  ;;  %v9572_v11 = vld [vmem:[#allocation12_spill] sm:$0xff] }
  0xbb   : > { %6256 = vmatpush3.bf16.msra.mxu0 %v6422_v57  ;;  %2759 = vmatprep.mubr.bf16.mxu1 %v6808_v40  ;;  %v9595_v57 = vld [vmem:[#allocation24_spill] sm:$0xff] }
  0xbc   : > { %6257 = vmatprep.subr.bf16.mxu0 %v6423_v49 }
  0xbe   : > { %2599 = vmatmul.mubr.bf16.gmra.mrb[72].mxu0 %v6794_v35  ;;  %v6426_v35 = vld [vmem:[%s9169_s1 + $0x238] sm:$0xff]  }
  0xbf   : > { %5090 = vmatprep.mubr.msk.bf16.mxu0 %vm6968_vm4, %v7037_v4  ;;  %6258 = vmatpush3.bf16.msra.mxu0 %v6423_v49  ;;  %vm9573_vm4 = vnez %v9572_v11  ;;  %v9596_v49 = vld [vmem:[#allocation18_spill] sm:$0xff] }
  0xc0   : > { %6259 = vmatprep.subr.bf16.mxu0 %v6424_v5 }
  0xc2   : > { %5105 = vmatmul.mubr.msk.bf16.gmra.mrb[72].mxu1 %vm9568_vm10, %v6915_v38  ;;  %v9574_v38 = vld [vmem:[#allocation5_spill] sm:$0xff]  ;;  %vm9577_vm10 = vnez %v9576_v14 }
  0xc3   : > { %6260 = vmatpush3.bf16.msra.mxu0 %v6424_v5  ;;  %2767 = vmatprep.mubr.bf16.mxu1 %v6862_v9  ;;  %v9599_v5 = vld [vmem:[#allocation20_spill] sm:$0xff] }
  0xc4   : > { %6261 = vmatprep.subr.bf16.mxu0 %v6425_v44 }
  0xc6   : > { %2607 = vmatmul.mubr.bf16.gmra.mrb[76].mxu0 %v6808_v40  ;;  %v9571_v40 = vld [vmem:[#allocation16_spill] sm:$0xff] }
  0xc7   : > { %5091 = vmatprep.mubr.msk.bf16.mxu0 %vm9569_vm2, %v7110_v10  ;;  %6262 = vmatpush3.bf16.msra.mxu0 %v6425_v44  ;;  %vm9580_vm2 = vnez %v9579_v0  ;;  %v9600_v44 = vld [vmem:[#allocation29_spill] sm:$0xff] }
  0xc8   : > { %6263 = vmatprep.subr.bf16.mxu0 %v6426_v35 }
  0xca   : > { %5106 = vmatmul.mubr.msk.bf16.gmra.mrb[76].mxu1 %vm9570_vm8, %v6990_v26  ;;  %v9582_v26 = vld [vmem:[#allocation15_spill] sm:$0xff]  ;;  %vm9584_vm8 = vnez %v9583_v36 }
  0xcb   : > { %6264 = vmatpush3.bf16.msra.mxu0 %v6426_v35  ;;  %2775 = vmatprep.mubr.bf16.mxu1 %v9574_v38  ;;  %v9601_v35 = vld [vmem:[#allocation23_spill] sm:$0xff] }
  0xce   : > { %2615 = vmatmul.mubr.bf16.gmra.mrb[80].mxu0 %v6862_v9  ;;  %v9581_v9 = vld [vmem:[#allocation7_spill] sm:$0xff] }
  0xcf   : > { %5092 = vmatprep.mubr.msk.bf16.mxu0 %vm9573_vm4, %v9571_v40  ;;  %vm9587_vm4 = vnez %v9586_v12 }
  0xd2   : > { %5107 = vmatmul.mubr.msk.bf16.gmra.mrb[80].mxu1 %vm9577_vm10, %v9575_v22  ;;  %vm9591_vm10 = vnez %v9590_v52  ;;  %v9604_v22 = vld [vmem:[#allocation33_spill] sm:$0xff] }
  0xd3   : > { %2783 = vmatprep.mubr.bf16.mxu1 %v9581_v9 }
  0xd6   : > { %2623 = vmatmul.mubr.bf16.gmra.mrb[84].mxu0 %v9574_v38 }
  0xd7   : > { %5093 = vmatprep.mubr.msk.bf16.mxu0 %vm9580_vm2, %v9578_v19  ;;  %vm9593_vm2 = vnez %v9592_v59 }
  0xda   : > { %5108 = vmatmul.mubr.msk.bf16.gmra.mrb[84].mxu1 %vm9584_vm8, %v9582_v26  ;;  %vm9597_vm8 = vnez %v9596_v49 }
  0xdb   : > { %2791 = vmatprep.mubr.bf16.mxu1 %v9588_v28 }
  0xde   : > { %2631 = vmatmul.mubr.bf16.gmra.mrb[88].mxu0 %v9581_v9  ;;  %v9605_v9 = vld [vmem:[#allocation27_spill] sm:$0xff] }
  0xdf   : > { %5094 = vmatprep.mubr.msk.bf16.mxu0 %vm9587_vm4, %v9585_v55  ;;  %vm9598_vm4 = vnez %v9488_v47 }
  0xe2   : > { %5109 = vmatmul.mubr.msk.bf16.gmra.mrb[88].mxu1 %vm9591_vm10, %v9589_v18  ;;  %vm9602_vm10 = vnez %v9601_v35 }
  0xe3   : > { %2799 = vmatprep.mubr.bf16.mxu1 %v9594_v56 }
  0xe6   : > { %2639 = vmatmul.mubr.bf16.gmra.mrb[92].mxu0 %v9588_v28 }
  0xe7   : > { %5095 = vmatprep.mubr.msk.bf16.mxu0 %vm9593_vm2, %v7411_v27 }
  0xea   : > { %5110 = vmatmul.mubr.msk.bf16.gmra.mrb[92].mxu1 %vm9597_vm8, %v9595_v57  ;;  %vm9606_vm8 = vnez %v9605_v9 }
  0xeb   : > { %2807 = vmatprep.mubr.bf16.mxu1 %v9599_v5 }
  0xee   : > { %2647 = vmatmul.mubr.bf16.gmra.mrb[96].mxu0 %v9594_v56 }
  0xef   : > { %5096 = vmatprep.mubr.msk.bf16.mxu0 %vm9598_vm4, %v7493_v63 }
  0xf2   : > { %5111 = vmatmul.mubr.msk.bf16.gmra.mrb[96].mxu1 %vm9602_vm10, %v9600_v44  ;;  %v7777_v44 = vld [vmem:[%s9170_s2] ss:$0 sm:$0xff] }
  0xf3   : > { %2815 = vmatprep.mubr.bf16.mxu1 %v7240_v48 }
  0xf6   : > { %2655 = vmatmul.mubr.bf16.gmra.mrb[100].mxu0 %v9599_v5 }
  0xf7   : > { %5097 = vmatprep.mubr.msk.bf16.mxu0 %vm7414_vm11, %v7536_v46 }
  0xfa   : > { %5112 = vmatmul.mubr.msk.bf16.gmra.mrb[100].mxu1 %vm9606_vm8, %v9604_v22  ;;  %vm9621_vm8 = vnez %v9579_v0 }
  0xfb   : > { %2823 = vmatprep.mubr.bf16.mxu1 %v7292_v23 }
  0xfe   : > { %2663 = vmatmul.mubr.bf16.gmra.mrb[104].mxu0 %v7240_v48  ;;  %v9607_v48 = vld [vmem:[#allocation30_spill] sm:$0xff] }
  0xff   : > { %5098 = vmatprep.mubr.msk.bf16.mxu0 %vm7495_vm6, %v7567_v53  ;;  %vm9608_vm10 = vnez %v9607_v48 }
 0x101   : > { %v5321_v26 = vpop.f32.mrb[0].mxu0 }
 0x102   : > { %v5322_v28 = vpop.f32.mrb[1].mxu0  ;;  %5113 = vmatmul.mubr.msk.bf16.gmra.mrb[104].mxu1 %vm9608_vm10, %v7501_v54  ;;  %vm9613_vm10 = vnez %v9534_v20  ;;  %v6441_v20 = vld [vmem:[%s9171_s3 + $0xc0] sm:$0xff]  }
 0x103   : > { %v5323_v18 = vadd.f32 %v5322_v28, %v5321_v26  ;;  %v5324_v56 = vpop.f32.mrb[2].mxu0  ;;  %2831 = vmatprep.mubr.bf16.mxu1 %v7335_v58  ;;  %v5433_v28 = vpop.f32.mrb[0].mxu1  ;;  %5889 = vmatprep.subr.bf16.mxu0 %v6441_v20 }
 0x104   : > { %v5325_v57 = vpop.f32.mrb[3].mxu0 }
 0x105   : > { %v5326_v5 = vadd.f32 %v5325_v57, %v5324_v56  ;;  %v2263_v26 = vadd.f32 %v5323_v18, %v7777_v44  ;;  %v5434_v56 = vpop.f32.mrb[1].mxu1  ;;  %v6427_v18 = vld [vmem:[%s9171_s3 + $0x40] sm:$0xff]  }
 0x106   : > { %2671 = vmatmul.mubr.bf16.gmra.mrb[108].mxu0 %v7292_v23  ;;  %v5435_v9 = vadd.f32 %v5434_v56, %v5433_v28  ;;  %v5436_v35 = vpop.f32.mrb[2].mxu1  ;;  %5777 = vmatprep.subr.bf16.mxu1 %v6427_v18 }
 0x107   : > { %5099 = vmatprep.mubr.msk.bf16.mxu0 %vm7538_vm0, %v7605_v24  ;;  %v2266_v54 = vadd.f32 %v5326_v5, %v7777_v44  ;;  %v5437_v52 = vpop.f32.mrb[3].mxu1  ;;  %v6428_v5 = vld [vmem:[%s9171_s3] sm:$0xff]  }
 0x108   : > { %v5438_v14 = vadd.f32 %v5437_v52, %v5436_v35  ;;  %v7786_v30 = vadd.f32 %v5435_v9, %v2263_v26  ;;  %5778 = vmatpush3.bf16.msra.mxu1 %v6428_v5 }
 0x109   : > { %v5327_v22 = vpop.f32.mrb[4].mxu0 }
 0x10a   : > { %v5328_v23 = vpop.f32.mrb[5].mxu0  ;;  %5114 = vmatmul.mubr.msk.bf16.gmra.mrb[108].mxu1 %vm7418_vm15, %v7544_v2  ;;  %vm9610_vm15 = vnez %v9609_v45 }
 0x10b   : > { %v5329_v57 = vadd.f32 %v5328_v23, %v5327_v22  ;;  %v5330_v48 = vpop.f32.mrb[6].mxu0  ;;  %2839 = vmatprep.mubr.bf16.mxu1 %v7398_v50  ;;  %v5439_v35 = vpop.f32.mrb[4].mxu1 }
 0x10c   : > { %v5331_v49 = vpop.f32.mrb[7].mxu0 }
 0x10d   : > { %v5332_v36 = vadd.f32 %v5331_v49, %v5330_v48  ;;  %v7798_v49 = vadd.f32 %v5438_v14, %v2266_v54  ;;  %v2271_v52 = vadd.f32 %v5329_v57, %v7777_v44  ;;  %v5440_v48 = vpop.f32.mrb[5].mxu1 }
 0x10e   : > { %2679 = vmatmul.mubr.bf16.gmra.mrb[112].mxu0 %v7335_v58  ;;  %v5441_v28 = vadd.f32 %v5440_v48, %v5439_v35  ;;  %v5442_v23 = vpop.f32.mrb[6].mxu1 }
 0x10f   : > { %5100 = vmatprep.mubr.msk.bf16.mxu0 %vm7569_vm13, %v7629_v1  ;;  %v2274_v26 = vadd.f32 %v5332_v36, %v7777_v44  ;;  %v5443_v14 = vpop.f32.mrb[7].mxu1 }
 0x110   : > { %v5444_v18 = vadd.f32 %v5443_v14, %v5442_v23  ;;  %v7806_v57 = vadd.f32 %v5441_v28, %v2271_v52 }
 0x111   : > { %v5333_v58 = vpop.f32.mrb[8].mxu0 }
 0x112   : > { %v5334_v9 = vpop.f32.mrb[9].mxu0  ;;  %5115 = vmatmul.mubr.msk.bf16.gmra.mrb[112].mxu1 %vm9610_vm15, %v7575_v41  ;;  %v7815_v36 = vadd.f32 %v5444_v18, %v2274_v26 }
 0x113   : > { %v5335_v2 = vadd.f32 %v5334_v9, %v5333_v58  ;;  %v5336_v22 = vpop.f32.mrb[10].mxu0  ;;  %2847 = vmatprep.mubr.bf16.mxu1 %v7406_v42  ;;  %v5445_v9 = vpop.f32.mrb[8].mxu1 }
 0x114   : > { %v5337_v56 = vpop.f32.mrb[11].mxu0 }
 0x115   : > { %v5338_v54 = vadd.f32 %v5337_v56, %v5336_v22  ;;  %v2279_v35 = vadd.f32 %v5335_v2, %v7777_v44  ;;  %v9611_v56 = vld [vmem:[#allocation3_spill] sm:$0xff] }
 0x116   : > { %2687 = vmatmul.mubr.bf16.gmra.mrb[116].mxu0 %v7398_v50  ;;  %v5446_v50 = vpop.f32.mrb[9].mxu1  ;;  %vm9612_vm15 = vnez %v9611_v56 }
 0x117   : > { %5101 = vmatprep.mubr.msk.bf16.mxu0 %vm7607_vm7, %v7661_v3  ;;  %v2282_v22 = vadd.f32 %v5338_v54, %v7777_v44  ;;  %v5447_v28 = vadd.f32 %v5446_v50, %v5445_v9  ;;  %v5448_v41 = vpop.f32.mrb[10].mxu1  ;;  %v7822_v14 = vsel %vm9612_vm15, %v7651_v60, 0  ;;  %v9614_v60 = vld [vmem:[#allocation34_spill] sm:$0xff]  ;;  %v6430_v50 = vld [vmem:[%s9171_s3 + $0x8] sm:$0xff]  }
 0x118   : > { %v5449_v26 = vpop.f32.mrb[11].mxu1 }
 0x119   : > { %v5339_v58 = vpop.f32.mrb[12].mxu0  ;;  %v5450_v45 = vadd.f32 %v5449_v26, %v5448_v41  ;;  %v7825_v2 = vadd.f32 %v5447_v28, %v2279_v35 }
 0x11a   : > { %v5340_v5 = vpop.f32.mrb[13].mxu0  ;;  %5116 = vmatmul.mubr.msk.bf16.gmra.mrb[116].mxu1 %vm9613_vm10, %v7612_v37  ;;  %vm9620_vm10 = vnez %v9572_v11 }
 0x11b   : > { %v5341_v52 = vadd.f32 %v5340_v5, %v5339_v58  ;;  %v5342_v48 = vpop.f32.mrb[14].mxu0  ;;  %v6429_v58 = vld [vmem:[%s9171_s3 + $0x48] sm:$0xff]   ;;  %2855 = vmatprep.mubr.bf16.mxu1 %v9614_v60  ;;  %v7837_v54 = vadd.f32 %v5450_v45, %v2282_v22  ;;  %v5451_v9 = vpop.f32.mrb[12].mxu1 }
 0x11c   : > { %v5343_v23 = vpop.f32.mrb[15].mxu0  ;;  %5779 = vmatprep.subr.bf16.mxu1 %v6429_v58 }
 0x11d   : > { %v5344_v18 = vadd.f32 %v5343_v23, %v5342_v48  ;;  %v2287_v35 = vadd.f32 %v5341_v52, %v7777_v44  ;;  %v5452_v48 = vpop.f32.mrb[13].mxu1  ;;  %5780 = vmatpush3.bf16.msra.mxu1 %v6430_v50 }
 0x11e   : > { %2695 = vmatmul.mubr.bf16.gmra.mrb[120].mxu0 %v7406_v42  ;;  %v5453_v23 = vadd.f32 %v5452_v48, %v5451_v9  ;;  %v5454_v26 = vpop.f32.mrb[14].mxu1 }
 0x11f   : > { %5102 = vmatprep.mubr.msk.bf16.mxu0 %vm7653_vm1, %v7822_v14  ;;  %v2290_v41 = vadd.f32 %v5344_v18, %v7777_v44  ;;  %v5455_v45 = vpop.f32.mrb[15].mxu1  ;;  %v9615_v18 = vmov 0  }
 0x120   : > { %v5456_v58 = vadd.f32 %v5455_v45, %v5454_v26  ;;  %v7845_v52 = vadd.f32 %v5453_v23, %v2287_v35  ;;  %v9616_v26 = vld [vmem:[#allocation2_spill] sm:$0xff] }
 0x121   : > { %v5345_v42 = vpop.f32.mrb[16].mxu0  ;;  %vm9617_vm1 = vnez %v9616_v26  ;;  %v9651_v26 = vld [vmem:[#allocation18_spill] sm:$0xff] }
 0x122   : > { %v5346_v5 = vpop.f32.mrb[17].mxu0  ;;  %5117 = vmatmul.mubr.msk.bf16.gmra.mrb[120].mxu1 %vm7561_vm3, %v7633_v8  ;;  %vm9619_vm3 = vnez %v9419_v7 }
 0x123   : > { %v5347_v37 = vadd.f32 %v5346_v5, %v5345_v42  ;;  %v5348_v28 = vpop.f32.mrb[18].mxu0  ;;  %2863 = vmatprep.mubr.bf16.mxu1 %v9615_v18  ;;  %v7854_v42 = vadd.f32 %v5456_v58, %v2290_v41  ;;  %v5457_v5 = vpop.f32.mrb[16].mxu1 }
 0x124   : > { %v5349_v43 = vpop.f32.mrb[19].mxu0 }
 0x125   : > { %v5350_v22 = vadd.f32 %v5349_v43, %v5348_v28  ;;  %v2295_v43 = vadd.f32 %v5347_v37, %v7777_v44 }
 0x126   : > { %2703 = vmatmul.mubr.bf16.gmra.mrb[124].mxu0 %v9614_v60  ;;  %v5458_v60 = vpop.f32.mrb[17].mxu1 }
 0x127   : > { %6265 = vmatprep.mubr.msk.bf16.mxu0 %vm6771_vm5, %v6910_v33  ;;  %v2298_v28 = vadd.f32 %v5350_v22, %v7777_v44  ;;  %v5459_v23 = vadd.f32 %v5458_v60, %v5457_v5  ;;  %v5460_v8 = vpop.f32.mrb[18].mxu1  ;;  %v1613_v33 = vsel %vm9617_vm1, %v7580_v16, 0  ;;  %v6431_v22 = vld [vmem:[%s9171_s3 + $0x50] sm:$0xff]  }
 0x128   : > { %v5461_v17 = vpop.f32.mrb[19].mxu1  ;;  %5781 = vmatprep.subr.bf16.mxu1 %v6431_v22  ;;  %v6432_v5 = vld [vmem:[%s9171_s3 + $0x10] sm:$0xff]  }
 0x129   : > { %v5351_v9 = vpop.f32.mrb[20].mxu0  ;;  %v5462_v58 = vadd.f32 %v5461_v17, %v5460_v8  ;;  %v7864_v37 = vadd.f32 %v5459_v23, %v2295_v43  ;;  %5782 = vmatpush3.bf16.msra.mxu1 %v6432_v5 }
 0x12a   : > { %v5352_v50 = vpop.f32.mrb[21].mxu0  ;;  %5118 = vmatmul.mubr.msk.bf16.gmra.mrb[124].mxu1 %vm7600_vm14, %v1613_v33  ;;  %vm9618_vm14 = vnez %v9409_v15 }
 0x12b   : > { %v5353_v35 = vadd.f32 %v5352_v50, %v5351_v9  ;;  %v5354_v48 = vpop.f32.mrb[22].mxu0  ;;  %v7874_v16 = vadd.f32 %v5462_v58, %v2298_v28  ;;  %4002 = vmatprep.mubr.bf16.mxu1 %v9615_v18  ;;  %v5463_v9 = vpop.f32.mrb[20].mxu1 }
 0x12c   : > { %v5355_v45 = vpop.f32.mrb[23].mxu0  ;;  %v5464_v50 = vpop.f32.mrb[21].mxu1 }
 0x12d   : > { %v5356_v41 = vadd.f32 %v5355_v45, %v5354_v48  ;;  %v5466_v28 = vpop.f32.mrb[22].mxu1 }
 0x12e   : > { %6266 = vmatmul.mubr.msk.bf16.vlgmr.msra.gmra.mrb[128].mxu0 %vm6842_vm12, %v6963_v13  ;;  %v2303_v13 = vadd.f32 %v5353_v35, %v7777_v44  ;;  %v5467_v33 = vpop.f32.mrb[23].mxu1 }
 0x12f   : > { %6269 = vmatprep.mubr.msk.bf16.mxu0 %vm6900_vm9, %v7037_v4  ;;  %v2306_v23 = vadd.f32 %v5356_v41, %v7777_v44  ;;  %v5465_v4 = vadd.f32 %v5464_v50, %v5463_v9  ;;  %v5468_v58 = vadd.f32 %v5467_v33, %v5466_v28 }
 0x131   : > { %v5357_v17 = vpop.f32.mrb[24].mxu0  ;;  %v7885_v35 = vadd.f32 %v5465_v4, %v2303_v13  ;;  %v7890_v22 = vadd.f32 %v5468_v58, %v2306_v23 }
 0x132   : > { %v5358_v43 = vpop.f32.mrb[25].mxu0 }
 0x133   : > { %v5359_v60 = vadd.f32 %v5358_v43, %v5357_v17  ;;  %v5360_v48 = vpop.f32.mrb[26].mxu0  ;;  %v5469_v9 = vpop.f32.mrb[24].mxu1 }
 0x134   : > { %v5361_v8 = vpop.f32.mrb[27].mxu0  ;;  %v5470_v5 = vpop.f32.mrb[25].mxu1 }
 0x135   : > { %v5362_v45 = vadd.f32 %v5361_v8, %v5360_v48  ;;  %v2311_v17 = vadd.f32 %v5359_v60, %v7777_v44  ;;  %v5471_v8 = vadd.f32 %v5470_v5, %v5469_v9  ;;  %v6433_v60 = vld [vmem:[%s9171_s3 + $0x58] sm:$0xff]  }
 0x136   : > { %6270 = vmatmul.mubr.msk.bf16.gmra.mrb[132].mxu0 %vm9618_vm14, %v7110_v10  ;;  %v5472_v10 = vpop.f32.mrb[26].mxu1  ;;  %5783 = vmatprep.subr.bf16.mxu1 %v6433_v60 }
 0x137   : > { %6273 = vmatprep.mubr.msk.bf16.mxu0 %vm9619_vm3, %v9571_v40  ;;  %v2314_v28 = vadd.f32 %v5362_v45, %v7777_v44  ;;  %v5473_v4 = vpop.f32.mrb[27].mxu1  ;;  %v7897_v40 = vadd.f32 %v5471_v8, %v2311_v17 }
 0x138   : > { %v5474_v51 = vadd.f32 %v5473_v4, %v5472_v10 }
 0x139   : > { %v5363_v41 = vpop.f32.mrb[28].mxu0 }
 0x13a   : > { %v5364_v43 = vpop.f32.mrb[29].mxu0  ;;  %v7905_v23 = vadd.f32 %v5474_v51, %v2314_v28 }
 0x13b   : > { %v5365_v50 = vadd.f32 %v5364_v43, %v5363_v41  ;;  %v5366_v48 = vpop.f32.mrb[30].mxu0  ;;  %v5475_v41 = vpop.f32.mrb[28].mxu1 }
 0x13c   : > { %v5367_v13 = vpop.f32.mrb[31].mxu0  ;;  %v5476_v17 = vpop.f32.mrb[29].mxu1 }
 0x13d   : > { %v5368_v33 = vadd.f32 %v5367_v13, %v5366_v48  ;;  %v2319_v58 = vadd.f32 %v5365_v50, %v7777_v44  ;;  %v5477_v8 = vadd.f32 %v5476_v17, %v5475_v41  ;;  %v5478_v10 = vpop.f32.mrb[30].mxu1 }
 0x13e   : > { %6274 = vmatmul.mubr.msk.bf16.gmra.mrb[136].mxu0 %vm9620_vm10, %v9578_v19  ;;  %v6434_v19 = vld [vmem:[%s9171_s3 + $0x18] sm:$0xff]   ;;  %v5479_v51 = vpop.f32.mrb[31].mxu1 }
 0x13f   : > { %6277 = vmatprep.mubr.msk.bf16.mxu0 %vm9621_vm8, %v9585_v55  ;;  %v2322_v48 = vadd.f32 %v5368_v33, %v7777_v44  ;;  %5784 = vmatpush3.bf16.msra.mxu1 %v6434_v19  ;;  %v5480_v13 = vadd.f32 %v5479_v51, %v5478_v10  ;;  %vm9622_vm8 = vnez %v9586_v12  ;;  %v7915_v50 = vadd.f32 %v5477_v8, %v2319_v58 }
 0x141   : > { %v5369_v45 = vpop.f32.mrb[32].mxu0  ;;  %v7920_v4 = vadd.f32 %v5480_v13, %v2322_v48 }
 0x142   : > { %v5370_v9 = vpop.f32.mrb[33].mxu0 }
 0x143   : > { %v5371_v43 = vadd.f32 %v5370_v9, %v5369_v45  ;;  %v5372_v5 = vpop.f32.mrb[34].mxu0  ;;  %v5481_v45 = vpop.f32.mrb[32].mxu1 }
 0x144   : > { %v5373_v55 = vpop.f32.mrb[35].mxu0  ;;  %v5482_v9 = vpop.f32.mrb[33].mxu1 }
 0x145   : > { %v5374_v28 = vadd.f32 %v5373_v55, %v5372_v5  ;;  %v2327_v60 = vadd.f32 %v5371_v43, %v7777_v44  ;;  %v5483_v10 = vadd.f32 %v5482_v9, %v5481_v45  ;;  %v6435_v43 = vld [vmem:[%s9171_s3 + $0x60] sm:$0xff]  }
 0x146   : > { %6278 = vmatmul.mubr.msk.bf16.gmra.mrb[140].mxu0 %vm9622_vm8, %v7411_v27  ;;  %v5484_v27 = vpop.f32.mrb[34].mxu1  ;;  %5785 = vmatprep.subr.bf16.mxu1 %v6435_v43 }
 0x147   : > { %6281 = vmatprep.mubr.msk.bf16.mxu0 %vm9593_vm2, %v7493_v63  ;;  %v2330_v5 = vadd.f32 %v5374_v28, %v7777_v44  ;;  %v5485_v8 = vpop.f32.mrb[35].mxu1  ;;  %v7924_v51 = vadd.f32 %v5483_v10, %v2327_v60 }
 0x148   : > { %v5486_v63 = vadd.f32 %v5485_v8, %v5484_v27 }
 0x149   : > { %v5375_v33 = vpop.f32.mrb[36].mxu0 }
 0x14a   : > { %v5376_v41 = vpop.f32.mrb[37].mxu0  ;;  %v7935_v48 = vadd.f32 %v5486_v63, %v2330_v5 }
 0x14b   : > { %v5377_v19 = vadd.f32 %v5376_v41, %v5375_v33  ;;  %v5378_v17 = vpop.f32.mrb[38].mxu0  ;;  %v5487_v33 = vpop.f32.mrb[36].mxu1 }
 0x14c   : > { %v5379_v58 = vpop.f32.mrb[39].mxu0  ;;  %v5488_v45 = vpop.f32.mrb[37].mxu1 }
 0x14d   : > { %v5380_v55 = vadd.f32 %v5379_v58, %v5378_v17  ;;  %v2335_v13 = vadd.f32 %v5377_v19, %v7777_v44  ;;  %v5489_v10 = vadd.f32 %v5488_v45, %v5487_v33  ;;  %v5490_v27 = vpop.f32.mrb[38].mxu1 }
 0x14e   : > { %6282 = vmatmul.mubr.msk.bf16.gmra.mrb[144].mxu0 %vm9598_vm4, %v7536_v46  ;;  %v6436_v46 = vld [vmem:[%s9171_s3 + $0x20] sm:$0xff]   ;;  %v5491_v5 = vpop.f32.mrb[39].mxu1 }
 0x14f   : > { %6285 = vmatprep.mubr.msk.bf16.mxu0 %vm7414_vm11, %v7567_v53  ;;  %v2338_v17 = vadd.f32 %v5380_v55, %v7777_v44  ;;  %5786 = vmatpush3.bf16.msra.mxu1 %v6436_v46  ;;  %v7942_v8 = vadd.f32 %v5489_v10, %v2335_v13  ;;  %v5492_v19 = vadd.f32 %v5491_v5, %v5490_v27 }
 0x151   : > { %v5381_v28 = vpop.f32.mrb[40].mxu0  ;;  %v7950_v63 = vadd.f32 %v5492_v19, %v2338_v17 }
 0x152   : > { %v5382_v60 = vpop.f32.mrb[41].mxu0 }
 0x153   : > { %v5383_v41 = vadd.f32 %v5382_v60, %v5381_v28  ;;  %v5384_v9 = vpop.f32.mrb[42].mxu0 }
 0x154   : > { %v5385_v53 = vpop.f32.mrb[43].mxu0 }
 0x155   : > { %v5386_v58 = vadd.f32 %v5385_v53, %v5384_v9  ;;  %v2343_v43 = vadd.f32 %v5383_v41, %v7777_v44  ;;  %v5493_v28 = vpop.f32.mrb[40].mxu1  ;;  %v6437_v41 = vld [vmem:[%s9171_s3 + $0x68] sm:$0xff]  }
 0x156   : > { %6286 = vmatmul.mubr.msk.bf16.gmra.mrb[148].mxu0 %vm7495_vm6, %v7605_v24  ;;  %v5494_v60 = vpop.f32.mrb[41].mxu1  ;;  %5787 = vmatprep.subr.bf16.mxu1 %v6437_v41 }
 0x157   : > { %6289 = vmatprep.mubr.msk.bf16.mxu0 %vm7538_vm0, %v7629_v1  ;;  %v2346_v45 = vadd.f32 %v5386_v58, %v7777_v44  ;;  %v5495_v9 = vadd.f32 %v5494_v60, %v5493_v28  ;;  %v5496_v10 = vpop.f32.mrb[42].mxu1 }
 0x158   : > { %v5497_v24 = vpop.f32.mrb[43].mxu1 }
 0x159   : > { %v5387_v55 = vpop.f32.mrb[44].mxu0  ;;  %v7954_v5 = vadd.f32 %v5495_v9, %v2343_v43  ;;  %v5498_v1 = vadd.f32 %v5497_v24, %v5496_v10 }
 0x15a   : > { %v5388_v33 = vpop.f32.mrb[45].mxu0 }
 0x15b   : > { %v5389_v46 = vadd.f32 %v5388_v33, %v5387_v55  ;;  %v5390_v13 = vpop.f32.mrb[46].mxu0  ;;  %v7965_v17 = vadd.f32 %v5498_v1, %v2346_v45 }
 0x15c   : > { %v5391_v27 = vpop.f32.mrb[47].mxu0 }
 0x15d   : > { %v5392_v53 = vadd.f32 %v5391_v27, %v5390_v13  ;;  %v2351_v19 = vadd.f32 %v5389_v46, %v7777_v44  ;;  %v5499_v55 = vpop.f32.mrb[44].mxu1 }
 0x15e   : > { %6290 = vmatmul.mubr.msk.bf16.gmra.mrb[152].mxu0 %vm7569_vm13, %v7661_v3  ;;  %v6438_v3 = vld [vmem:[%s9171_s3 + $0x28] sm:$0xff]   ;;  %v5500_v28 = vpop.f32.mrb[45].mxu1  ;;  %vm9624_vm13 = vnez %v9385_v21  ;;  %v6497_v21 = vld [vmem:[%s9171_s3 + $0x230] sm:$0xff]  }
 0x15f   : > { %6293 = vmatprep.mubr.msk.bf16.mxu0 %vm7607_vm7, %v7822_v14  ;;  %v2354_v13 = vadd.f32 %v5392_v53, %v7777_v44  ;;  %v5501_v9 = vadd.f32 %v5500_v28, %v5499_v55  ;;  %v5502_v10 = vpop.f32.mrb[46].mxu1  ;;  %5788 = vmatpush3.bf16.msra.mxu1 %v6438_v3  ;;  %vm9623_vm7 = vnez %v9389_v32 }
 0x160   : > { %v5503_v45 = vpop.f32.mrb[47].mxu1 }
 0x161   : > { %v5393_v58 = vpop.f32.mrb[48].mxu0  ;;  %v7972_v24 = vadd.f32 %v5501_v9, %v2351_v19  ;;  %v5504_v46 = vadd.f32 %v5503_v45, %v5502_v10 }
 0x162   : > { %v5394_v43 = vpop.f32.mrb[49].mxu0 }
 0x163   : > { %v5395_v33 = vadd.f32 %v5394_v43, %v5393_v58  ;;  %v5396_v60 = vpop.f32.mrb[50].mxu0  ;;  %v7975_v1 = vadd.f32 %v5504_v46, %v2354_v13  ;;  %v6439_v13 = vld [vmem:[%s9171_s3 + $0x70] sm:$0xff]  }
 0x164   : > { %v5397_v14 = vpop.f32.mrb[51].mxu0  ;;  %5789 = vmatprep.subr.bf16.mxu1 %v6439_v13 }
 0x165   : > { %v5398_v27 = vadd.f32 %v5397_v14, %v5396_v60  ;;  %v2359_v39 = vadd.f32 %v5395_v33, %v7777_v44  ;;  %v5505_v58 = vpop.f32.mrb[48].mxu1 }
 0x166   : > { %6294 = vmatmul.mubr.bf16.gmra.mrb[156].mxu0 %v9615_v18  ;;  %v5506_v34 = vpop.f32.mrb[49].mxu1 }
 0x167   : > { %v2362_v28 = vadd.f32 %v5398_v27, %v7777_v44  ;;  %v5507_v3 = vadd.f32 %v5506_v34, %v5505_v58  ;;  %v5508_v31 = vpop.f32.mrb[50].mxu1  ;;  %v6440_v34 = vld [vmem:[%s9171_s3 + $0x30] sm:$0xff]  }
 0x168   : > { %v5509_v19 = vpop.f32.mrb[51].mxu1  ;;  %5790 = vmatpush3.bf16.msra.mxu1 %v6440_v34 }
 0x169   : > { %v5399_v41 = vpop.f32.mrb[52].mxu0  ;;  %v7979_v10 = vadd.f32 %v5507_v3, %v2359_v39  ;;  %v5510_v14 = vadd.f32 %v5509_v19, %v5508_v31 }
 0x16a   : > { %v5400_v43 = vpop.f32.mrb[53].mxu0 }
 0x16b   : > { %v5401_v53 = vadd.f32 %v5400_v43, %v5399_v41  ;;  %v5402_v55 = vpop.f32.mrb[54].mxu0  ;;  %v7984_v33 = vadd.f32 %v5510_v14, %v2362_v28 }
 0x16c   : > { %v5403_v60 = vpop.f32.mrb[55].mxu0 }
 0x16d   : > { %v5404_v9 = vadd.f32 %v5403_v60, %v5402_v55  ;;  %v2367_v46 = vadd.f32 %v5401_v53, %v7777_v44  ;;  %v5511_v41 = vpop.f32.mrb[52].mxu1 }
 0x16e   : > { %v5512_v58 = vpop.f32.mrb[53].mxu1 }
 0x16f   : > { %v2370_v31 = vadd.f32 %v5404_v9, %v7777_v44  ;;  %v5513_v55 = vadd.f32 %v5512_v58, %v5511_v41  ;;  %v5514_v3 = vpop.f32.mrb[54].mxu1  ;;  %v6442_v9 = vld [vmem:[%s9171_s3 + $0x80] sm:$0xff]  }
 0x170   : > { %v5515_v28 = vpop.f32.mrb[55].mxu1  ;;  %5890 = vmatpush3.bf16.msra.mxu0 %v6442_v9 }
 0x171   : > { %v5405_v45 = vpop.f32.mrb[56].mxu0  ;;  %v7991_v14 = vadd.f32 %v5513_v55, %v2367_v46  ;;  %v5516_v53 = vadd.f32 %v5515_v28, %v5514_v3 }
 0x172   : > { %v5406_v27 = vpop.f32.mrb[57].mxu0 }
 0x173   : > { %v5407_v39 = vadd.f32 %v5406_v27, %v5405_v45  ;;  %v5408_v43 = vpop.f32.mrb[58].mxu0  ;;  %v7993_v13 = vadd.f32 %v5516_v53, %v2370_v31 }
 0x174   : > { %v5409_v60 = vpop.f32.mrb[59].mxu0 }
 0x175   : > { %v5410_v19 = vadd.f32 %v5409_v60, %v5408_v43  ;;  %v2375_v45 = vadd.f32 %v5407_v39, %v7777_v44  ;;  %v5517_v41 = vpop.f32.mrb[56].mxu1  ;;  %v6443_v60 = vld [vmem:[%s9171_s3 + $0xc8] sm:$0xff]  }
 0x176   : > { %v5518_v34 = vpop.f32.mrb[57].mxu1  ;;  %v6444_v39 = vld [vmem:[%s9171_s3 + $0x88] sm:$0xff]   ;;  %5891 = vmatprep.subr.bf16.mxu0 %v6443_v60 }
 0x177   : > { %v2378_v43 = vadd.f32 %v5410_v19, %v7777_v44  ;;  %v5519_v31 = vadd.f32 %v5518_v34, %v5517_v41  ;;  %v5520_v55 = vpop.f32.mrb[58].mxu1  ;;  %v6445_v19 = vld [vmem:[%s9171_s3 + $0x78] sm:$0xff]   ;;  %5892 = vmatpush3.bf16.msra.mxu0 %v6444_v39  ;;  %v6447_v41 = vld [vmem:[%s9171_s3 + $0xd0] sm:$0xff]  }
 0x178   : > { %v5521_v28 = vpop.f32.mrb[59].mxu1  ;;  %5791 = vmatprep.subr.bf16.mxu1 %v6445_v19  ;;  %5893 = vmatprep.subr.bf16.mxu0 %v6447_v41  ;;  %v6450_v41 = vld [vmem:[%s9171_s3 + $0x98] sm:$0xff]  }
 0x179   : > { %v5411_v6 = vpop.f32.mrb[60].mxu0  ;;  %v8009_v20 = vadd.f32 %v5519_v31, %v2375_v45  ;;  %v6448_v45 = vld [vmem:[%s9171_s3 + $0x90] sm:$0xff]  }
 0x17a   : > { %v5412_v27 = vpop.f32.mrb[61].mxu0 }
 0x17b   : > { %v5413_v46 = vadd.f32 %v5412_v27, %v5411_v6  ;;  %v5414_v58 = vpop.f32.mrb[62].mxu0  ;;  %v5522_v6 = vadd.f32 %v5521_v28, %v5520_v55  ;;  %v6446_v55 = vld [vmem:[%s9171_s3 + $0x38] sm:$0xff]   ;;  %5894 = vmatpush3.bf16.msra.mxu0 %v6448_v45 }
 0x17c   : > { %v5415_v3 = vpop.f32.mrb[63].mxu0  ;;  %5792 = vmatpush3.bf16.msra.mxu1 %v6446_v55 }
 0x17d   : > { %v5416_v53 = vadd.f32 %v5415_v3, %v5414_v58  ;;  %v8014_v9 = vadd.f32 %v5522_v6, %v2378_v43  ;;  %v2383_v34 = vadd.f32 %v5413_v46, %v7777_v44  ;;  %v5523_v58 = vpop.f32.mrb[60].mxu1  ;;  %v6449_v46 = vld [vmem:[%s9171_s3 + $0xd8] sm:$0xff]  }
 0x17e   : > { %v5524_v43 = vpop.f32.mrb[61].mxu1  ;;  %5895 = vmatprep.subr.bf16.mxu0 %v6449_v46 }
 0x17f   : > { %v2386_v28 = vadd.f32 %v5416_v53, %v7777_v44  ;;  %v5525_v39 = vadd.f32 %v5524_v43, %v5523_v58  ;;  %v5526_v6 = vpop.f32.mrb[62].mxu1  ;;  %5896 = vmatpush3.bf16.msra.mxu0 %v6450_v41  ;;  %4003 = vmatmul.mubr.bf16.vlgmr.msra.gmra.mrb[128].mxu1 %v9615_v18  ;;  %v6455_v41 = vld [vmem:[%s9171_s3 + $0x140] sm:$0xff]  }
 0x180   : > { %v5527_v38 = vpop.f32.mrb[63].mxu1  ;;  %6001 = vmatprep.subr.bf16.mxu1 %v6455_v41 }
 0x181   : > { %v5545_v27 = vpop.f32.mrb[64].mxu0  ;;  %v5528_v45 = vadd.f32 %v5527_v38, %v5526_v6  ;;  %v6453_v38 = vld [vmem:[%s9171_s3 + $0xe8] sm:$0xff]  }
 0x182   : > { %v5546_v31 = vpop.f32.mrb[65].mxu0 }
 0x183   : > { %v5547_v3 = vadd.f32 %v5546_v31, %v5545_v27  ;;  %v5548_v60 = vpop.f32.mrb[66].mxu0  ;;  %v8034_v27 = vadd.f32 %v5525_v39, %v2383_v34  ;;  %v8038_v53 = vadd.f32 %v5528_v45, %v2386_v28  ;;  %v6452_v31 = vld [vmem:[%s9171_s3 + $0xa0] sm:$0xff]  }
 0x184   : > { %v5549_v19 = vpop.f32.mrb[67].mxu0 }
 0x185   : > { %v2585_v47 = vadd.f32 %v5547_v3, %v7786_v30  ;;  %v5550_v59 = vadd.f32 %v5549_v19, %v5548_v60  ;;  %v6451_v30 = vld [vmem:[%s9171_s3 + $0xe0] sm:$0xff]   ;;  %v5657_v34 = vpop.f32.mrb[64].mxu1  ;;  %v6454_v3 = vld [vmem:[%s9171_s3 + $0xa8] sm:$0xff]  }
 0x186   : > { %5897 = vmatprep.subr.bf16.mxu0 %v6451_v30 }
 0x187   : > { %v2588_v44 = vadd.f32 %v5550_v59, %v7798_v49  ;;  %v5658_v49 = vpop.f32.mrb[65].mxu1  ;;  %5898 = vmatpush3.bf16.msra.mxu0 %v6452_v31 }
 0x188   : > { %v5659_v60 = vadd.f32 %v5658_v49, %v5657_v34  ;;  %v5660_v28 = vpop.f32.mrb[66].mxu1  ;;  %5899 = vmatprep.subr.bf16.mxu0 %v6453_v38  ;;  %v6456_v38 = vld [vmem:[%s9171_s3 + $0xf0] sm:$0xff]  }
 0x189   : > { %v5551_v58 = vpop.f32.mrb[68].mxu0  ;;  %v5661_v6 = vpop.f32.mrb[67].mxu1 }
 0x18a   : > { %v5552_v59 = vpop.f32.mrb[69].mxu0  ;;  %v5662_v45 = vadd.f32 %v5661_v6, %v5660_v28  ;;  %v8056_v30 = vadd.f32 %v5659_v60, %v2585_v47  ;;  %v6458_v47 = vld [vmem:[%s9171_s3 + $0xb0] sm:$0xff]  }
 0x18b   : > { %v5553_v55 = vadd.f32 %v5552_v59, %v5551_v58  ;;  %v5554_v43 = vpop.f32.mrb[70].mxu0  ;;  %5900 = vmatpush3.bf16.msra.mxu0 %v6454_v3  ;;  %v6460_v3 = vld [vmem:[%s9171_s3 + $0xb8] sm:$0xff]  }
 0x18c   : > { %v5555_v39 = vpop.f32.mrb[71].mxu0  ;;  %v8059_v31 = vadd.f32 %v5662_v45, %v2588_v44  ;;  %5901 = vmatprep.subr.bf16.mxu0 %v6456_v38 }
 0x18d   : > { %v2593_v19 = vadd.f32 %v5553_v55, %v7806_v57  ;;  %v5556_v46 = vadd.f32 %v5555_v39, %v5554_v43  ;;  %v6457_v57 = vld [vmem:[%s9171_s3 + $0x100] sm:$0xff]   ;;  %v5663_v59 = vpop.f32.mrb[68].mxu1 }
 0x18e   : > { %6002 = vmatpush3.bf16.msra.mxu1 %v6457_v57  ;;  %v5664_v49 = vpop.f32.mrb[69].mxu1 }
 0x18f   : > { %v2596_v58 = vadd.f32 %v5556_v46, %v7815_v36  ;;  %v6459_v36 = vld [vmem:[%s9171_s3 + $0xf8] sm:$0xff]   ;;  %5902 = vmatpush3.bf16.msra.mxu0 %v6458_v47  ;;  %v5665_v60 = vadd.f32 %v5664_v49, %v5663_v59  ;;  %v5666_v28 = vpop.f32.mrb[70].mxu1 }
 0x190   : > { %5903 = vmatprep.subr.bf16.mxu0 %v6459_v36  ;;  %v5667_v6 = vpop.f32.mrb[71].mxu1 }
 0x191   : > { %v5557_v34 = vpop.f32.mrb[72].mxu0  ;;  %v5668_v45 = vadd.f32 %v5667_v6, %v5666_v28  ;;  %v8077_v18 = vadd.f32 %v5665_v60, %v2593_v19 }
 0x192   : > { %v5558_v44 = vpop.f32.mrb[73].mxu0 }
 0x193   : > { %v5559_v55 = vadd.f32 %v5558_v44, %v5557_v34  ;;  %v5560_v43 = vpop.f32.mrb[74].mxu0  ;;  %5904 = vmatpush3.bf16.msra.mxu0 %v6460_v3  ;;  %v8080_v57 = vadd.f32 %v5668_v45, %v2596_v58 }
 0x194   : > { %v5561_v39 = vpop.f32.mrb[75].mxu0 }
 0x195   : > { %v2601_v46 = vadd.f32 %v5559_v55, %v7825_v2  ;;  %v5562_v41 = vadd.f32 %v5561_v39, %v5560_v43  ;;  %v5669_v47 = vpop.f32.mrb[72].mxu1 }
 0x196   : > { %v5670_v12 = vpop.f32.mrb[73].mxu1 }
 0x197   : > { %v2604_v38 = vadd.f32 %v5562_v41, %v7837_v54  ;;  %v5671_v0 = vadd.f32 %v5670_v12, %v5669_v47  ;;  %v5672_v36 = vpop.f32.mrb[74].mxu1  ;;  %v6461_v54 = vld [vmem:[%s9171_s3 + $0x148] sm:$0xff]  }
 0x198   : > { %v5673_v7 = vpop.f32.mrb[75].mxu1  ;;  %6003 = vmatprep.subr.bf16.mxu1 %v6461_v54  ;;  %v6462_v12 = vld [vmem:[%s9171_s3 + $0x108] sm:$0xff]  }
 0x199   : > { %v5563_v34 = vpop.f32.mrb[76].mxu0  ;;  %v5674_v19 = vadd.f32 %v5673_v7, %v5672_v36  ;;  %v8086_v58 = vadd.f32 %v5671_v0, %v2601_v46  ;;  %6004 = vmatpush3.bf16.msra.mxu1 %v6462_v12 }
 0x19a   : > { %v5564_v44 = vpop.f32.mrb[77].mxu0 }
 0x19b   : > { %v5565_v59 = vadd.f32 %v5564_v44, %v5563_v34  ;;  %v5566_v49 = vpop.f32.mrb[78].mxu0  ;;  %v8089_v3 = vadd.f32 %v5674_v19, %v2604_v38 }
 0x19c   : > { %v5567_v11 = vpop.f32.mrb[79].mxu0 }
 0x19d   : > { %v2609_v2 = vadd.f32 %v5565_v59, %v7845_v52  ;;  %v5568_v55 = vadd.f32 %v5567_v11, %v5566_v49  ;;  %v5675_v28 = vpop.f32.mrb[76].mxu1 }
 0x19e   : > { %v5676_v11 = vpop.f32.mrb[77].mxu1 }
 0x19f   : > { %v2612_v43 = vadd.f32 %v5568_v55, %v7854_v42  ;;  %v5677_v41 = vadd.f32 %v5676_v11, %v5675_v28  ;;  %v5678_v7 = vpop.f32.mrb[78].mxu1 }
 0x1a0   : > { %v5679_v46 = vpop.f32.mrb[79].mxu1 }
 0x1a1   : > { %v5569_v60 = vpop.f32.mrb[80].mxu0  ;;  %v5680_v38 = vadd.f32 %v5679_v46, %v5678_v7  ;;  %v8095_v34 = vadd.f32 %v5677_v41, %v2609_v2  ;;  %v6463_v2 = vld [vmem:[%s9171_s3 + $0x150] sm:$0xff]  }
 0x1a2   : > { %v5570_v52 = vpop.f32.mrb[81].mxu0  ;;  %6005 = vmatprep.subr.bf16.mxu1 %v6463_v2  ;;  %v6464_v41 = vld [vmem:[%s9171_s3 + $0x110] sm:$0xff]  }
 0x1a3   : > { %v5571_v39 = vadd.f32 %v5570_v52, %v5569_v60  ;;  %v5572_v6 = vpop.f32.mrb[82].mxu0  ;;  %v8098_v44 = vadd.f32 %v5680_v38, %v2612_v43  ;;  %6006 = vmatpush3.bf16.msra.mxu1 %v6464_v41 }
 0x1a4   : > { %v5573_v0 = vpop.f32.mrb[83].mxu0 }
 0x1a5   : > { %v2617_v42 = vadd.f32 %v5571_v39, %v7864_v37  ;;  %v5574_v45 = vadd.f32 %v5573_v0, %v5572_v6  ;;  %v5681_v49 = vpop.f32.mrb[80].mxu1 }
 0x1a6   : > { %v5682_v55 = vpop.f32.mrb[81].mxu1 }
 0x1a7   : > { %v2620_v47 = vadd.f32 %v5574_v45, %v7874_v16  ;;  %v5683_v12 = vadd.f32 %v5682_v55, %v5681_v49  ;;  %v5684_v60 = vpop.f32.mrb[82].mxu1 }
 0x1a8   : > { %v5685_v52 = vpop.f32.mrb[83].mxu1 }
 0x1a9   : > { %v5575_v59 = vpop.f32.mrb[84].mxu0  ;;  %v5686_v16 = vadd.f32 %v5685_v52, %v5684_v60  ;;  %v8104_v43 = vadd.f32 %v5683_v12, %v2617_v42 }
 0x1aa   : > { %v5576_v36 = vpop.f32.mrb[85].mxu0 }
 0x1ab   : > { %v5577_v54 = vadd.f32 %v5576_v36, %v5575_v59  ;;  %v5578_v19 = vpop.f32.mrb[86].mxu0  ;;  %v8107_v6 = vadd.f32 %v5686_v16, %v2620_v47 }
 0x1ac   : > { %v5579_v28 = vpop.f32.mrb[87].mxu0 }
 0x1ad   : > { %v2625_v37 = vadd.f32 %v5577_v54, %v7885_v35  ;;  %v5580_v11 = vadd.f32 %v5579_v28, %v5578_v19  ;;  %v5687_v0 = vpop.f32.mrb[84].mxu1 }
 0x1ae   : > { %v5688_v46 = vpop.f32.mrb[85].mxu1 }
 0x1af   : > { %v2628_v39 = vadd.f32 %v5580_v11, %v7890_v22  ;;  %v5689_v59 = vadd.f32 %v5688_v46, %v5687_v0  ;;  %v5690_v49 = vpop.f32.mrb[86].mxu1 }
 0x1b0   : > { %v5691_v36 = vpop.f32.mrb[87].mxu1 }
 0x1b1   : > { %v5581_v7 = vpop.f32.mrb[88].mxu0  ;;  %v5692_v47 = vadd.f32 %v5691_v36, %v5690_v49  ;;  %v8113_v54 = vadd.f32 %v5689_v59, %v2625_v37  ;;  %v6465_v37 = vld [vmem:[%s9171_s3 + $0x158] sm:$0xff]  }
 0x1b2   : > { %v5582_v35 = vpop.f32.mrb[89].mxu0  ;;  %6007 = vmatprep.subr.bf16.mxu1 %v6465_v37  ;;  %v6469_v37 = vld [vmem:[%s9171_s3 + $0x160] sm:$0xff]  }
 0x1b3   : > { %v5583_v45 = vadd.f32 %v5582_v35, %v5581_v7  ;;  %v5584_v38 = vpop.f32.mrb[90].mxu0  ;;  %v8116_v12 = vadd.f32 %v5692_v47, %v2628_v39 }
 0x1b4   : > { %v5585_v42 = vpop.f32.mrb[91].mxu0 }
 0x1b5   : > { %v2633_v22 = vadd.f32 %v5583_v45, %v7897_v40  ;;  %v5586_v55 = vadd.f32 %v5585_v42, %v5584_v38  ;;  %v5693_v28 = vpop.f32.mrb[88].mxu1 }
 0x1b6   : > { %v5694_v11 = vpop.f32.mrb[89].mxu1 }
 0x1b7   : > { %v2636_v19 = vadd.f32 %v5586_v55, %v7905_v23  ;;  %v5695_v41 = vadd.f32 %v5694_v11, %v5693_v28  ;;  %v5696_v7 = vpop.f32.mrb[90].mxu1 }
 0x1b8   : > { %v5697_v35 = vpop.f32.mrb[91].mxu1 }
 0x1b9   : > { %v5587_v60 = vpop.f32.mrb[92].mxu0  ;;  %v5698_v23 = vadd.f32 %v5697_v35, %v5696_v7  ;;  %v8122_v39 = vadd.f32 %v5695_v41, %v2633_v22 }
 0x1ba   : > { %v5588_v52 = vpop.f32.mrb[93].mxu0 }
 0x1bb   : > { %v5589_v2 = vadd.f32 %v5588_v52, %v5587_v60  ;;  %v5590_v16 = vpop.f32.mrb[94].mxu0  ;;  %v8125_v38 = vadd.f32 %v5698_v23, %v2636_v19 }
 0x1bc   : > { %v5591_v0 = vpop.f32.mrb[95].mxu0 }
 0x1bd   : > { %v2641_v40 = vadd.f32 %v5589_v2, %v7915_v50  ;;  %v5592_v46 = vadd.f32 %v5591_v0, %v5590_v16  ;;  %v5699_v49 = vpop.f32.mrb[92].mxu1  ;;  %v6466_v50 = vld [vmem:[%s9171_s3 + $0x118] sm:$0xff]  }
 0x1be   : > { %v5700_v36 = vpop.f32.mrb[93].mxu1  ;;  %6008 = vmatpush3.bf16.msra.mxu1 %v6466_v50 }
 0x1bf   : > { %v2644_v45 = vadd.f32 %v5592_v46, %v7920_v4  ;;  %v5701_v60 = vadd.f32 %v5700_v36, %v5699_v49  ;;  %v5702_v28 = vpop.f32.mrb[94].mxu1  ;;  %v6467_v4 = vld [vmem:[%s9171_s3 + $0x1c0] sm:$0xff]   ;;  %6009 = vmatprep.subr.bf16.mxu1 %v6469_v37 }
 0x1c0   : > { %v5703_v22 = vpop.f32.mrb[95].mxu1  ;;  %6113 = vmatprep.subr.bf16.mxu0 %v6467_v4 }
 0x1c1   : > { %v5593_v59 = vpop.f32.mrb[96].mxu0  ;;  %v5704_v2 = vadd.f32 %v5703_v22, %v5702_v28  ;;  %v8134_v16 = vadd.f32 %v5701_v60, %v2641_v40 }
 0x1c2   : > { %v5594_v42 = vpop.f32.mrb[97].mxu0 }
 0x1c3   : > { %v5595_v55 = vadd.f32 %v5594_v42, %v5593_v59  ;;  %v5596_v47 = vpop.f32.mrb[98].mxu0  ;;  %v8137_v7 = vadd.f32 %v5704_v2, %v2644_v45 }
 0x1c4   : > { %v5597_v52 = vpop.f32.mrb[99].mxu0 }
 0x1c5   : > { %v2649_v19 = vadd.f32 %v5595_v55, %v7924_v51  ;;  %v5598_v11 = vadd.f32 %v5597_v52, %v5596_v47  ;;  %v5705_v35 = vpop.f32.mrb[96].mxu1  ;;  %v6470_v51 = vld [vmem:[%s9171_s3 + $0x120] sm:$0xff]  }
 0x1c6   : > { %v5706_v23 = vpop.f32.mrb[97].mxu1  ;;  %6010 = vmatpush3.bf16.msra.mxu1 %v6470_v51 }
 0x1c7   : > { %v2652_v41 = vadd.f32 %v5598_v11, %v7935_v48  ;;  %v5707_v40 = vadd.f32 %v5706_v23, %v5705_v35  ;;  %v5708_v42 = vpop.f32.mrb[98].mxu1 }
 0x1c8   : > { %v5709_v48 = vpop.f32.mrb[99].mxu1 }
 0x1c9   : > { %v5599_v0 = vpop.f32.mrb[100].mxu0  ;;  %v5710_v55 = vadd.f32 %v5709_v48, %v5708_v42  ;;  %v8146_v47 = vadd.f32 %v5707_v40, %v2649_v19 }
 0x1ca   : > { %v5600_v46 = vpop.f32.mrb[101].mxu0 }
 0x1cb   : > { %v5601_v59 = vadd.f32 %v5600_v46, %v5599_v0  ;;  %v5602_v49 = vpop.f32.mrb[102].mxu0  ;;  %v8149_v28 = vadd.f32 %v5710_v55, %v2652_v41 }
 0x1cc   : > { %v5603_v50 = vpop.f32.mrb[103].mxu0 }
 0x1cd   : > { %v2657_v45 = vadd.f32 %v5601_v59, %v7942_v8  ;;  %v5604_v36 = vadd.f32 %v5603_v50, %v5602_v49  ;;  %v5711_v4 = vpop.f32.mrb[100].mxu1  ;;  %v6473_v50 = vld [vmem:[%s9171_s3 + $0x168] sm:$0xff]  }
 0x1ce   : > { %v5712_v11 = vpop.f32.mrb[101].mxu1  ;;  %6011 = vmatprep.subr.bf16.mxu1 %v6473_v50 }
 0x1cf   : > { %v2660_v60 = vadd.f32 %v5604_v36, %v7950_v63  ;;  %v5713_v35 = vadd.f32 %v5712_v11, %v5711_v4  ;;  %v5714_v46 = vpop.f32.mrb[102].mxu1 }
 0x1d0   : > { %v5715_v23 = vpop.f32.mrb[103].mxu1 }
 0x1d1   : > { %v5605_v52 = vpop.f32.mrb[104].mxu0  ;;  %v5716_v49 = vadd.f32 %v5715_v23, %v5714_v46  ;;  %v8152_v19 = vadd.f32 %v5713_v35, %v2657_v45 }
 0x1d2   : > { %v5606_v22 = vpop.f32.mrb[105].mxu0 }
 0x1d3   : > { %v5607_v2 = vadd.f32 %v5606_v22, %v5605_v52  ;;  %v5608_v0 = vpop.f32.mrb[106].mxu0  ;;  %v8155_v41 = vadd.f32 %v5716_v49, %v2660_v60 }
 0x1d4   : > { %v5609_v37 = vpop.f32.mrb[107].mxu0 }
 0x1d5   : > { %v2665_v8 = vadd.f32 %v5607_v2, %v7954_v5  ;;  %v5610_v59 = vadd.f32 %v5609_v37, %v5608_v0  ;;  %v5717_v40 = vpop.f32.mrb[104].mxu1  ;;  %v6474_v5 = vld [vmem:[%s9171_s3 + $0x128] sm:$0xff]  }
 0x1d6   : > { %v5718_v48 = vpop.f32.mrb[105].mxu1  ;;  %6012 = vmatpush3.bf16.msra.mxu1 %v6474_v5 }
 0x1d7   : > { %v2668_v63 = vadd.f32 %v5610_v59, %v7965_v17  ;;  %v5719_v45 = vadd.f32 %v5718_v48, %v5717_v40  ;;  %v5720_v52 = vpop.f32.mrb[106].mxu1 }
 0x1d8   : > { %v5721_v17 = vpop.f32.mrb[107].mxu1 }
 0x1d9   : > { %v5611_v51 = vpop.f32.mrb[108].mxu0  ;;  %v5722_v11 = vadd.f32 %v5721_v17, %v5720_v52  ;;  %v8164_v2 = vadd.f32 %v5719_v45, %v2665_v8 }
 0x1da   : > { %v5612_v42 = vpop.f32.mrb[109].mxu0 }
 0x1db   : > { %v5613_v36 = vadd.f32 %v5612_v42, %v5611_v51  ;;  %v5614_v55 = vpop.f32.mrb[110].mxu0  ;;  %v8167_v35 = vadd.f32 %v5722_v11, %v2668_v63 }
 0x1dc   : > { %v5615_v4 = vpop.f32.mrb[111].mxu0 }
 0x1dd   : > { %v2673_v60 = vadd.f32 %v5613_v36, %v7972_v24  ;;  %v5616_v22 = vadd.f32 %v5615_v4, %v5614_v55  ;;  %v5723_v37 = vpop.f32.mrb[108].mxu1  ;;  %v6477_v4 = vld [vmem:[%s9171_s3 + $0x170] sm:$0xff]  }
 0x1de   : > { %v5724_v59 = vpop.f32.mrb[109].mxu1  ;;  %6013 = vmatprep.subr.bf16.mxu1 %v6477_v4 }
 0x1df   : > { %v2676_v0 = vadd.f32 %v5616_v22, %v7975_v1  ;;  %v5725_v40 = vadd.f32 %v5724_v59, %v5723_v37  ;;  %v5726_v42 = vpop.f32.mrb[110].mxu1 }
 0x1e0   : > { %v5727_v48 = vpop.f32.mrb[111].mxu1 }
 0x1e1   : > { %v5617_v46 = vpop.f32.mrb[112].mxu0  ;;  %v5728_v55 = vadd.f32 %v5727_v48, %v5726_v42  ;;  %v8170_v8 = vadd.f32 %v5725_v40, %v2673_v60 }
 0x1e2   : > { %v5618_v23 = vpop.f32.mrb[113].mxu0 }
 0x1e3   : > { %v5619_v49 = vadd.f32 %v5618_v23, %v5617_v46  ;;  %v5620_v51 = vpop.f32.mrb[114].mxu0  ;;  %v8173_v63 = vadd.f32 %v5728_v55, %v2676_v0 }
 0x1e4   : > { %v5621_v50 = vpop.f32.mrb[115].mxu0 }
 0x1e5   : > { %v2681_v24 = vadd.f32 %v5619_v49, %v7979_v10  ;;  %v5622_v36 = vadd.f32 %v5621_v50, %v5620_v51  ;;  %v5729_v45 = vpop.f32.mrb[112].mxu1  ;;  %v6478_v10 = vld [vmem:[%s9171_s3 + $0x130] sm:$0xff]  }
 0x1e6   : > { %v5730_v17 = vpop.f32.mrb[113].mxu1  ;;  %6014 = vmatpush3.bf16.msra.mxu1 %v6478_v10 }
 0x1e7   : > { %v2684_v1 = vadd.f32 %v5622_v36, %v7984_v33  ;;  %v5731_v60 = vadd.f32 %v5730_v17, %v5729_v45  ;;  %v5732_v46 = vpop.f32.mrb[114].mxu1 }
 0x1e8   : > { %v5733_v33 = vpop.f32.mrb[115].mxu1 }
 0x1e9   : > { %v5623_v5 = vpop.f32.mrb[116].mxu0  ;;  %v5734_v59 = vadd.f32 %v5733_v33, %v5732_v46  ;;  %v8182_v49 = vadd.f32 %v5731_v60, %v2681_v24 }
 0x1ea   : > { %v5624_v52 = vpop.f32.mrb[117].mxu0 }
 0x1eb   : > { %v5625_v22 = vadd.f32 %v5624_v52, %v5623_v5  ;;  %v5626_v11 = vpop.f32.mrb[118].mxu0  ;;  %v8185_v40 = vadd.f32 %v5734_v59, %v2684_v1 }
 0x1ec   : > { %v5627_v37 = vpop.f32.mrb[119].mxu0 }
 0x1ed   : > { %v2689_v0 = vadd.f32 %v5625_v22, %v7991_v14  ;;  %v5628_v23 = vadd.f32 %v5627_v37, %v5626_v11  ;;  %v5735_v50 = vpop.f32.mrb[116].mxu1  ;;  %v6481_v37 = vld [vmem:[%s9171_s3 + $0x178] sm:$0xff]  }
 0x1ee   : > { %v5736_v36 = vpop.f32.mrb[117].mxu1  ;;  %6015 = vmatprep.subr.bf16.mxu1 %v6481_v37 }
 0x1ef   : > { %v2692_v51 = vadd.f32 %v5628_v23, %v7993_v13  ;;  %v5737_v45 = vadd.f32 %v5736_v36, %v5735_v50  ;;  %v5738_v52 = vpop.f32.mrb[118].mxu1 }
 0x1f0   : > { %v5739_v17 = vpop.f32.mrb[119].mxu1 }
 0x1f1   : > { %v5629_v42 = vpop.f32.mrb[120].mxu0  ;;  %v5740_v11 = vadd.f32 %v5739_v17, %v5738_v52  ;;  %v8188_v24 = vadd.f32 %v5737_v45, %v2689_v0 }
 0x1f2   : > { %v5630_v48 = vpop.f32.mrb[121].mxu0 }
 0x1f3   : > { %v5631_v55 = vadd.f32 %v5630_v48, %v5629_v42  ;;  %v5632_v5 = vpop.f32.mrb[122].mxu0  ;;  %v8191_v1 = vadd.f32 %v5740_v11, %v2692_v51 }
 0x1f4   : > { %v5633_v4 = vpop.f32.mrb[123].mxu0 }
 0x1f5   : > { %v2697_v14 = vadd.f32 %v5631_v55, %v8009_v20  ;;  %v5634_v22 = vadd.f32 %v5633_v4, %v5632_v5  ;;  %v5741_v60 = vpop.f32.mrb[120].mxu1  ;;  %v6482_v20 = vld [vmem:[%s9171_s3 + $0x138] sm:$0xff]  }
 0x1f6   : > { %v5742_v33 = vpop.f32.mrb[121].mxu1  ;;  %6016 = vmatpush3.bf16.msra.mxu1 %v6482_v20 }
 0x1f7   : > { %v2700_v13 = vadd.f32 %v5634_v22, %v8014_v9  ;;  %v5743_v0 = vadd.f32 %v5742_v33, %v5741_v60  ;;  %v5744_v42 = vpop.f32.mrb[122].mxu1 }
 0x1f8   : > { %v5745_v9 = vpop.f32.mrb[123].mxu1 }
 0x1f9   : > { %v5635_v10 = vpop.f32.mrb[124].mxu0  ;;  %v5746_v36 = vadd.f32 %v5745_v9, %v5744_v42  ;;  %v8200_v55 = vadd.f32 %v5743_v0, %v2697_v14 }
 0x1fa   : > { %v5636_v46 = vpop.f32.mrb[125].mxu0 }
 0x1fb   : > { %v5637_v23 = vadd.f32 %v5636_v46, %v5635_v10  ;;  %v5638_v59 = vpop.f32.mrb[126].mxu0  ;;  %v8203_v45 = vadd.f32 %v5746_v36, %v2700_v13 }
 0x1fc   : > { %v5639_v50 = vpop.f32.mrb[127].mxu0 }
 0x1fd   : > { %v2705_v51 = vadd.f32 %v5637_v23, %v8034_v27  ;;  %v5640_v48 = vadd.f32 %v5639_v50, %v5638_v59  ;;  %v5747_v4 = vpop.f32.mrb[124].mxu1 }
 0x1fe   : > { %v5748_v11 = vpop.f32.mrb[125].mxu1 }
 0x1ff   : > { %v2708_v5 = vadd.f32 %v5640_v48, %v8038_v53  ;;  %v5749_v46 = vadd.f32 %v5748_v11, %v5747_v4  ;;  %v5750_v27 = vpop.f32.mrb[126].mxu1 }
 0x200   : > { %v5751_v14 = vpop.f32.mrb[127].mxu1 }
 0x201   : > { %v6267_v52 = vpop.f32.mrb[128].mxu0  ;;  %v5752_v53 = vadd.f32 %v5751_v14, %v5750_v27  ;;  %v8209_v20 = vadd.f32 %v5749_v46, %v2705_v51 }
 0x202   : > { %v2915_v17 = vadd.f32 %v6267_v52, %v8077_v18  ;;  %v2906_v22 = vpop.f32.mrb[129].mxu0 }
 0x203   : > { %v2907_v10 = vadd.f32 %v2906_v22, %v8056_v30  ;;  %v6268_v60 = vpop.f32.mrb[130].mxu0  ;;  %v8213_v50 = vadd.f32 %v5752_v53, %v2708_v5  ;;  %v6468_v53 = vld [vmem:[%s9171_s3 + $0x180] sm:$0xff]  }
 0x204   : > { %v2918_v37 = vadd.f32 %v6268_v60, %v8080_v57  ;;  %v2909_v33 = vpop.f32.mrb[131].mxu0  ;;  %v3035_v13 = vmax.f32 %v2915_v17, 0.0 }
 0x205   : > { %v2910_v23 = vadd.f32 %v2909_v33, %v8059_v31  ;;  %v3033_v0 = vmax.f32 %v2907_v10, 0.0  ;;  %v8222_v31 = vld [vmem:[%s9171_s3 + $0x200] sm:$0xff]  }
 0x206   : > { %v3036_v59 = vmax.f32 %v2918_v37, 0.0  ;;  %6297 = vmatprep.subr.bf16.mxu1 %v8222_v31 }
 0x207   : > { %v3034_v18 = vmax.f32 %v2910_v23, 0.0 }
 0x208   : > { %v8211_v42 = vpack.c.bf16 %v3036_v59, %v3035_v13 }
 0x209   : > { %v8215_v30 = vpack.c.bf16 %v3034_v18, %v3033_v0  ;;  %v6271_v9 = vpop.f32.mrb[132].mxu0  ;;  %v6471_v0 = vld [vmem:[%s9171_s3 + $0x1c8] sm:$0xff]  }
 0x20a   : > { %v2931_v57 = vadd.f32 %v6271_v9, %v8095_v34  ;;  %v2922_v48 = vpop.f32.mrb[133].mxu0  ;;  %v3089_v36 = vshrl.u32 %v8211_v42, 16 }
 0x20b   : > { %v2923_v51 = vadd.f32 %v2922_v48, %v8086_v58  ;;  %v6272_v52 = vpop.f32.mrb[134].mxu0  ;;  %4010 = vmatprep.mubr.bf16.mxu1 %v8215_v30  ;;  %v3082_v5 = vshrl.u32 %v8215_v30, 16  ;;  %v3085_v4 = vshll.u32 %v8215_v30, 16  ;;  %v3092_v58 = vshll.u32 %v8211_v42, 16 }
 0x20c   : > { %v2934_v17 = vadd.f32 %v6272_v52, %v8098_v44  ;;  %v2925_v34 = vpop.f32.mrb[135].mxu0  ;;  %v8231_v22 = vrot.slane %v3089_v36, 7  ;;  %v3039_v60 = vmax.f32 %v2931_v57, 0.0 }
 0x20d   : > { %v2926_v11 = vadd.f32 %v2925_v34, %v8089_v3  ;;  %v3084_v10 = vrot.slane %v3082_v5, 7  ;;  %v3231_v27 = vrot.slane %v3085_v4, 1  ;;  %v3037_v37 = vmax.f32 %v2923_v51, 0.0 }
 0x20e   : > { %v3040_v46 = vmax.f32 %v2934_v17, 0.0  ;;  %v3094_v44 = vor.u32 %v3092_v58, %v8231_v22 }
 0x20f   : > { %v3038_v33 = vmax.f32 %v2926_v11, 0.0  ;;  %v3087_v14 = vor.u32 %v3085_v4, %v3084_v10  ;;  %v3296_v57 = vsel %vm9612_vm15, 0, %v3231_v27  ;;  %vm9627_vm15 = vsmask.f32 7424 }
 0x210   : > { %v8237_v23 = vpack.c.bf16 %v3040_v46, %v3039_v60 }
 0x211   : > { %v8242_v13 = vpack.c.bf16 %v3038_v33, %v3037_v37  ;;  %v6275_v3 = vpop.f32.mrb[136].mxu0  ;;  %v3215_v59 = vsel %vm9617_vm1, 0, %v3087_v14  ;;  %vm9625_vm1 = vsmask.f32 256  ;;  %v3232_v37 = vor.u32 %v3231_v27, %v3082_v5  ;;  %v6479_v5 = vld [vmem:[%s9171_s3 + $0x1d8] sm:$0xff]  }
 0x212   : > { %v2947_v18 = vadd.f32 %v6275_v3, %v8113_v54  ;;  %v2938_v9 = vpop.f32.mrb[137].mxu0  ;;  %5207 = vmatmul.mubr.msk.bf16.gmra.mrb[132].mxu1 %vm9623_vm7, %v3215_v59  ;;  %5222 = vmatprep.mubr.msk.bf16.mxu0 %vm9624_vm13, %v3215_v59  ;;  %v8261_v54 = vsel %vm9625_vm1, %v3084_v10, %v3094_v44  ;;  %v6476_v59 = vld [vmem:[%s9171_s3 + $0x190] sm:$0xff]   ;;  %vm9626_vm1 = vnez %v9397_v62 }
 0x213   : > { %v2939_v48 = vadd.f32 %v2938_v9, %v8104_v43  ;;  %v6276_v51 = vpop.f32.mrb[138].mxu0  ;;  %4018 = vmatprep.mubr.bf16.mxu1 %v8211_v42  ;;  %5223 = vmatmul.mubr.msk.bf16.vlgmr.msra.gmra.mrb[160].mxu0 %vm6771_vm5, %v3296_v57  ;;  %v3097_v52 = vshrl.u32 %v8242_v13, 16  ;;  %v6472_v43 = vld [vmem:[%s9171_s3 + $0x188] sm:$0xff]   ;;  %v3100_v10 = vshll.u32 %v8242_v13, 16 }
 0x214   : > { %v2950_v4 = vadd.f32 %v6276_v51, %v8116_v12  ;;  %v2941_v17 = vpop.f32.mrb[139].mxu0  ;;  %5224 = vmatprep.mubr.msk.bf16.mxu0 %vm9623_vm7, %v8261_v54  ;;  %6114 = vmatpush3.bf16.msra.mxu0 %v6468_v53  ;;  %v6475_v12 = vld [vmem:[%s9171_s3 + $0x1d0] sm:$0xff]   ;;  %v3043_v60 = vmax.f32 %v2947_v18, 0.0  ;;  %v3105_v53 = vshrl.u32 %v8237_v23, 16  ;;  %vm9628_vm7 = vsmask.f32 256 }
 0x215   : > { %v2942_v34 = vadd.f32 %v2941_v17, %v8107_v6  ;;  %v3099_v11 = vrot.slane %v3097_v52, 7  ;;  %6115 = vmatprep.subr.bf16.mxu0 %v6471_v0  ;;  %v3041_v33 = vmax.f32 %v2939_v48, 0.0  ;;  %v3233_v6 = vrot.slane %v3092_v58, 1 }
 0x216   : > { %v3044_v46 = vmax.f32 %v2950_v4, 0.0  ;;  %v8307_v51 = vrot.slane %v3105_v53, 7 }
 0x217   : > { %v3042_v14 = vmax.f32 %v2942_v34, 0.0  ;;  %v3102_v44 = vor.u32 %v3100_v10, %v3099_v11  ;;  %v8294_v58 = vsel %vm9627_vm15, %v3232_v37, %v3233_v6  ;;  %v6483_v34 = vld [vmem:[%s9171_s3 + $0x1e0] sm:$0xff]  }
 0x218   : > { %v8279_v3 = vpack.c.bf16 %v3044_v46, %v3043_v60  ;;  %6116 = vmatpush3.bf16.msra.mxu0 %v6472_v43  ;;  %v3236_v60 = vrot.slane %v3100_v10, 1  ;;  %v6485_v10 = vld [vmem:[%s9171_s3 + $0x1e8] sm:$0xff]  }
 0x219   : > { %v8284_v0 = vpack.c.bf16 %v3042_v14, %v3041_v33  ;;  %v6279_v9 = vpop.f32.mrb[140].mxu0  ;;  %6117 = vmatprep.subr.bf16.mxu0 %v6475_v12 }
 0x21a   : > { %v2963_v27 = vadd.f32 %v6279_v9, %v8134_v16  ;;  %v2954_v18 = vpop.f32.mrb[141].mxu0  ;;  %5208 = vmatmul.mubr.msk.bf16.gmra.mrb[136].mxu1 %vm9626_vm1, %v8261_v54  ;;  %v8303_v16 = vsel %vm9628_vm7, %v8231_v22, %v3102_v44  ;;  %v3108_v22 = vshll.u32 %v8237_v23, 16  ;;  %vm9631_vm7 = vsmask.f32 7424 }
 0x21b   : > { %v2955_v57 = vadd.f32 %v2954_v18, %v8122_v39  ;;  %v6280_v48 = vpop.f32.mrb[142].mxu0  ;;  %4026 = vmatprep.mubr.bf16.mxu1 %v8242_v13  ;;  %5225 = vmatmul.mubr.msk.bf16.gmra.mrb[164].mxu0 %vm6842_vm12, %v8294_v58  ;;  %v6480_v39 = vld [vmem:[%s9171_s3 + $0x198] sm:$0xff]   ;;  %v3113_v14 = vshrl.u32 %v8284_v0, 16 }
 0x21c   : > { %v2966_v4 = vadd.f32 %v6280_v48, %v8137_v7  ;;  %v2957_v17 = vpop.f32.mrb[143].mxu0  ;;  %5226 = vmatprep.mubr.msk.bf16.mxu0 %vm9626_vm1, %v8303_v16  ;;  %6118 = vmatpush3.bf16.msra.mxu0 %v6476_v59  ;;  %v3047_v7 = vmax.f32 %v2963_v27, 0.0  ;;  %v3110_v33 = vor.u32 %v3108_v22, %v8307_v51  ;;  %v6484_v59 = vld [vmem:[%s9171_s3 + $0x1a0] sm:$0xff]   ;;  %vm9632_vm1 = vsmask.f32 256 }
 0x21d   : > { %v2958_v43 = vadd.f32 %v2957_v17, %v8125_v38  ;;  %6119 = vmatprep.subr.bf16.mxu0 %v6479_v5  ;;  %v3045_v46 = vmax.f32 %v2955_v57, 0.0  ;;  %v3235_v38 = vor.u32 %v3233_v6, %v3089_v36  ;;  %v9629_v57 = vld [vmem:[#allocation4_spill] sm:$0xff] }
 0x21e   : > { %v3048_v12 = vmax.f32 %v2966_v4, 0.0  ;;  %vm9630_vm15 = vnez %v9629_v57  ;;  %v8348_v4 = vsel %vm9632_vm1, %v3099_v11, %v3110_v33  ;;  %v3116_v11 = vshll.u32 %v8284_v0, 16 }
 0x21f   : > { %v3046_v37 = vmax.f32 %v2958_v43, 0.0  ;;  %v8340_v36 = vsel %vm9631_vm7, %v3235_v38, %v3236_v60  ;;  %v3121_v38 = vshrl.u32 %v8279_v3, 16 }
 0x220   : > { %v8323_v44 = vpack.c.bf16 %v3048_v12, %v3047_v7  ;;  %6120 = vmatpush3.bf16.msra.mxu0 %v6480_v39  ;;  %v3238_v12 = vor.u32 %v3236_v60, %v3097_v52  ;;  %v6490_v52 = vld [vmem:[%s9171_s3 + $0x1f8] sm:$0xff]  }
 0x221   : > { %v8330_v9 = vpack.c.bf16 %v3046_v37, %v3045_v46  ;;  %v6283_v5 = vpop.f32.mrb[144].mxu0  ;;  %6121 = vmatprep.subr.bf16.mxu0 %v6483_v34  ;;  %v6488_v34 = vld [vmem:[%s9171_s3 + $0x1f0] sm:$0xff]  }
 0x222   : > { %v2979_v27 = vadd.f32 %v6283_v5, %v8152_v19  ;;  %v2970_v18 = vpop.f32.mrb[145].mxu0  ;;  %5209 = vmatmul.mubr.msk.bf16.gmra.mrb[140].mxu1 %vm9630_vm15, %v8303_v16  ;;  %v8352_v19 = vrot.slane %v3113_v14, 7  ;;  %v6489_v5 = vld [vmem:[%s9171_s3 + $0x1b0] sm:$0xff]  }
 0x223   : > { %v2971_v6 = vadd.f32 %v2970_v18, %v8146_v47  ;;  %v6284_v48 = vpop.f32.mrb[146].mxu0  ;;  %4034 = vmatprep.mubr.bf16.mxu1 %v8237_v23  ;;  %5227 = vmatmul.mubr.msk.bf16.gmra.mrb[168].mxu0 %vm6900_vm9, %v8340_v36  ;;  %v6486_v47 = vld [vmem:[%s9171_s3 + $0x1a8] sm:$0xff]  }
 0x224   : > { %v2982_v17 = vadd.f32 %v6284_v48, %v8155_v41  ;;  %v2973_v39 = vpop.f32.mrb[147].mxu0  ;;  %5228 = vmatprep.mubr.msk.bf16.mxu0 %vm9630_vm15, %v8348_v4  ;;  %6122 = vmatpush3.bf16.msra.mxu0 %v6484_v59  ;;  %v3051_v41 = vmax.f32 %v2979_v27, 0.0  ;;  %v3118_v33 = vor.u32 %v3116_v11, %v8352_v19  ;;  %vm9637_vm15 = vsmask.f32 256 }
 0x225   : > { %v2974_v43 = vadd.f32 %v2973_v39, %v8149_v28  ;;  %6123 = vmatprep.subr.bf16.mxu0 %v6485_v10  ;;  %v3049_v46 = vmax.f32 %v2971_v6, 0.0  ;;  %v3239_v28 = vrot.slane %v3108_v22, 1  ;;  %v9635_v6 = vld [vmem:[#allocation6_spill] sm:$0xff]  ;;  %v3123_v39 = vrot.slane %v3121_v38, 7 }
 0x226   : > { %v3052_v7 = vmax.f32 %v2982_v17, 0.0  ;;  %vm9636_vm1 = vnez %v9635_v6 }
 0x227   : > { %v3050_v37 = vmax.f32 %v2974_v43, 0.0  ;;  %v8385_v22 = vsel %vm9631_vm7, %v3238_v12, %v3239_v28  ;;  %v3242_v12 = vrot.slane %v3116_v11, 1 }
 0x228   : > { %v8370_v59 = vpack.c.bf16 %v3052_v7, %v3051_v41  ;;  %6124 = vmatpush3.bf16.msra.mxu0 %v6486_v47 }
 0x229   : > { %v8375_v10 = vpack.c.bf16 %v3050_v37, %v3049_v46  ;;  %v6287_v27 = vpop.f32.mrb[148].mxu0  ;;  %6125 = vmatprep.subr.bf16.mxu0 %v6488_v34 }
 0x22a   : > { %9633 = vst [vmem:[#allocation16_spill] sm:$0xff] %v8370_v59  ;;  %v2995_v60 = vadd.f32 %v6287_v27, %v8170_v8  ;;  %v2986_v18 = vpop.f32.mrb[149].mxu0  ;;  %5210 = vmatmul.mubr.msk.bf16.gmra.mrb[144].mxu1 %vm9636_vm1, %v8348_v4  ;;  %v8394_v8 = vsel %vm9637_vm15, %v8307_v51, %v3118_v33  ;;  %v3124_v51 = vshll.u32 %v8279_v3, 16  ;;  %v9328_v33 = vshrl.u32 %v8330_v9, 16 }
 0x22b   : > { %9634 = vst [vmem:[#allocation5_spill] sm:$0xff] %v8375_v10  ;;  %v2987_v48 = vadd.f32 %v2986_v18, %v8164_v2  ;;  %v6288_v17 = vpop.f32.mrb[150].mxu0  ;;  %4042 = vmatprep.mubr.bf16.mxu1 %v8284_v0  ;;  %5229 = vmatmul.mubr.msk.bf16.gmra.mrb[172].mxu0 %vm9618_vm14, %v8385_v22  ;;  %v6491_v2 = vld [vmem:[%s9171_s3 + $0x1b8] sm:$0xff]  }
 0x22c   : > { %v2998_v47 = vadd.f32 %v6288_v17, %v8173_v63  ;;  %v2989_v43 = vpop.f32.mrb[151].mxu0  ;;  %5230 = vmatprep.mubr.msk.bf16.mxu0 %vm9636_vm1, %v8394_v8  ;;  %6126 = vmatpush3.bf16.msra.mxu0 %v6489_v5  ;;  %v3055_v41 = vmax.f32 %v2995_v60, 0.0  ;;  %v3126_v37 = vor.u32 %v3124_v51, %v3123_v39  ;;  %v3241_v5 = vor.u32 %v3239_v28, %v3105_v53  ;;  %v9640_v60 = vld [vmem:[#allocation8_spill] sm:$0xff] }
 0x22d   : > { %v2990_v34 = vadd.f32 %v2989_v43, %v8167_v35  ;;  %6127 = vmatprep.subr.bf16.mxu0 %v6490_v52  ;;  %v3053_v46 = vmax.f32 %v2987_v48, 0.0  ;;  %vm9641_vm15 = vnez %v9640_v60  ;;  %vm9643_vm1 = vsmask.f32 256 }
 0x22e   : > { %v3056_v7 = vmax.f32 %v2998_v47, 0.0  ;;  %v8419_v11 = vsel %vm9631_vm7, %v3241_v5, %v3242_v12  ;;  %v3131_v28 = vrot.slane %v9328_v33, 7  ;;  %v3137_v5 = vshrl.u32 %v8323_v44, 16 }
 0x22f   : > { %v3054_v63 = vmax.f32 %v2990_v34, 0.0  ;;  %v3132_v34 = vshll.u32 %v8330_v9, 16 }
 0x230   : > { %v8408_v27 = vpack.c.bf16 %v3056_v7, %v3055_v41  ;;  %6128 = vmatpush3.bf16.msra.mxu0 %v6491_v2 }
 0x231   : > { %v8412_v18 = vpack.c.bf16 %v3054_v63, %v3053_v46  ;;  %v6291_v35 = vpop.f32.mrb[152].mxu0 }
 0x232   : > { %9638 = vst [vmem:[#allocation11_spill] sm:$0xff] %v8408_v27  ;;  %v3011_v17 = vadd.f32 %v6291_v35, %v8188_v24  ;;  %v3002_v52 = vpop.f32.mrb[153].mxu0  ;;  %5211 = vmatmul.mubr.msk.bf16.gmra.mrb[148].mxu1 %vm9641_vm15, %v8394_v8  ;;  %v8428_v24 = vsel %vm9643_vm1, %v8352_v19, %v3126_v37  ;;  %v3244_v19 = vor.u32 %v3242_v12, %v3113_v14  ;;  %v3245_v35 = vrot.slane %v3124_v51, 1  ;;  %v9648_v51 = vld [vmem:[#allocation12_spill] sm:$0xff] }
 0x233   : > { %9639 = vst [vmem:[#allocation21_spill] sm:$0xff] %v8412_v18  ;;  %v3003_v48 = vadd.f32 %v3002_v52, %v8182_v49  ;;  %v6292_v47 = vpop.f32.mrb[154].mxu0  ;;  %4050 = vmatprep.mubr.bf16.mxu1 %v8279_v3  ;;  %5231 = vmatmul.mubr.msk.bf16.gmra.mrb[176].mxu0 %vm9619_vm3, %v8419_v11  ;;  %v3134_v37 = vor.u32 %v3132_v34, %v3131_v28 }
 0x234   : > { %v3014_v43 = vadd.f32 %v6292_v47, %v8191_v1  ;;  %v3005_v2 = vpop.f32.mrb[155].mxu0  ;;  %5232 = vmatprep.mubr.msk.bf16.mxu0 %vm9641_vm15, %v8428_v24  ;;  %v3059_v41 = vmax.f32 %v3011_v17, 0.0  ;;  %v9646_v17 = vld [vmem:[#allocation13_spill] sm:$0xff]  ;;  %v8450_v14 = vsel %vm9631_vm7, %v3244_v19, %v3245_v35  ;;  %vm9649_vm15 = vsmask.f32 256 }
 0x235   : > { %v3006_v49 = vadd.f32 %v3005_v2, %v8185_v40  ;;  %v3057_v46 = vmax.f32 %v3003_v48, 0.0  ;;  %vm9647_vm1 = vnez %v9646_v17 }
 0x236   : > { %v3060_v7 = vmax.f32 %v3014_v43, 0.0  ;;  %v8458_v43 = vsel %vm9649_vm15, %v3123_v39, %v3134_v37  ;;  %v3145_v39 = vshrl.u32 %v8375_v10, 16  ;;  %vm9652_vm15 = vnez %v9651_v26  ;;  %v9664_v26 = vld [vmem:[#allocation27_spill] sm:$0xff] }
 0x237   : > { %v3058_v63 = vmax.f32 %v3006_v49, 0.0 }
 0x238   : > { %v8441_v1 = vpack.c.bf16 %v3060_v7, %v3059_v41  ;;  %v3140_v7 = vshll.u32 %v8323_v44, 16 }
 0x239   : > { %v8443_v52 = vpack.c.bf16 %v3058_v63, %v3057_v46  ;;  %v6295_v47 = vpop.f32.mrb[156].mxu0  ;;  %v3248_v63 = vrot.slane %v3132_v34, 1 }
 0x23a   : > { %9644 = vst [vmem:[#allocation7_spill] sm:$0xff] %v8441_v1  ;;  %v3027_v40 = vadd.f32 %v6295_v47, %v8209_v20  ;;  %v3018_v2 = vpop.f32.mrb[157].mxu0  ;;  %5212 = vmatmul.mubr.msk.bf16.gmra.mrb[152].mxu1 %vm9647_vm1, %v8428_v24  ;;  %v3139_v20 = vrot.slane %v3137_v5, 7 }
 0x23b   : > { %9645 = vst [vmem:[#allocation15_spill] sm:$0xff] %v8443_v52  ;;  %v3019_v12 = vadd.f32 %v3018_v2, %v8200_v55  ;;  %v6296_v48 = vpop.f32.mrb[158].mxu0  ;;  %4058 = vmatprep.mubr.bf16.mxu1 %v8330_v9  ;;  %5233 = vmatmul.mubr.msk.bf16.gmra.mrb[180].mxu0 %vm9620_vm10, %v8450_v14  ;;  %vm9655_vm10 = vsmask.f32 256 }
 0x23c   : > { %v3030_v49 = vadd.f32 %v6296_v48, %v8213_v50  ;;  %v3021_v41 = vpop.f32.mrb[159].mxu0  ;;  %5234 = vmatprep.mubr.msk.bf16.mxu0 %vm9647_vm1, %v8458_v43  ;;  %v3063_v19 = vmax.f32 %v3027_v40, 0.0  ;;  %v3142_v33 = vor.u32 %v3140_v7, %v3139_v20  ;;  %v3247_v50 = vor.u32 %v3245_v35, %v3121_v38  ;;  %v9653_v40 = vld [vmem:[#allocation17_spill] sm:$0xff] }
 0x23d   : > { %v3022_v55 = vadd.f32 %v3021_v41, %v8203_v45  ;;  %v3061_v47 = vmax.f32 %v3019_v12, 0.0  ;;  %vm9654_vm1 = vnez %v9653_v40  ;;  %v3147_v38 = vrot.slane %v3145_v39, 7 }
 0x23e   : > { %v3064_v46 = vmax.f32 %v3030_v49, 0.0  ;;  %v8477_v45 = vsel %vm9631_vm7, %v3247_v50, %v3248_v63  ;;  %v8485_v12 = vsel %vm9655_vm10, %v3131_v28, %v3142_v33  ;;  %v3148_v41 = vshll.u32 %v8375_v10, 16 }
 0x23f   : > { %v3062_v2 = vmax.f32 %v3022_v55, 0.0  ;;  %9656 = vst [vmem:[#allocation9_spill] sm:$0xff] %v8485_v12  ;;  %v9657_v55 = vshrl.u32 %v8330_v9, 16 }
 0x240   : > { %v8467_v37 = vpack.c.bf16 %v3064_v46, %v3063_v19  ;;  %v3150_v28 = vor.u32 %v3148_v41, %v3147_v38  ;;  %v3153_v46 = vshrl.u32 %v8370_v59, 16 }
 0x241   : > { %v8471_v48 = vpack.c.bf16 %v3062_v2, %v3061_v47  ;;  %v3250_v19 = vor.u32 %v3248_v63, %v9657_v55  ;;  %v3251_v47 = vrot.slane %v3140_v7, 1  ;;  %v9659_v2 = vld [vmem:[#allocation23_spill] sm:$0xff]  ;;  %v9661_v63 = vld [vmem:[#allocation22_spill] sm:$0xff]  ;;  %v3156_v7 = vshll.u32 %v8370_v59, 16 }
 0x242   : > { %5213 = vmatmul.mubr.msk.bf16.gmra.mrb[156].mxu1 %vm9652_vm15, %v8458_v43  ;;  %v9333_v34 = vshll.u32 %v8467_v37, 16  ;;  %v9334_v35 = vshrl.u32 %v8467_v37, 16  ;;  %vm9660_vm10 = vnez %v9659_v2 }
 0x243   : > { %9650 = vst [vmem:[#allocation25_spill] sm:$0xff] %v8471_v48  ;;  %4066 = vmatprep.mubr.bf16.mxu1 %v8323_v44  ;;  %5235 = vmatmul.mubr.msk.bf16.gmra.mrb[184].mxu0 %vm9654_vm1, %v8477_v45  ;;  %v8508_v50 = vsel %vm9631_vm7, %v3250_v19, %v3251_v47  ;;  %v3161_v19 = vshrl.u32 %v8412_v18, 16  ;;  %vm9665_vm7 = vnez %v9664_v26 }
 0x244   : > { %5236 = vmatprep.mubr.msk.bf16.mxu0 %vm9652_vm15, %v8485_v12  ;;  %v8493_v49 = vrot.slane %v9333_v34, 1  ;;  %vm9662_vm15 = vsmask.f32 256  ;;  %v3155_v34 = vrot.slane %v3153_v46, 7 }
 0x245   : > { %v8515_v55 = vsel %vm9662_vm15, %v3139_v20, %v3150_v28 }
 0x246   : > { %v8501_v33 = vor.u32 %v9334_v35, %v8493_v49  ;;  %9663 = vst [vmem:[#allocation14_spill] sm:$0xff] %v8515_v55  ;;  %v3254_v35 = vrot.slane %v3148_v41, 1  ;;  %v3158_v56 = vor.u32 %v3156_v7, %v3155_v34  ;;  %v3163_v41 = vrot.slane %v3161_v19, 7 }
 0x248   : > { %9658 = vst [vmem:[#allocation19_spill] sm:$0xff] %v8501_v33  ;;  %v3253_v33 = vor.u32 %v3251_v47, %v3137_v5  ;;  %v8533_v28 = vsel %vm9662_vm15, %v3147_v38, %v3158_v56  ;;  %v3164_v5 = vshll.u32 %v8412_v18, 16  ;;  %v3256_v47 = vor.u32 %v3254_v35, %v3145_v39 }
 0x249   : > { %9668 = vst [vmem:[#allocation24_spill] sm:$0xff] %v8533_v28 }
 0x24a   : > { %5214 = vmatmul.mubr.msk.bf16.gmra.mrb[160].mxu1 %vm9660_vm10, %v8485_v12  ;;  %v3166_v2 = vor.u32 %v3164_v5, %v3163_v41 }
 0x24b   : > { %4074 = vmatprep.mubr.bf16.mxu1 %v8375_v10  ;;  %5237 = vmatmul.mubr.msk.bf16.gmra.mrb[188].mxu0 %vm9622_vm8, %v8508_v50  ;;  %vm9666_vm8 = vsmask.f32 7424 }
 0x24c   : > { %5238 = vmatprep.mubr.msk.bf16.mxu0 %vm9660_vm10, %v8515_v55  ;;  %v8526_v10 = vsel %vm9666_vm8, %v3253_v33, %v3254_v35  ;;  %v3169_v33 = vshrl.u32 %v8408_v27, 16  ;;  %vm9671_vm10 = vsmask.f32 7424  ;;  %v8551_v39 = vsel %vm9662_vm15, %v3155_v34, %v3166_v2  ;;  %v9676_v2 = vld [vmem:[#allocation32_spill] sm:$0xff] }
 0x24d   : > { %vm9678_vm15 = vsmask.f32 7424 }
 0x24e   : > { %v3171_v35 = vrot.slane %v3169_v33, 7 }
 0x252   : > { %5215 = vmatmul.mubr.msk.bf16.gmra.mrb[164].mxu1 %vm9665_vm7, %v8515_v55  ;;  %v3257_v55 = vrot.slane %v3156_v7, 1  ;;  %v5793_v56 = vpop.f32.mrb[128].mxu1 }
 0x253   : > { %4082 = vmatprep.mubr.bf16.mxu1 %v8370_v59  ;;  %5239 = vmatmul.mubr.msk.bf16.gmra.mrb[192].mxu0 %vm9593_vm2, %v8526_v10  ;;  %v9669_v59 = vld [vmem:[#allocation30_spill] sm:$0xff]  ;;  %v5794_v26 = vpop.f32.mrb[129].mxu1 }
 0x254   : > { %5240 = vmatprep.mubr.msk.bf16.mxu0 %vm9665_vm7, %v8533_v28  ;;  %vm9670_vm8 = vnez %v9669_v59  ;;  %v8544_v17 = vsel %vm9671_vm10, %v3256_v47, %v3257_v55  ;;  %v8556_v7 = vadd.f32 %v5794_v26, %v5793_v56  ;;  %v5796_v47 = vpop.f32.mrb[130].mxu1  ;;  %v3259_v34 = vor.u32 %v3257_v55, %v3153_v46  ;;  %v9679_v26 = vld [vmem:[#allocation31_spill] sm:$0xff] }
 0x255   : > { %9672 = vst [vmem:[#allocation20_spill] sm:$0xff] %v8544_v17  ;;  %v5797_v12 = vpop.f32.mrb[131].mxu1  ;;  %vm9677_vm10 = vnez %v9676_v2  ;;  %v3180_v46 = vshll.u32 %v8443_v52, 16  ;;  %vm9684_vm7 = vsmask.f32 7424 }
 0x256   : > { %9674 = vst [vmem:[#allocation29_spill] sm:$0xff] %v8556_v7  ;;  %v8559_v20 = vadd.f32 %v5797_v12, %v5796_v47  ;;  %v3185_v47 = vshrl.u32 %v8441_v1, 16 }
 0x258   : > { %9675 = vst [vmem:[#allocation33_spill] sm:$0xff] %v8559_v20  ;;  %v9682_v20 = vld [vmem:[#allocation35_spill] sm:$0xff] }
 0x25a   : > { %5216 = vmatmul.mubr.msk.bf16.gmra.mrb[168].mxu1 %vm9670_vm8, %v8533_v28  ;;  %v3172_v28 = vshll.u32 %v8408_v27, 16 }
 0x25b   : > { %4090 = vmatprep.mubr.bf16.mxu1 %v8412_v18  ;;  %5241 = vmatmul.mubr.msk.bf16.gmra.mrb[196].mxu0 %vm9598_vm4, %v8544_v17  ;;  %v3260_v18 = vrot.slane %v3164_v5, 1  ;;  %v3177_v17 = vshrl.u32 %v8443_v52, 16 }
 0x25c   : > { %5242 = vmatprep.mubr.msk.bf16.mxu0 %vm9670_vm8, %v8551_v39  ;;  %v3174_v38 = vor.u32 %v3172_v28, %v3171_v35  ;;  %vm9680_vm8 = vsmask.f32 256 }
 0x25d   : > { %v8566_v59 = vsel %vm9678_vm15, %v3259_v34, %v3260_v18  ;;  %v3179_v5 = vrot.slane %v3177_v17, 7  ;;  %v3262_v55 = vor.u32 %v3260_v18, %v3161_v19  ;;  %v3263_v34 = vrot.slane %v3172_v28, 1 }
 0x25e   : > { %v8573_v12 = vsel %vm9680_vm8, %v3163_v41, %v3174_v38  ;;  %vm9683_vm15 = vnez %v9682_v20  ;;  %v3187_v18 = vrot.slane %v3185_v47, 7  ;;  %v3188_v19 = vshll.u32 %v8441_v1, 16 }
 0x25f   : > { %9681 = vst [vmem:[#allocation34_spill] sm:$0xff] %v8573_v12  ;;  %v3182_v56 = vor.u32 %v3180_v46, %v3179_v5  ;;  %v8584_v7 = vsel %vm9684_vm7, %v3262_v55, %v3263_v34  ;;  %v3266_v28 = vrot.slane %v3180_v46, 1  ;;  %v3193_v55 = vshrl.u32 %v8471_v48, 16 }
 0x260   : > { %v3190_v2 = vor.u32 %v3188_v19, %v3187_v18 }
 0x261   : > { %v8591_v38 = vsel %vm9680_vm8, %v3171_v35, %v3182_v56  ;;  %v9690_v35 = vld [vmem:[#allocation38_spill] sm:$0xff]  ;;  %v3195_v46 = vrot.slane %v3193_v55, 7 }
 0x262   : > { %5217 = vmatmul.mubr.msk.bf16.gmra.mrb[172].mxu1 %vm9677_vm10, %v8551_v39  ;;  %9686 = vst [vmem:[#allocation4_spill] sm:$0xff] %v8591_v38  ;;  %v8609_v56 = vsel %vm9680_vm8, %v3179_v5, %v3190_v2  ;;  %v9695_v2 = vld [vmem:[#allocation40_spill] sm:$0xff] }
 0x263   : > { %4098 = vmatprep.mubr.bf16.mxu1 %v8408_v27  ;;  %5243 = vmatmul.mubr.msk.bf16.gmra.mrb[200].mxu0 %vm7414_vm11, %v8566_v59  ;;  %9691 = vst [vmem:[#allocation6_spill] sm:$0xff] %v8609_v56  ;;  %vm9696_vm8 = vnez %v9695_v2 }
 0x264   : > { %5244 = vmatprep.mubr.msk.bf16.mxu0 %vm9677_vm10, %v8573_v12  ;;  %vm9689_vm10 = vsmask.f32 7424 }
 0x26a   : > { %5218 = vmatmul.mubr.msk.bf16.gmra.mrb[176].mxu1 %vm9683_vm15, %v8573_v12  ;;  %v3265_v12 = vor.u32 %v3263_v34, %v3169_v33  ;;  %v3196_v33 = vshll.u32 %v8471_v48, 16  ;;  %v3268_v34 = vor.u32 %v3266_v28, %v3177_v17  ;;  %v9698_v17 = vshrl.u32 %v8467_v37, 16 }
 0x26b   : > { %4106 = vmatprep.mubr.bf16.mxu1 %v8443_v52  ;;  %5245 = vmatmul.mubr.msk.bf16.gmra.mrb[204].mxu0 %vm7495_vm6, %v8584_v7  ;;  %v9687_v52 = vld [vmem:[#allocation37_spill] sm:$0xff] }
 0x26c   : > { %5246 = vmatprep.mubr.msk.bf16.mxu0 %vm9683_vm15, %v8591_v38  ;;  %vm9688_vm7 = vnez %v9687_v52  ;;  %v8602_v27 = vsel %vm9689_vm10, %v3265_v12, %v3266_v28  ;;  %v3198_v20 = vor.u32 %v3196_v33, %v3195_v46  ;;  %v3269_v12 = vrot.slane %v3188_v19, 1 }
 0x26d   : > { %vm9694_vm15 = vsmask.f32 7424  ;;  %v8630_v28 = vrot.slane %v9698_v17, 7  ;;  %v3272_v19 = vrot.slane %v3196_v33, 1 }
 0x272   : > { %5219 = vmatmul.mubr.msk.bf16.gmra.mrb[180].mxu1 %vm9688_vm7, %v8591_v38  ;;  %v9692_v38 = vld [vmem:[#allocation39_spill] sm:$0xff] }
 0x273   : > { %4114 = vmatprep.mubr.bf16.mxu1 %v8441_v1  ;;  %5247 = vmatmul.mubr.msk.bf16.gmra.mrb[208].mxu0 %vm7538_vm0, %v8602_v27  ;;  %vm9693_vm10 = vnez %v9692_v38  ;;  %v8619_v1 = vsel %vm9694_vm15, %v3268_v34, %v3269_v12  ;;  %vm9697_vm0 = vsmask.f32 256  ;;  %v9699_v34 = vshll.u32 %v8467_v37, 16 }
 0x274   : > { %5248 = vmatprep.mubr.msk.bf16.mxu0 %vm9688_vm7, %v8609_v56  ;;  %v8626_v5 = vsel %vm9697_vm0, %v3187_v18, %v3198_v20  ;;  %vm9702_vm0 = vsmask.f32 7424  ;;  %v9703_v18 = vld [vmem:[#allocation42_spill] sm:$0xff] }
 0x275   : > { %v3316_v52 = vor.u32 %v8630_v28, %v9699_v34  ;;  %vm9704_vm7 = vnez %v9703_v18 }
 0x27a   : > { %5220 = vmatmul.mubr.msk.bf16.gmra.mrb[184].mxu1 %vm9693_vm10, %v8609_v56  ;;  %v9700_v56 = vld [vmem:[#allocation41_spill] sm:$0xff] }
 0x27b   : > { %4122 = vmatprep.mubr.bf16.mxu1 %v8471_v48  ;;  %5249 = vmatmul.mubr.msk.bf16.gmra.mrb[212].mxu0 %vm9696_vm8, %v8619_v1  ;;  %v3271_v48 = vor.u32 %v3269_v12, %v3185_v47  ;;  %vm9701_vm15 = vnez %v9700_v56  ;;  %v3274_v47 = vor.u32 %v3272_v19, %v3193_v55  ;;  %v8781_v55 = vld [vmem:[%s9172_s4] ss:$0 sm:$0xff] }
 0x27c   : > { %5250 = vmatprep.mubr.msk.bf16.mxu0 %vm9693_vm10, %v8626_v5  ;;  %vm9705_vm10 = vsmask.f32 256 }
 0x27d   : > { %v8642_v20 = vsel %vm9702_vm0, %v3271_v48, %v3272_v19  ;;  %v8651_v33 = vsel %vm9705_vm10, %v3195_v46, %v3316_v52  ;;  %v6492_v48 = vld [vmem:[%s9171_s3 + $0x208] sm:$0xff]   ;;  %v8662_v12 = vsel %vm9702_vm0, %v3274_v47, %v8493_v49  ;;  %v6494_v52 = vld [vmem:[%s9171_s3 + $0x218] sm:$0xff]   ;;  %vm9709_vm10 = vnez %v9397_v62 }
 0x27e   : > { %vm9710_vm0 = vnez %v9648_v51  ;;  %v9737_v49 = vld [vmem:[#allocation15_spill] sm:$0xff] }
 0x282   : > { %5221 = vmatmul.mubr.msk.bf16.gmra.mrb[188].mxu1 %vm9701_vm15, %v8626_v5 }
 0x283   : > { %5251 = vmatmul.mubr.msk.bf16.gmra.mrb[216].mxu0 %vm9704_vm7, %v8642_v20  ;;  %5254 = vmatprep.mubr.msk.bf16.mxu1 %vm6771_vm5, %v8294_v58  ;;  %v9706_v58 = vld [vmem:[#allocation43_spill] sm:$0xff] }
 0x284   : > { %5252 = vmatprep.mubr.msk.bf16.mxu0 %vm9701_vm15, %v8651_v33  ;;  %vm9707_vm5 = vnez %v9706_v58 }
 0x28a   : > { %4325 = vmatmul.mubr.bf16.vlgmr.msra.gmra.mrb[192].mxu1 %v8215_v30  ;;  %v6493_v30 = vld [vmem:[%s9171_s3 + $0x210] sm:$0xff]  }
 0x28b   : > { %5253 = vmatmul.mubr.msk.bf16.gmra.mrb[220].mxu0 %vm9707_vm5, %v8662_v12  ;;  %5255 = vmatprep.mubr.msk.bf16.mxu1 %vm6842_vm12, %v8340_v36 }
 0x28c   : > { %6298 = vmatpush3.bf16.msra.mxu1 %v8222_v31  ;;  %4485 = vmatprep.mubr.bf16.mxu0 %v8211_v42  ;;  %v6495_v31 = vld [vmem:[%s9171_s3 + $0x220] sm:$0xff]  }
 0x28d   : > { %6299 = vmatprep.subr.bf16.mxu1 %v6492_v48 }
 0x290   : > { %6300 = vmatpush3.bf16.msra.mxu1 %v6492_v48  ;;  %v9738_v48 = vld [vmem:[#allocation29_spill] sm:$0xff] }
 0x291   : > { %6301 = vmatprep.subr.bf16.mxu1 %v6493_v30 }
 0x292   : > { %4333 = vmatmul.mubr.bf16.gmra.mrb[196].mxu1 %v8211_v42  ;;  %v6496_v42 = vld [vmem:[%s9171_s3 + $0x228] sm:$0xff]  }
 0x293   : > { %5256 = vmatprep.mubr.msk.bf16.mxu1 %vm6900_vm9, %v8385_v22  ;;  %5270 = vmatmul.mubr.msk.bf16.vlgmr.msra.gmra.mrb[224].mxu0 %vm9624_vm13, %v8261_v54  ;;  %vm9708_vm13 = vnez %v9389_v32  ;;  %v9715_v32 = vld [vmem:[#allocation20_spill] sm:$0xff]  ;;  %v9718_v54 = vld [vmem:[#allocation13_spill] sm:$0xff] }
 0x294   : > { %4493 = vmatprep.mubr.bf16.mxu0 %v8242_v13  ;;  %6302 = vmatpush3.bf16.msra.mxu1 %v6493_v30  ;;  %v4005_v30 = vadd.f32 %v9738_v48, %v8781_v55 }
 0x295   : > { %6303 = vmatprep.subr.bf16.mxu1 %v6494_v52 }
 0x298   : > { %6304 = vmatpush3.bf16.msra.mxu1 %v6494_v52 }
 0x299   : > { %6305 = vmatprep.subr.bf16.mxu1 %v6495_v31 }
 0x29a   : > { %4341 = vmatmul.mubr.bf16.gmra.mrb[200].mxu1 %v8242_v13  ;;  %v6498_v13 = vld [vmem:[%s9171_s3 + $0x238] sm:$0xff]  }
 0x29b   : > { %5257 = vmatprep.mubr.msk.bf16.mxu1 %vm9618_vm14, %v8419_v11  ;;  %5271 = vmatmul.mubr.msk.bf16.gmra.mrb[228].mxu0 %vm9708_vm13, %v8303_v16  ;;  %vm9711_vm13 = vnez %v9629_v57  ;;  %v9722_v16 = vld [vmem:[#allocation14_spill] sm:$0xff]  ;;  %v9726_v57 = vld [vmem:[#allocation24_spill] sm:$0xff] }
 0x29c   : > { %4501 = vmatprep.mubr.bf16.mxu0 %v8237_v23  ;;  %6306 = vmatpush3.bf16.msra.mxu1 %v6495_v31 }
 0x29d   : > { %6307 = vmatprep.subr.bf16.mxu1 %v6496_v42 }
 0x2a0   : > { %6308 = vmatpush3.bf16.msra.mxu1 %v6496_v42 }
 0x2a1   : > { %6309 = vmatprep.subr.bf16.mxu1 %v6497_v21 }
 0x2a2   : > { %4349 = vmatmul.mubr.bf16.gmra.mrb[204].mxu1 %v8237_v23  ;;  %v9717_v23 = vld [vmem:[#allocation9_spill] sm:$0xff] }
 0x2a3   : > { %5258 = vmatprep.mubr.msk.bf16.mxu1 %vm9619_vm3, %v8450_v14  ;;  %5272 = vmatmul.mubr.msk.bf16.gmra.mrb[232].mxu0 %vm9709_vm10, %v8348_v4  ;;  %vm9712_vm10 = vnez %v9635_v6  ;;  %v9727_v4 = vld [vmem:[#allocation23_spill] sm:$0xff]  ;;  %v9729_v6 = vld [vmem:[#allocation21_spill] sm:$0xff] }
 0x2a4   : > { %4509 = vmatprep.mubr.bf16.mxu0 %v8284_v0  ;;  %6310 = vmatpush3.bf16.msra.mxu1 %v6497_v21 }
 0x2a5   : > { %6311 = vmatprep.subr.bf16.mxu1 %v6498_v13 }
 0x2a8   : > { %6312 = vmatpush3.bf16.msra.mxu1 %v6498_v13 }
 0x2aa   : > { %4357 = vmatmul.mubr.bf16.gmra.mrb[208].mxu1 %v8284_v0 }
 0x2ab   : > { %5259 = vmatprep.mubr.msk.bf16.mxu1 %vm9710_vm0, %v8477_v45  ;;  %5273 = vmatmul.mubr.msk.bf16.gmra.mrb[236].mxu0 %vm9711_vm13, %v8394_v8  ;;  %vm9713_vm0 = vnez %v9661_v63  ;;  %vm9714_vm13 = vnez %v9640_v60  ;;  %v9730_v8 = vld [vmem:[#allocation27_spill] sm:$0xff] }
 0x2ac   : > { %4517 = vmatprep.mubr.bf16.mxu0 %v8279_v3  ;;  %v9732_v60 = vld [vmem:[#allocation11_spill] sm:$0xff] }
 0x2b2   : > { %4365 = vmatmul.mubr.bf16.gmra.mrb[212].mxu1 %v8279_v3  ;;  %v9720_v3 = vld [vmem:[#allocation5_spill] sm:$0xff] }
 0x2b3   : > { %5260 = vmatprep.mubr.msk.bf16.mxu1 %vm9654_vm1, %v8508_v50  ;;  %5274 = vmatmul.mubr.msk.bf16.gmra.mrb[240].mxu0 %vm9712_vm10, %v8428_v24  ;;  %vm9719_vm10 = vnez %v9718_v54  ;;  %v9734_v24 = vld [vmem:[#allocation34_spill] sm:$0xff] }
 0x2b4   : > { %4525 = vmatprep.mubr.bf16.mxu0 %v8330_v9 }
 0x2ba   : > { %4373 = vmatmul.mubr.bf16.gmra.mrb[216].mxu1 %v8330_v9  ;;  %v9723_v9 = vld [vmem:[#allocation18_spill] sm:$0xff] }
 0x2bb   : > { %5261 = vmatprep.mubr.msk.bf16.mxu1 %vm9713_vm0, %v8526_v10  ;;  %5275 = vmatmul.mubr.msk.bf16.gmra.mrb[244].mxu0 %vm9714_vm13, %v8458_v43  ;;  %vm9724_vm13 = vnez %v9723_v9  ;;  %v9735_v43 = vld [vmem:[#allocation30_spill] sm:$0xff]  ;;  %v9740_v9 = vld [vmem:[#allocation4_spill] sm:$0xff] }
 0x2bc   : > { %4533 = vmatprep.mubr.bf16.mxu0 %v8323_v44 }
 0x2c2   : > { %4381 = vmatmul.mubr.bf16.gmra.mrb[220].mxu1 %v8323_v44  ;;  %v9725_v44 = vld [vmem:[#allocation16_spill] sm:$0xff] }
 0x2c3   : > { %5262 = vmatprep.mubr.msk.bf16.mxu1 %vm9593_vm2, %v9715_v32  ;;  %5276 = vmatmul.mubr.msk.bf16.gmra.mrb[248].mxu0 %vm9719_vm10, %v9717_v23  ;;  %vm9728_vm10 = vnez %v9727_v4  ;;  %v9739_v23 = vld [vmem:[#allocation33_spill] sm:$0xff]  ;;  %v9743_v4 = vld [vmem:[#allocation7_spill] sm:$0xff] }
 0x2c4   : > { %4541 = vmatprep.mubr.bf16.mxu0 %v9720_v3  ;;  %v4008_v54 = vadd.f32 %v9739_v23, %v8781_v55  ;;  %v9747_v23 = vld [vmem:[#allocation25_spill] sm:$0xff] }
 0x2ca   : > { %4389 = vmatmul.mubr.bf16.gmra.mrb[224].mxu1 %v9720_v3 }
 0x2cb   : > { %5263 = vmatprep.mubr.msk.bf16.mxu1 %vm9598_vm4, %v8566_v59  ;;  %5277 = vmatmul.mubr.msk.bf16.gmra.mrb[252].mxu0 %vm9724_vm13, %v9722_v16  ;;  %vm9731_vm13 = vnez %v9730_v8 }
 0x2cc   : > { %4549 = vmatprep.mubr.bf16.mxu0 %v9725_v44 }
 0x2d2   : > { %4397 = vmatmul.mubr.bf16.gmra.mrb[228].mxu1 %v9725_v44  ;;  %v9741_v44 = vld [vmem:[#allocation32_spill] sm:$0xff] }
 0x2d3   : > { %5264 = vmatprep.mubr.msk.bf16.mxu1 %vm7414_vm11, %v8584_v7  ;;  %5278 = vmatmul.mubr.msk.bf16.gmra.mrb[0].mxu0 %vm9728_vm10, %v9726_v57  ;;  %vm9733_vm11 = vnez %v9690_v35  ;;  %vm9736_vm10 = vnez %v9735_v43 }
 0x2d4   : > { %4557 = vmatprep.mubr.bf16.mxu0 %v9729_v6 }
 0x2da   : > { %4405 = vmatmul.mubr.bf16.gmra.mrb[232].mxu1 %v9729_v6 }
 0x2db   : > { %5265 = vmatprep.mubr.msk.bf16.mxu1 %vm7495_vm6, %v8602_v27  ;;  %5279 = vmatmul.mubr.msk.bf16.gmra.mrb[4].mxu0 %vm9731_vm13, %v8551_v39  ;;  %vm9742_vm13 = vnez %v9741_v44 }
 0x2dc   : > { %4565 = vmatprep.mubr.bf16.mxu0 %v9732_v60 }
 0x2e2   : > { %4413 = vmatmul.mubr.bf16.gmra.mrb[236].mxu1 %v9732_v60 }
 0x2e3   : > { %5266 = vmatprep.mubr.msk.bf16.mxu1 %vm9733_vm11, %v8619_v1  ;;  %5280 = vmatmul.mubr.msk.bf16.gmra.mrb[8].mxu0 %vm9736_vm10, %v9734_v24 }
 0x2e4   : > { %4573 = vmatprep.mubr.bf16.mxu0 %v9737_v49 }
 0x2e5   : > { %v5799_v39 = vpop.f32.mrb[132].mxu1 }
 0x2e6   : > { %v5800_v46 = vpop.f32.mrb[133].mxu1  ;;  %v5905_v17 = vpop.f32.mrb[160].mxu0 }
 0x2e7   : > { %v5801_v19 = vadd.f32 %v5800_v46, %v5799_v39  ;;  %v5802_v34 = vpop.f32.mrb[134].mxu1  ;;  %v5906_v47 = vpop.f32.mrb[161].mxu0 }
 0x2e8   : > { %v5907_v52 = vadd.f32 %v5906_v47, %v5905_v17  ;;  %v5803_v31 = vpop.f32.mrb[135].mxu1  ;;  %v5908_v42 = vpop.f32.mrb[162].mxu0 }
 0x2e9   : > { %v5804_v21 = vadd.f32 %v5803_v31, %v5802_v34  ;;  %v5909_v13 = vpop.f32.mrb[163].mxu0 }
 0x2ea   : > { %v8787_v3 = vadd.f32 %v5907_v52, %v4005_v30  ;;  %v5910_v16 = vadd.f32 %v5909_v13, %v5908_v42  ;;  %4421 = vmatmul.mubr.bf16.gmra.mrb[240].mxu1 %v9737_v49  ;;  %v4013_v49 = vadd.f32 %v5801_v19, %v8781_v55  ;;  %v9744_v42 = vld [vmem:[#allocation6_spill] sm:$0xff]  ;;  %v9745_v13 = vld [vmem:[#allocation35_spill] sm:$0xff] }
 0x2eb   : > { %5267 = vmatprep.mubr.msk.bf16.mxu1 %vm9696_vm8, %v8642_v20  ;;  %5281 = vmatmul.mubr.msk.bf16.gmra.mrb[12].mxu0 %vm9742_vm13, %v9740_v9  ;;  %v4016_v30 = vadd.f32 %v5804_v21, %v8781_v55  ;;  %vm9746_vm10 = vnez %v9745_v13 }
 0x2ec   : > { %v8796_v57 = vadd.f32 %v5910_v16, %v4008_v54  ;;  %4581 = vmatprep.mubr.bf16.mxu0 %v9743_v4 }
 0x2ed   : > { %v5805_v6 = vpop.f32.mrb[136].mxu1 }
 0x2ee   : > { %v5806_v8 = vpop.f32.mrb[137].mxu1  ;;  %v5911_v60 = vpop.f32.mrb[164].mxu0 }
 0x2ef   : > { %v5807_v24 = vadd.f32 %v5806_v8, %v5805_v6  ;;  %v5808_v43 = vpop.f32.mrb[138].mxu1  ;;  %v5912_v39 = vpop.f32.mrb[165].mxu0 }
 0x2f0   : > { %v5913_v46 = vadd.f32 %v5912_v39, %v5911_v60  ;;  %v5809_v17 = vpop.f32.mrb[139].mxu1  ;;  %v5914_v34 = vpop.f32.mrb[166].mxu0 }
 0x2f1   : > { %v5810_v47 = vadd.f32 %v5809_v17, %v5808_v43  ;;  %v5915_v48 = vpop.f32.mrb[167].mxu0 }
 0x2f2   : > { %v8801_v52 = vadd.f32 %v5913_v46, %v4013_v49  ;;  %v5916_v31 = vadd.f32 %v5915_v48, %v5914_v34  ;;  %4429 = vmatmul.mubr.bf16.gmra.mrb[244].mxu1 %v9743_v4  ;;  %v4021_v4 = vadd.f32 %v5807_v24, %v8781_v55  ;;  %v9748_v48 = vld [vmem:[#allocation19_spill] sm:$0xff]  ;;  %v9751_v24 = vld [vmem:[#allocation37_spill] sm:$0xff] }
 0x2f3   : > { %5268 = vmatprep.mubr.msk.bf16.mxu1 %vm9704_vm7, %v8662_v12  ;;  %5282 = vmatmul.mubr.msk.bf16.gmra.mrb[16].mxu0 %vm9746_vm10, %v9744_v42  ;;  %v4024_v46 = vadd.f32 %v5810_v47, %v8781_v55  ;;  %vm9752_vm10 = vnez %v9751_v24 }
 0x2f4   : > { %v8810_v19 = vadd.f32 %v5916_v31, %v4016_v30  ;;  %4589 = vmatprep.mubr.bf16.mxu0 %v9747_v23  ;;  %v9749_v30 = vld [vmem:[#allocation3_spill] sm:$0xff] }
 0x2f5   : > { %v5811_v54 = vpop.f32.mrb[140].mxu1  ;;  %vm9750_vm13 = vnez %v9749_v30 }
 0x2f6   : > { %v5812_v16 = vpop.f32.mrb[141].mxu1  ;;  %v5917_v21 = vpop.f32.mrb[168].mxu0  ;;  %v8821_v31 = vsel %vm9750_vm13, %v9748_v48, 0  ;;  %vm9754_vm13 = vnez %v9387_v25  ;;  %v9756_v25 = vld [vmem:[#allocation2_spill] sm:$0xff] }
 0x2f7   : > { %v5813_v9 = vadd.f32 %v5812_v16, %v5811_v54  ;;  %v5814_v44 = vpop.f32.mrb[142].mxu1  ;;  %v5918_v6 = vpop.f32.mrb[169].mxu0 }
 0x2f8   : > { %v5919_v8 = vadd.f32 %v5918_v6, %v5917_v21  ;;  %v5815_v60 = vpop.f32.mrb[143].mxu1  ;;  %v5920_v43 = vpop.f32.mrb[170].mxu0 }
 0x2f9   : > { %v5816_v39 = vadd.f32 %v5815_v60, %v5814_v44  ;;  %v5921_v49 = vpop.f32.mrb[171].mxu0  ;;  %v4029_v44 = vadd.f32 %v5813_v9, %v8781_v55 }
 0x2fa   : > { %v8815_v17 = vadd.f32 %v5919_v8, %v4021_v4  ;;  %v5922_v34 = vadd.f32 %v5921_v49, %v5920_v43  ;;  %4437 = vmatmul.mubr.bf16.gmra.mrb[248].mxu1 %v9747_v23 }
 0x2fb   : > { %5269 = vmatprep.mubr.msk.bf16.mxu1 %vm9707_vm5, %v8821_v31  ;;  %5283 = vmatmul.mubr.msk.bf16.gmra.mrb[20].mxu0 %vm9752_vm10, %v8626_v5  ;;  %v4032_v43 = vadd.f32 %v5816_v39, %v8781_v55  ;;  %vm9753_vm5 = vnez %v9692_v38  ;;  %vm9757_vm10 = vnez %v9756_v25 }
 0x2fc   : > { %v8829_v42 = vadd.f32 %v5922_v34, %v4024_v46  ;;  %4597 = vmatprep.mubr.bf16.mxu0 %v8467_v37  ;;  %v9755_v46 = vmov 0  }
 0x2fd   : > { %v5817_v47 = vpop.f32.mrb[144].mxu1 }
 0x2fe   : > { %v5818_v13 = vpop.f32.mrb[145].mxu1  ;;  %v5923_v23 = vpop.f32.mrb[172].mxu0 }
 0x2ff   : > { %v5819_v54 = vadd.f32 %v5818_v13, %v5817_v47  ;;  %v5820_v16 = vpop.f32.mrb[146].mxu1  ;;  %v5924_v21 = vpop.f32.mrb[173].mxu0 }
 0x300   : > { %v5925_v6 = vadd.f32 %v5924_v21, %v5923_v23  ;;  %v5821_v4 = vpop.f32.mrb[147].mxu1  ;;  %v5926_v58 = vpop.f32.mrb[174].mxu0 }
 0x301   : > { %v5822_v8 = vadd.f32 %v5821_v4, %v5820_v16  ;;  %v5927_v60 = vpop.f32.mrb[175].mxu0 }
 0x302   : > { %v8834_v5 = vadd.f32 %v5925_v6, %v4029_v44  ;;  %v5928_v49 = vadd.f32 %v5927_v60, %v5926_v58  ;;  %4445 = vmatmul.mubr.bf16.gmra.mrb[252].mxu1 %v8467_v37  ;;  %v4037_v37 = vadd.f32 %v5819_v54, %v8781_v55 }
 0x303   : > { %5284 = vmatmul.mubr.msk.bf16.gmra.mrb[24].mxu0 %vm9753_vm5, %v8651_v33  ;;  %6313 = vmatprep.mubr.msk.bf16.mxu1 %vm9754_vm13, %v8340_v36  ;;  %v3355_v36 = vsel %vm9757_vm10, %v8630_v28, 0  ;;  %v4040_v21 = vadd.f32 %v5822_v8, %v8781_v55 }
 0x304   : > { %v8843_v9 = vadd.f32 %v5928_v49, %v4032_v43  ;;  %4605 = vmatprep.mubr.bf16.mxu0 %v9755_v46 }
 0x305   : > { %v5823_v34 = vpop.f32.mrb[148].mxu1 }
 0x306   : > { %v5824_v48 = vpop.f32.mrb[149].mxu1  ;;  %v5929_v39 = vpop.f32.mrb[176].mxu0 }
 0x307   : > { %v5825_v30 = vadd.f32 %v5824_v48, %v5823_v34  ;;  %v5826_v24 = vpop.f32.mrb[150].mxu1  ;;  %v5930_v47 = vpop.f32.mrb[177].mxu0 }
 0x308   : > { %v5931_v13 = vadd.f32 %v5930_v47, %v5929_v39  ;;  %v5827_v23 = vpop.f32.mrb[151].mxu1  ;;  %v5932_v38 = vpop.f32.mrb[178].mxu0 }
 0x309   : > { %v5828_v33 = vadd.f32 %v5827_v23, %v5826_v24  ;;  %v5933_v16 = vpop.f32.mrb[179].mxu0  ;;  %v4045_v49 = vadd.f32 %v5825_v30, %v8781_v55 }
 0x30a   : > { %v8851_v44 = vadd.f32 %v5931_v13, %v4037_v37  ;;  %v5934_v6 = vadd.f32 %v5933_v16, %v5932_v38  ;;  %6314 = vmatmul.mubr.msk.bf16.vlgmr.msra.gmra.mrb[0].mxu1 %vm6842_vm12, %v8385_v22  ;;  %vm9758_vm12 = vnez %v9648_v51 }
 0x30b   : > { %5285 = vmatmul.mubr.msk.bf16.gmra.mrb[28].mxu0 %vm9701_vm15, %v3355_v36  ;;  %6317 = vmatprep.mubr.msk.bf16.mxu1 %vm6900_vm9, %v8419_v11  ;;  %v4048_v39 = vadd.f32 %v5828_v33, %v8781_v55 }
 0x30c   : > { %v8861_v54 = vadd.f32 %v5934_v6, %v4040_v21 }
 0x30d   : > { %v5829_v4 = vpop.f32.mrb[152].mxu1 }
 0x30e   : > { %v5830_v28 = vpop.f32.mrb[153].mxu1  ;;  %v5935_v58 = vpop.f32.mrb[180].mxu0 }
 0x30f   : > { %v5831_v8 = vadd.f32 %v5830_v28, %v5829_v4  ;;  %v5832_v60 = vpop.f32.mrb[154].mxu1  ;;  %v5936_v43 = vpop.f32.mrb[181].mxu0 }
 0x310   : > { %v5937_v34 = vadd.f32 %v5936_v43, %v5935_v58  ;;  %v5833_v61 = vpop.f32.mrb[155].mxu1  ;;  %v5938_v22 = vpop.f32.mrb[182].mxu0 }
 0x311   : > { %v5834_v48 = vadd.f32 %v5833_v61, %v5832_v60  ;;  %v5939_v56 = vpop.f32.mrb[183].mxu0  ;;  %v4053_v33 = vadd.f32 %v5831_v8, %v8781_v55 }
 0x312   : > { %v8865_v24 = vadd.f32 %v5937_v34, %v4045_v49  ;;  %v5940_v29 = vadd.f32 %v5939_v56, %v5938_v22  ;;  %6318 = vmatmul.mubr.msk.bf16.gmra.mrb[4].mxu1 %vm9618_vm14, %v8450_v14 }
 0x313   : > { %6321 = vmatprep.mubr.msk.bf16.mxu1 %vm9619_vm3, %v8477_v45  ;;  %v4056_v14 = vadd.f32 %v5834_v48, %v8781_v55 }
 0x314   : > { %v8873_v11 = vadd.f32 %v5940_v29, %v4048_v39 }
 0x315   : > { %v5835_v30 = vpop.f32.mrb[156].mxu1 }
 0x316   : > { %v5836_v47 = vpop.f32.mrb[157].mxu1  ;;  %v5941_v37 = vpop.f32.mrb[184].mxu0 }
 0x317   : > { %v5837_v13 = vadd.f32 %v5836_v47, %v5835_v30  ;;  %v5838_v23 = vpop.f32.mrb[158].mxu1  ;;  %v5942_v38 = vpop.f32.mrb[185].mxu0 }
 0x318   : > { %v5943_v16 = vadd.f32 %v5942_v38, %v5941_v37  ;;  %v5839_v25 = vpop.f32.mrb[159].mxu1  ;;  %v5944_v36 = vpop.f32.mrb[186].mxu0 }
 0x319   : > { %v5840_v21 = vadd.f32 %v5839_v25, %v5838_v23  ;;  %v5945_v15 = vpop.f32.mrb[187].mxu0  ;;  %v4061_v49 = vadd.f32 %v5837_v13, %v8781_v55 }
 0x31a   : > { %v8877_v6 = vadd.f32 %v5943_v16, %v4053_v33  ;;  %v5946_v53 = vadd.f32 %v5945_v15, %v5944_v36  ;;  %6322 = vmatmul.mubr.msk.bf16.gmra.mrb[8].mxu1 %vm9758_vm12, %v8508_v50 }
 0x31b   : > { %6325 = vmatprep.mubr.msk.bf16.mxu1 %vm9654_vm1, %v8526_v10  ;;  %v4064_v50 = vadd.f32 %v5840_v21, %v8781_v55 }
 0x31c   : > { %v8885_v45 = vadd.f32 %v5946_v53, %v4056_v14 }
 0x31d   : > { %v5841_v4 = vpop.f32.mrb[160].mxu1 }
 0x31e   : > { %v5842_v28 = vpop.f32.mrb[161].mxu1  ;;  %v5947_v58 = vpop.f32.mrb[188].mxu0 }
 0x31f   : > { %v5843_v8 = vadd.f32 %v5842_v28, %v5841_v4  ;;  %v5844_v60 = vpop.f32.mrb[162].mxu1  ;;  %v5948_v43 = vpop.f32.mrb[189].mxu0 }
 0x320   : > { %v5949_v34 = vadd.f32 %v5948_v43, %v5947_v58  ;;  %v5845_v61 = vpop.f32.mrb[163].mxu1  ;;  %v5950_v22 = vpop.f32.mrb[190].mxu0 }
 0x321   : > { %v5846_v48 = vadd.f32 %v5845_v61, %v5844_v60  ;;  %v5951_v51 = vpop.f32.mrb[191].mxu0  ;;  %v4069_v23 = vadd.f32 %v5843_v8, %v8781_v55 }
 0x322   : > { %v8889_v56 = vadd.f32 %v5949_v34, %v4061_v49  ;;  %v5952_v10 = vadd.f32 %v5951_v51, %v5950_v22  ;;  %6326 = vmatmul.mubr.msk.bf16.gmra.mrb[12].mxu1 %vm9713_vm0, %v9715_v32 }
 0x323   : > { %6329 = vmatprep.mubr.msk.bf16.mxu1 %vm9593_vm2, %v8566_v59  ;;  %v4072_v32 = vadd.f32 %v5846_v48, %v8781_v55  ;;  %vm9759_vm2 = vnez %v9679_v26 }
 0x324   : > { %v8897_v40 = vadd.f32 %v5952_v10, %v4064_v50 }
 0x325   : > { %v5847_v39 = vpop.f32.mrb[164].mxu1 }
 0x326   : > { %v5848_v29 = vpop.f32.mrb[165].mxu1  ;;  %v5953_v30 = vpop.f32.mrb[192].mxu0 }
 0x327   : > { %v5849_v47 = vadd.f32 %v5848_v29, %v5847_v39  ;;  %v5850_v37 = vpop.f32.mrb[166].mxu1  ;;  %v5954_v13 = vpop.f32.mrb[193].mxu0 }
 0x328   : > { %v5955_v38 = vadd.f32 %v5954_v13, %v5953_v30  ;;  %v5851_v33 = vpop.f32.mrb[167].mxu1  ;;  %v5956_v16 = vpop.f32.mrb[194].mxu0 }
 0x329   : > { %v5852_v25 = vadd.f32 %v5851_v33, %v5850_v37  ;;  %v5957_v63 = vpop.f32.mrb[195].mxu0  ;;  %v4077_v58 = vadd.f32 %v5849_v47, %v8781_v55 }
 0x32a   : > { %v8901_v36 = vadd.f32 %v5955_v38, %v4069_v23  ;;  %v5958_v59 = vadd.f32 %v5957_v63, %v5956_v16  ;;  %6330 = vmatmul.mubr.msk.bf16.gmra.mrb[16].mxu1 %vm9598_vm4, %v8584_v7 }
 0x32b   : > { %6333 = vmatprep.mubr.msk.bf16.mxu1 %vm9759_vm2, %v8602_v27  ;;  %v4080_v7 = vadd.f32 %v5852_v25, %v8781_v55 }
 0x32c   : > { %v8909_v62 = vadd.f32 %v5958_v59, %v4072_v32 }
 0x32d   : > { %v5853_v21 = vpop.f32.mrb[168].mxu1 }
 0x32e   : > { %v5854_v15 = vpop.f32.mrb[169].mxu1  ;;  %v5959_v14 = vpop.f32.mrb[196].mxu0 }
 0x32f   : > { %v5855_v53 = vadd.f32 %v5854_v15, %v5853_v21  ;;  %v5856_v4 = vpop.f32.mrb[170].mxu1  ;;  %v5960_v28 = vpop.f32.mrb[197].mxu0 }
 0x330   : > { %v5961_v8 = vadd.f32 %v5960_v28, %v5959_v14  ;;  %v5857_v60 = vpop.f32.mrb[171].mxu1  ;;  %v5962_v43 = vpop.f32.mrb[198].mxu0 }
 0x331   : > { %v5858_v49 = vadd.f32 %v5857_v60, %v5856_v4  ;;  %v5963_v0 = vpop.f32.mrb[199].mxu0  ;;  %v4085_v39 = vadd.f32 %v5855_v53, %v8781_v55 }
 0x332   : > { %v8913_v34 = vadd.f32 %v5961_v8, %v4077_v58  ;;  %v5964_v27 = vadd.f32 %v5963_v0, %v5962_v43  ;;  %6334 = vmatmul.mubr.msk.bf16.gmra.mrb[20].mxu1 %vm7495_vm6, %v8619_v1 }
 0x333   : > { %6337 = vmatprep.mubr.msk.bf16.mxu1 %vm9733_vm11, %v8642_v20  ;;  %v4088_v1 = vadd.f32 %v5858_v49, %v8781_v55 }
 0x334   : > { %v8921_v26 = vadd.f32 %v5964_v27, %v4080_v7 }
 0x335   : > { %v5859_v61 = vpop.f32.mrb[172].mxu1 }
 0x336   : > { %v5860_v22 = vpop.f32.mrb[173].mxu1  ;;  %v5965_v48 = vpop.f32.mrb[200].mxu0 }
 0x337   : > { %v5861_v51 = vadd.f32 %v5860_v22, %v5859_v61  ;;  %v5862_v50 = vpop.f32.mrb[174].mxu1  ;;  %v5966_v10 = vpop.f32.mrb[201].mxu0 }
 0x338   : > { %v5967_v29 = vadd.f32 %v5966_v10, %v5965_v48  ;;  %v5863_v30 = vpop.f32.mrb[175].mxu1  ;;  %v5968_v47 = vpop.f32.mrb[202].mxu0 }
 0x339   : > { %v5864_v37 = vadd.f32 %v5863_v30, %v5862_v50  ;;  %v5969_v41 = vpop.f32.mrb[203].mxu0  ;;  %v4093_v32 = vadd.f32 %v5861_v51, %v8781_v55 }
 0x33a   : > { %v8925_v13 = vadd.f32 %v5967_v29, %v4085_v39  ;;  %v5970_v35 = vadd.f32 %v5969_v41, %v5968_v47  ;;  %6338 = vmatmul.mubr.msk.bf16.gmra.mrb[24].mxu1 %vm9696_vm8, %v8662_v12 }
 0x33b   : > { %6341 = vmatprep.mubr.msk.bf16.mxu1 %vm9704_vm7, %v8821_v31  ;;  %v4096_v12 = vadd.f32 %v5864_v37, %v8781_v55 }
 0x33c   : > { %v8933_v20 = vadd.f32 %v5970_v35, %v4088_v1 }
 0x33d   : > { %v5865_v23 = vpop.f32.mrb[176].mxu1 }
 0x33e   : > { %v5866_v38 = vpop.f32.mrb[177].mxu1  ;;  %v5971_v33 = vpop.f32.mrb[204].mxu0 }
 0x33f   : > { %v5867_v16 = vadd.f32 %v5866_v38, %v5865_v23  ;;  %v5868_v25 = vpop.f32.mrb[178].mxu1  ;;  %v5972_v63 = vpop.f32.mrb[205].mxu0 }
 0x340   : > { %v5973_v59 = vadd.f32 %v5972_v63, %v5971_v33  ;;  %v5869_v21 = vpop.f32.mrb[179].mxu1  ;;  %v5974_v15 = vpop.f32.mrb[206].mxu0 }
 0x341   : > { %v5870_v14 = vadd.f32 %v5869_v21, %v5868_v25  ;;  %v5975_v2 = vpop.f32.mrb[207].mxu0  ;;  %v4101_v49 = vadd.f32 %v5867_v16, %v8781_v55 }
 0x342   : > { %v8937_v53 = vadd.f32 %v5973_v59, %v4093_v32  ;;  %v5976_v18 = vadd.f32 %v5975_v2, %v5974_v15  ;;  %6342 = vmatmul.mubr.bf16.gmra.mrb[28].mxu1 %v9755_v46 }
 0x343   : > { %v4104_v48 = vadd.f32 %v5870_v14, %v8781_v55 }
 0x344   : > { %v8940_v31 = vadd.f32 %v5976_v18, %v4096_v12 }
 0x345   : > { %v5871_v4 = vpop.f32.mrb[180].mxu1 }
 0x346   : > { %v5872_v28 = vpop.f32.mrb[181].mxu1  ;;  %v5977_v58 = vpop.f32.mrb[208].mxu0 }
 0x347   : > { %v5873_v8 = vadd.f32 %v5872_v28, %v5871_v4  ;;  %v5874_v60 = vpop.f32.mrb[182].mxu1  ;;  %v5978_v43 = vpop.f32.mrb[209].mxu0 }
 0x348   : > { %v5979_v0 = vadd.f32 %v5978_v43, %v5977_v58  ;;  %v5875_v7 = vpop.f32.mrb[183].mxu1  ;;  %v5980_v27 = vpop.f32.mrb[210].mxu0 }
 0x349   : > { %v5876_v61 = vadd.f32 %v5875_v7, %v5874_v60  ;;  %v5981_v22 = vpop.f32.mrb[211].mxu0  ;;  %v4109_v41 = vadd.f32 %v5873_v8, %v8781_v55 }
 0x34a   : > { %v8944_v51 = vadd.f32 %v5979_v0, %v4101_v49  ;;  %v5982_v46 = vadd.f32 %v5981_v22, %v5980_v27 }
 0x34b   : > { %v4112_v16 = vadd.f32 %v5876_v61, %v8781_v55 }
 0x34c   : > { %v8946_v50 = vadd.f32 %v5982_v46, %v4104_v48 }
 0x34d   : > { %v5877_v10 = vpop.f32.mrb[184].mxu1 }
 0x34e   : > { %v5878_v39 = vpop.f32.mrb[185].mxu1  ;;  %v5983_v29 = vpop.f32.mrb[212].mxu0 }
 0x34f   : > { %v5879_v30 = vadd.f32 %v5878_v39, %v5877_v10  ;;  %v5880_v47 = vpop.f32.mrb[186].mxu1  ;;  %v5984_v37 = vpop.f32.mrb[213].mxu0 }
 0x350   : > { %v5985_v1 = vadd.f32 %v5984_v37, %v5983_v29  ;;  %v5881_v35 = vpop.f32.mrb[187].mxu1  ;;  %v5986_v23 = vpop.f32.mrb[214].mxu0 }
 0x351   : > { %v5882_v38 = vadd.f32 %v5881_v35, %v5880_v47  ;;  %v5987_v33 = vpop.f32.mrb[215].mxu0  ;;  %v4117_v18 = vadd.f32 %v5879_v30, %v8781_v55 }
 0x352   : > { %v8950_v25 = vadd.f32 %v5985_v1, %v4109_v41  ;;  %v5988_v63 = vadd.f32 %v5987_v33, %v5986_v23 }
 0x353   : > { %v4120_v43 = vadd.f32 %v5882_v38, %v8781_v55 }
 0x354   : > { %v8952_v32 = vadd.f32 %v5988_v63, %v4112_v16 }
 0x355   : > { %v5883_v59 = vpop.f32.mrb[188].mxu1 }
 0x356   : > { %v5884_v21 = vpop.f32.mrb[189].mxu1  ;;  %v5989_v15 = vpop.f32.mrb[216].mxu0 }
 0x357   : > { %v5885_v14 = vadd.f32 %v5884_v21, %v5883_v59  ;;  %v5886_v2 = vpop.f32.mrb[190].mxu1  ;;  %v5990_v12 = vpop.f32.mrb[217].mxu0 }
 0x358   : > { %v5991_v4 = vadd.f32 %v5990_v12, %v5989_v15  ;;  %v5887_v28 = vpop.f32.mrb[191].mxu1  ;;  %v5992_v58 = vpop.f32.mrb[218].mxu0 }
 0x359   : > { %v5888_v8 = vadd.f32 %v5887_v28, %v5886_v2  ;;  %v5993_v60 = vpop.f32.mrb[219].mxu0  ;;  %v4125_v39 = vadd.f32 %v5885_v14, %v8781_v55 }
 0x35a   : > { %v8956_v49 = vadd.f32 %v5991_v4, %v4117_v18  ;;  %v5994_v0 = vadd.f32 %v5993_v60, %v5992_v58 }
 0x35b   : > { %v4128_v35 = vadd.f32 %v5888_v8, %v8781_v55 }
 0x35c   : > { %v8958_v7 = vadd.f32 %v5994_v0, %v4120_v43 }
 0x35d   : > { %v6017_v27 = vpop.f32.mrb[192].mxu1 }
 0x35e   : > { %v5995_v61 = vpop.f32.mrb[220].mxu0  ;;  %v6018_v22 = vpop.f32.mrb[193].mxu1 }
 0x35f   : > { %v6019_v48 = vadd.f32 %v6018_v22, %v6017_v27  ;;  %v5996_v46 = vpop.f32.mrb[221].mxu0  ;;  %v6020_v10 = vpop.f32.mrb[194].mxu1 }
 0x360   : > { %v5997_v29 = vadd.f32 %v5996_v46, %v5995_v61  ;;  %v5998_v30 = vpop.f32.mrb[222].mxu0  ;;  %v6021_v47 = vpop.f32.mrb[195].mxu1 }
 0x361   : > { %v4327_v37 = vadd.f32 %v6019_v48, %v8787_v3  ;;  %v6022_v41 = vadd.f32 %v6021_v47, %v6020_v10  ;;  %v5999_v1 = vpop.f32.mrb[223].mxu0 }
 0x362   : > { %v8963_v23 = vadd.f32 %v5997_v29, %v4125_v39  ;;  %v6000_v38 = vadd.f32 %v5999_v1, %v5998_v30 }
 0x363   : > { %v4330_v33 = vadd.f32 %v6022_v41, %v8796_v57 }
 0x364   : > { %v8966_v16 = vadd.f32 %v6000_v38, %v4128_v35 }
 0x365   : > { %v6023_v63 = vpop.f32.mrb[196].mxu1 }
 0x366   : > { %v6024_v59 = vpop.f32.mrb[197].mxu1  ;;  %v6129_v21 = vpop.f32.mrb[224].mxu0 }
 0x367   : > { %v6025_v15 = vadd.f32 %v6024_v59, %v6023_v63  ;;  %v6026_v14 = vpop.f32.mrb[198].mxu1  ;;  %v6130_v2 = vpop.f32.mrb[225].mxu0 }
 0x368   : > { %v6131_v12 = vadd.f32 %v6130_v2, %v6129_v21  ;;  %v6027_v18 = vpop.f32.mrb[199].mxu1  ;;  %v6132_v3 = vpop.f32.mrb[226].mxu0 }
 0x369   : > { %v4335_v4 = vadd.f32 %v6025_v15, %v8801_v52  ;;  %v6028_v28 = vadd.f32 %v6027_v18, %v6026_v14  ;;  %v6133_v55 = vpop.f32.mrb[227].mxu0 }
 0x36a   : > { %v6134_v58 = vadd.f32 %v6133_v55, %v6132_v3  ;;  %v8969_v8 = vadd.f32 %v6131_v12, %v4327_v37 }
 0x36b   : > { %v4338_v57 = vadd.f32 %v6028_v28, %v8810_v19 }
 0x36c   : > { %v8972_v60 = vadd.f32 %v6134_v58, %v4330_v33 }
 0x36d   : > { %v6029_v43 = vpop.f32.mrb[200].mxu1 }
 0x36e   : > { %v6030_v0 = vpop.f32.mrb[201].mxu1  ;;  %v6135_v27 = vpop.f32.mrb[228].mxu0 }
 0x36f   : > { %v6031_v61 = vadd.f32 %v6030_v0, %v6029_v43  ;;  %v6032_v22 = vpop.f32.mrb[202].mxu1  ;;  %v6136_v48 = vpop.f32.mrb[229].mxu0 }
 0x370   : > { %v6137_v46 = vadd.f32 %v6136_v48, %v6135_v27  ;;  %v6033_v10 = vpop.f32.mrb[203].mxu1  ;;  %v6138_v39 = vpop.f32.mrb[230].mxu0 }
 0x371   : > { %v4343_v52 = vadd.f32 %v6031_v61, %v8815_v17  ;;  %v6034_v29 = vadd.f32 %v6033_v10, %v6032_v22  ;;  %v6139_v30 = vpop.f32.mrb[231].mxu0 }
 0x372   : > { %v6140_v47 = vadd.f32 %v6139_v30, %v6138_v39  ;;  %v8975_v37 = vadd.f32 %v6137_v46, %v4335_v4 }
 0x373   : > { %v4346_v19 = vadd.f32 %v6034_v29, %v8829_v42 }
 0x374   : > { %v8978_v41 = vadd.f32 %v6140_v47, %v4338_v57 }
 0x375   : > { %v6035_v1 = vpop.f32.mrb[204].mxu1 }
 0x376   : > { %v6036_v35 = vpop.f32.mrb[205].mxu1  ;;  %v6141_v38 = vpop.f32.mrb[232].mxu0 }
 0x377   : > { %v6037_v33 = vadd.f32 %v6036_v35, %v6035_v1  ;;  %v6038_v63 = vpop.f32.mrb[206].mxu1  ;;  %v6142_v59 = vpop.f32.mrb[233].mxu0 }
 0x378   : > { %v6143_v21 = vadd.f32 %v6142_v59, %v6141_v38  ;;  %v6039_v15 = vpop.f32.mrb[207].mxu1  ;;  %v6144_v14 = vpop.f32.mrb[234].mxu0 }
 0x379   : > { %v4351_v17 = vadd.f32 %v6037_v33, %v8834_v5  ;;  %v6040_v2 = vadd.f32 %v6039_v15, %v6038_v63  ;;  %v6145_v12 = vpop.f32.mrb[235].mxu0 }
 0x37a   : > { %v6146_v18 = vadd.f32 %v6145_v12, %v6144_v14  ;;  %v8981_v3 = vadd.f32 %v6143_v21, %v4343_v52 }
 0x37b   : > { %v4354_v42 = vadd.f32 %v6040_v2, %v8843_v9 }
 0x37c   : > { %v8984_v4 = vadd.f32 %v6146_v18, %v4346_v19 }
 0x37d   : > { %v6041_v28 = vpop.f32.mrb[208].mxu1 }
 0x37e   : > { %v6042_v55 = vpop.f32.mrb[209].mxu1  ;;  %v6147_v58 = vpop.f32.mrb[236].mxu0 }
 0x37f   : > { %v6043_v57 = vadd.f32 %v6042_v55, %v6041_v28  ;;  %v6044_v43 = vpop.f32.mrb[210].mxu1  ;;  %v6148_v0 = vpop.f32.mrb[237].mxu0 }
 0x380   : > { %v6149_v27 = vadd.f32 %v6148_v0, %v6147_v58  ;;  %v6045_v61 = vpop.f32.mrb[211].mxu1  ;;  %v6150_v22 = vpop.f32.mrb[238].mxu0 }
 0x381   : > { %v4359_v5 = vadd.f32 %v6043_v57, %v8851_v44  ;;  %v6046_v48 = vadd.f32 %v6045_v61, %v6044_v43  ;;  %v6151_v46 = vpop.f32.mrb[239].mxu0 }
 0x382   : > { %v6152_v10 = vadd.f32 %v6151_v46, %v6150_v22  ;;  %v8987_v39 = vadd.f32 %v6149_v27, %v4351_v17 }
 0x383   : > { %v4362_v9 = vadd.f32 %v6046_v48, %v8861_v54 }
 0x384   : > { %v8990_v52 = vadd.f32 %v6152_v10, %v4354_v42 }
 0x385   : > { %v6047_v29 = vpop.f32.mrb[212].mxu1 }
 0x386   : > { %v6048_v30 = vpop.f32.mrb[213].mxu1  ;;  %v6153_v47 = vpop.f32.mrb[240].mxu0 }
 0x387   : > { %v6049_v19 = vadd.f32 %v6048_v30, %v6047_v29  ;;  %v6050_v1 = vpop.f32.mrb[214].mxu1  ;;  %v6154_v35 = vpop.f32.mrb[241].mxu0 }
 0x388   : > { %v6155_v38 = vadd.f32 %v6154_v35, %v6153_v47  ;;  %v6051_v33 = vpop.f32.mrb[215].mxu1  ;;  %v6156_v63 = vpop.f32.mrb[242].mxu0 }
 0x389   : > { %v4367_v44 = vadd.f32 %v6049_v19, %v8865_v24  ;;  %v6052_v59 = vadd.f32 %v6051_v33, %v6050_v1  ;;  %v6157_v21 = vpop.f32.mrb[243].mxu0 }
 0x38a   : > { %v6158_v15 = vadd.f32 %v6157_v21, %v6156_v63  ;;  %v8993_v14 = vadd.f32 %v6155_v38, %v4359_v5 }
 0x38b   : > { %v4370_v54 = vadd.f32 %v6052_v59, %v8873_v11 }
 0x38c   : > { %v8996_v17 = vadd.f32 %v6158_v15, %v4362_v9 }
 0x38d   : > { %v6053_v2 = vpop.f32.mrb[216].mxu1 }
 0x38e   : > { %v6054_v12 = vpop.f32.mrb[217].mxu1  ;;  %v6159_v18 = vpop.f32.mrb[244].mxu0 }
 0x38f   : > { %v6055_v42 = vadd.f32 %v6054_v12, %v6053_v2  ;;  %v6056_v28 = vpop.f32.mrb[218].mxu1  ;;  %v6160_v55 = vpop.f32.mrb[245].mxu0 }
 0x390   : > { %v6161_v58 = vadd.f32 %v6160_v55, %v6159_v18  ;;  %v6057_v57 = vpop.f32.mrb[219].mxu1  ;;  %v6162_v43 = vpop.f32.mrb[246].mxu0 }
 0x391   : > { %v4375_v24 = vadd.f32 %v6055_v42, %v8877_v6  ;;  %v6058_v0 = vadd.f32 %v6057_v57, %v6056_v28  ;;  %v6163_v27 = vpop.f32.mrb[247].mxu0 }
 0x392   : > { %v6164_v61 = vadd.f32 %v6163_v27, %v6162_v43  ;;  %v8999_v22 = vadd.f32 %v6161_v58, %v4367_v44 }
 0x393   : > { %v4378_v11 = vadd.f32 %v6058_v0, %v8885_v45 }
 0x394   : > { %v9002_v5 = vadd.f32 %v6164_v61, %v4370_v54 }
 0x395   : > { %v6059_v48 = vpop.f32.mrb[220].mxu1 }
 0x396   : > { %v6060_v46 = vpop.f32.mrb[221].mxu1  ;;  %v6165_v10 = vpop.f32.mrb[248].mxu0 }
 0x397   : > { %v6061_v9 = vadd.f32 %v6060_v46, %v6059_v48  ;;  %v6062_v29 = vpop.f32.mrb[222].mxu1  ;;  %v6166_v30 = vpop.f32.mrb[249].mxu0 }
 0x398   : > { %v6167_v47 = vadd.f32 %v6166_v30, %v6165_v10  ;;  %v6063_v19 = vpop.f32.mrb[223].mxu1  ;;  %v6168_v1 = vpop.f32.mrb[250].mxu0 }
 0x399   : > { %v4383_v6 = vadd.f32 %v6061_v9, %v8889_v56  ;;  %v6064_v35 = vadd.f32 %v6063_v19, %v6062_v29  ;;  %v6169_v38 = vpop.f32.mrb[251].mxu0 }
 0x39a   : > { %v6170_v33 = vadd.f32 %v6169_v38, %v6168_v1  ;;  %v9005_v63 = vadd.f32 %v6167_v47, %v4375_v24 }
 0x39b   : > { %v4386_v45 = vadd.f32 %v6064_v35, %v8897_v40 }
 0x39c   : > { %v9008_v44 = vadd.f32 %v6170_v33, %v4378_v11 }
 0x39d   : > { %v6065_v59 = vpop.f32.mrb[224].mxu1 }
 0x39e   : > { %v6066_v21 = vpop.f32.mrb[225].mxu1  ;;  %v6171_v15 = vpop.f32.mrb[252].mxu0 }
 0x39f   : > { %v6067_v54 = vadd.f32 %v6066_v21, %v6065_v59  ;;  %v6068_v2 = vpop.f32.mrb[226].mxu1  ;;  %v6172_v12 = vpop.f32.mrb[253].mxu0 }
 0x3a0   : > { %v6173_v18 = vadd.f32 %v6172_v12, %v6171_v15  ;;  %v6069_v42 = vpop.f32.mrb[227].mxu1  ;;  %v6174_v28 = vpop.f32.mrb[254].mxu0 }
 0x3a1   : > { %v4391_v56 = vadd.f32 %v6067_v54, %v8901_v36  ;;  %v6070_v55 = vadd.f32 %v6069_v42, %v6068_v2  ;;  %v6175_v58 = vpop.f32.mrb[255].mxu0 }
 0x3a2   : > { %v6176_v57 = vadd.f32 %v6175_v58, %v6174_v28  ;;  %v9011_v43 = vadd.f32 %v6173_v18, %v4383_v6 }
 0x3a3   : > { %v4394_v40 = vadd.f32 %v6070_v55, %v8909_v62 }
 0x3a4   : > { %v9014_v24 = vadd.f32 %v6176_v57, %v4386_v45 }
 0x3a5   : > { %v6071_v0 = vpop.f32.mrb[228].mxu1 }
 0x3a6   : > { %v6072_v27 = vpop.f32.mrb[229].mxu1  ;;  %v6177_v61 = vpop.f32.mrb[0].mxu0 }
 0x3a7   : > { %v6073_v11 = vadd.f32 %v6072_v27, %v6071_v0  ;;  %v6074_v48 = vpop.f32.mrb[230].mxu1  ;;  %v6178_v46 = vpop.f32.mrb[1].mxu0 }
 0x3a8   : > { %v6179_v10 = vadd.f32 %v6178_v46, %v6177_v61  ;;  %v6075_v9 = vpop.f32.mrb[231].mxu1  ;;  %v6180_v29 = vpop.f32.mrb[2].mxu0 }
 0x3a9   : > { %v4399_v36 = vadd.f32 %v6073_v11, %v8913_v34  ;;  %v6076_v30 = vadd.f32 %v6075_v9, %v6074_v48  ;;  %v6181_v47 = vpop.f32.mrb[3].mxu0 }
 0x3aa   : > { %v6182_v19 = vadd.f32 %v6181_v47, %v6180_v29  ;;  %v9017_v1 = vadd.f32 %v6179_v10, %v4391_v56 }
 0x3ab   : > { %v4402_v62 = vadd.f32 %v6076_v30, %v8921_v26 }
 0x3ac   : > { %v9020_v6 = vadd.f32 %v6182_v19, %v4394_v40 }
 0x3ad   : > { %v6077_v35 = vpop.f32.mrb[232].mxu1 }
 0x3ae   : > { %v6078_v38 = vpop.f32.mrb[233].mxu1  ;;  %v6183_v33 = vpop.f32.mrb[4].mxu0 }
 0x3af   : > { %v6079_v45 = vadd.f32 %v6078_v38, %v6077_v35  ;;  %v6080_v59 = vpop.f32.mrb[234].mxu1  ;;  %v6184_v21 = vpop.f32.mrb[5].mxu0 }
 0x3b0   : > { %v6185_v15 = vadd.f32 %v6184_v21, %v6183_v33  ;;  %v6081_v54 = vpop.f32.mrb[235].mxu1  ;;  %v6186_v2 = vpop.f32.mrb[6].mxu0 }
 0x3b1   : > { %v4407_v34 = vadd.f32 %v6079_v45, %v8925_v13  ;;  %v6082_v12 = vadd.f32 %v6081_v54, %v6080_v59  ;;  %v6187_v18 = vpop.f32.mrb[7].mxu0 }
 0x3b2   : > { %v6188_v42 = vadd.f32 %v6187_v18, %v6186_v2  ;;  %v9023_v28 = vadd.f32 %v6185_v15, %v4399_v36 }
 0x3b3   : > { %v4410_v26 = vadd.f32 %v6082_v12, %v8933_v20 }
 0x3b4   : > { %v9026_v56 = vadd.f32 %v6188_v42, %v4402_v62 }
 0x3b5   : > { %v6083_v55 = vpop.f32.mrb[236].mxu1 }
 0x3b6   : > { %v6084_v58 = vpop.f32.mrb[237].mxu1  ;;  %v6189_v57 = vpop.f32.mrb[8].mxu0 }
 0x3b7   : > { %v6085_v40 = vadd.f32 %v6084_v58, %v6083_v55  ;;  %v6086_v0 = vpop.f32.mrb[238].mxu1  ;;  %v6190_v27 = vpop.f32.mrb[9].mxu0 }
 0x3b8   : > { %v6191_v61 = vadd.f32 %v6190_v27, %v6189_v57  ;;  %v6087_v11 = vpop.f32.mrb[239].mxu1  ;;  %v6192_v48 = vpop.f32.mrb[10].mxu0 }
 0x3b9   : > { %v4415_v13 = vadd.f32 %v6085_v40, %v8937_v53  ;;  %v6088_v46 = vadd.f32 %v6087_v11, %v6086_v0  ;;  %v6193_v10 = vpop.f32.mrb[11].mxu0 }
 0x3ba   : > { %v6194_v9 = vadd.f32 %v6193_v10, %v6192_v48  ;;  %v9029_v29 = vadd.f32 %v6191_v61, %v4407_v34 }
 0x3bb   : > { %v4418_v20 = vadd.f32 %v6088_v46, %v8940_v31 }
 0x3bc   : > { %v9032_v36 = vadd.f32 %v6194_v9, %v4410_v26 }
 0x3bd   : > { %v6089_v30 = vpop.f32.mrb[240].mxu1 }
 0x3be   : > { %v6090_v47 = vpop.f32.mrb[241].mxu1  ;;  %v6195_v19 = vpop.f32.mrb[12].mxu0 }
 0x3bf   : > { %v6091_v62 = vadd.f32 %v6090_v47, %v6089_v30  ;;  %v6092_v35 = vpop.f32.mrb[242].mxu1  ;;  %v6196_v38 = vpop.f32.mrb[13].mxu0 }
 0x3c0   : > { %v6197_v33 = vadd.f32 %v6196_v38, %v6195_v19  ;;  %v6093_v45 = vpop.f32.mrb[243].mxu1  ;;  %v6198_v59 = vpop.f32.mrb[14].mxu0 }
 0x3c1   : > { %v4423_v53 = vadd.f32 %v6091_v62, %v8944_v51  ;;  %v6094_v21 = vadd.f32 %v6093_v45, %v6092_v35  ;;  %v6199_v15 = vpop.f32.mrb[15].mxu0 }
 0x3c2   : > { %v6200_v54 = vadd.f32 %v6199_v15, %v6198_v59  ;;  %v9035_v2 = vadd.f32 %v6197_v33, %v4415_v13 }
 0x3c3   : > { %v4426_v31 = vadd.f32 %v6094_v21, %v8946_v50 }
 0x3c4   : > { %v9038_v34 = vadd.f32 %v6200_v54, %v4418_v20 }
 0x3c5   : > { %v6095_v12 = vpop.f32.mrb[244].mxu1 }
 0x3c6   : > { %v6096_v18 = vpop.f32.mrb[245].mxu1  ;;  %v6201_v42 = vpop.f32.mrb[16].mxu0 }
 0x3c7   : > { %v6097_v26 = vadd.f32 %v6096_v18, %v6095_v12  ;;  %v6098_v55 = vpop.f32.mrb[246].mxu1  ;;  %v6202_v58 = vpop.f32.mrb[17].mxu0 }
 0x3c8   : > { %v6203_v57 = vadd.f32 %v6202_v58, %v6201_v42  ;;  %v6099_v40 = vpop.f32.mrb[247].mxu1  ;;  %v6204_v0 = vpop.f32.mrb[18].mxu0 }
 0x3c9   : > { %v4431_v51 = vadd.f32 %v6097_v26, %v8950_v25  ;;  %v6100_v27 = vadd.f32 %v6099_v40, %v6098_v55  ;;  %v6205_v61 = vpop.f32.mrb[19].mxu0 }
 0x3ca   : > { %v6206_v11 = vadd.f32 %v6205_v61, %v6204_v0  ;;  %v9041_v48 = vadd.f32 %v6203_v57, %v4423_v53 }
 0x3cb   : > { %v4434_v50 = vadd.f32 %v6100_v27, %v8952_v32 }
 0x3cc   : > { %v9044_v13 = vadd.f32 %v6206_v11, %v4426_v31 }
 0x3cd   : > { %v6101_v46 = vpop.f32.mrb[248].mxu1 }
 0x3ce   : > { %v6102_v10 = vpop.f32.mrb[249].mxu1  ;;  %v6207_v9 = vpop.f32.mrb[20].mxu0 }
 0x3cf   : > { %v6103_v20 = vadd.f32 %v6102_v10, %v6101_v46  ;;  %v6104_v30 = vpop.f32.mrb[250].mxu1  ;;  %v6208_v47 = vpop.f32.mrb[21].mxu0 }
 0x3d0   : > { %v6209_v19 = vadd.f32 %v6208_v47, %v6207_v9  ;;  %v6105_v62 = vpop.f32.mrb[251].mxu1  ;;  %v6210_v35 = vpop.f32.mrb[22].mxu0  ;;  %v6499_v9 = vld [vmem:[%s6697_s15 + $0x10] sm:$0xff] }
 0x3d1   : > { %v4439_v25 = vadd.f32 %v6103_v20, %v8956_v49  ;;  %v6106_v38 = vadd.f32 %v6105_v62, %v6104_v30  ;;  %v6211_v33 = vpop.f32.mrb[23].mxu0 }
 0x3d2   : > { %v6212_v45 = vadd.f32 %v6211_v33, %v6210_v35  ;;  %v9047_v59 = vadd.f32 %v6209_v19, %v4431_v51 }
 0x3d3   : > { %v4442_v32 = vadd.f32 %v6106_v38, %v8958_v7  ;;  %v6501_v38 = vld [vmem:[%s6697_s15 + $0x18] sm:$0xff] }
 0x3d4   : > { %v9050_v53 = vadd.f32 %v6212_v45, %v4434_v50 }
 0x3d5   : > { %v6107_v21 = vpop.f32.mrb[252].mxu1 }
 0x3d6   : > { %v6108_v15 = vpop.f32.mrb[253].mxu1  ;;  %v6213_v54 = vpop.f32.mrb[24].mxu0 }
 0x3d7   : > { %v6109_v31 = vadd.f32 %v6108_v15, %v6107_v21  ;;  %v6110_v12 = vpop.f32.mrb[254].mxu1  ;;  %v6214_v18 = vpop.f32.mrb[25].mxu0  ;;  %v6502_v21 = vld [vmem:[%s6697_s15 + $0x8] sm:$0xff] }
 0x3d8   : > { %v6215_v42 = vadd.f32 %v6214_v18, %v6213_v54  ;;  %v6111_v26 = vpop.f32.mrb[255].mxu1  ;;  %v6216_v55 = vpop.f32.mrb[26].mxu0 }
 0x3d9   : > { %v4447_v49 = vadd.f32 %v6109_v31, %v8963_v23  ;;  %v6112_v58 = vadd.f32 %v6111_v26, %v6110_v12  ;;  %v6217_v57 = vpop.f32.mrb[27].mxu0 }
 0x3da   : > { %v6218_v40 = vadd.f32 %v6217_v57, %v6216_v55  ;;  %v9053_v0 = vadd.f32 %v6215_v42, %v4439_v25 }
 0x3db   : > { %v4450_v7 = vadd.f32 %v6112_v58, %v8966_v16 }
 0x3dc   : > { %v9056_v51 = vadd.f32 %v6218_v40, %v4442_v32 }
 0x3dd   : > { %v6315_v27 = vpop.f32.mrb[0].mxu1 }
 0x3de   : > { %v4657_v61 = vadd.f32 %v6315_v27, %v8975_v37  ;;  %v6219_v11 = vpop.f32.mrb[28].mxu0  ;;  %v4648_v50 = vpop.f32.mrb[1].mxu1  ;;  %v6500_v37 = vld [vmem:[%s6697_s15] sm:$0xff] }
 0x3df   : > { %v4649_v46 = vadd.f32 %v4648_v50, %v8969_v8  ;;  %v6220_v23 = vpop.f32.mrb[29].mxu0  ;;  %v6316_v10 = vpop.f32.mrb[2].mxu1 }
 0x3e0   : > { %v4777_v20 = vadd.f32 %v6499_v9, %v4657_v61  ;;  %v6221_v30 = vadd.f32 %v6220_v23, %v6219_v11  ;;  %v4660_v47 = vadd.f32 %v6316_v10, %v8978_v41  ;;  %v6222_v16 = vpop.f32.mrb[30].mxu0  ;;  %v4651_v19 = vpop.f32.mrb[3].mxu1  ;;  %v6505_v11 = vld [vmem:[%s6697_s15 + $0x38] sm:$0xff]  ;;  %v6506_v23 = vld [vmem:[%s6697_s15 + $0x28] sm:$0xff] }
 0x3e1   : > { %v4775_v8 = vadd.f32 %v6500_v37, %v4649_v46  ;;  %v4652_v62 = vadd.f32 %v4651_v19, %v8972_v60  ;;  %v6223_v35 = vpop.f32.mrb[31].mxu0 }
 0x3e2   : > { %v4809_v25 = vmax.f32 %v4777_v20, 0.0  ;;  %v4778_v41 = vadd.f32 %v6501_v38, %v4660_v47  ;;  %v6224_v33 = vadd.f32 %v6223_v35, %v6222_v16  ;;  %v9072_v45 = vadd.f32 %v6221_v30, %v4447_v49  ;;  %v6503_v49 = vld [vmem:[%s6697_s15 + $0x30] sm:$0xff]  ;;  %v6509_v38 = vld [vmem:[%s6697_s15 + $0x58] sm:$0xff] }
 0x3e3   : > { %v4807_v32 = vmax.f32 %v4775_v8, 0.0  ;;  %v4776_v15 = vadd.f32 %v6502_v21, %v4652_v62  ;;  %v6507_v16 = vld [vmem:[%s6697_s15 + $0x50] sm:$0xff]  ;;  %v6508_v62 = vld [vmem:[%s6697_s15 + $0x40] sm:$0xff] }
 0x3e4   : > { %4841 = vst [vmem:[%s9067_s17 + $0x10] sm:$0xff] %v4809_v25  ;;  %v4810_v54 = vmax.f32 %v4778_v41, 0.0  ;;  %v9076_v31 = vadd.f32 %v6224_v33, %v4450_v7  ;;  %v6504_v7 = vld [vmem:[%s6697_s15 + $0x20] sm:$0xff] }
 0x3e5   : > { %4839 = vst [vmem:[%s9067_s17] sm:$0xff] %v4807_v32  ;;  %v4808_v60 = vmax.f32 %v4776_v15, 0.0  ;;  %v6319_v12 = vpop.f32.mrb[4].mxu1  ;;  %v6510_v32 = vld [vmem:[%s6697_s15 + $0x48] sm:$0xff] }
 0x3e6   : > { %4842 = vst [vmem:[%s9067_s17 + $0x18] sm:$0xff] %v4810_v54  ;;  %v4673_v18 = vadd.f32 %v6319_v12, %v8987_v39  ;;  %v4664_v42 = vpop.f32.mrb[5].mxu1 }
 0x3e7   : > { %4840 = vst [vmem:[%s9067_s17 + $0x8] sm:$0xff] %v4808_v60  ;;  %v4665_v26 = vadd.f32 %v4664_v42, %v8981_v3  ;;  %v6320_v55 = vpop.f32.mrb[6].mxu1 }
 0x3e8   : > { %v4781_v58 = vadd.f32 %v6503_v49, %v4673_v18  ;;  %v4676_v57 = vadd.f32 %v6320_v55, %v8990_v52  ;;  %v4667_v40 = vpop.f32.mrb[7].mxu1  ;;  %v6511_v18 = vld [vmem:[%s6697_s15 + $0x70] sm:$0xff]  ;;  %v6512_v49 = vld [vmem:[%s6697_s15 + $0x60] sm:$0xff] }
 0x3e9   : > { %v4779_v27 = vadd.f32 %v6504_v7, %v4665_v26  ;;  %v4668_v61 = vadd.f32 %v4667_v40, %v8984_v4  ;;  %v6513_v40 = vld [vmem:[%s6697_s15 + $0x78] sm:$0xff] }
 0x3ea   : > { %v4813_v39 = vmax.f32 %v4781_v58, 0.0  ;;  %v4782_v50 = vadd.f32 %v6505_v11, %v4676_v57 }
 0x3eb   : > { %v4811_v46 = vmax.f32 %v4779_v27, 0.0  ;;  %v4780_v3 = vadd.f32 %v6506_v23, %v4668_v61  ;;  %v6514_v61 = vld [vmem:[%s6697_s15 + $0x68] sm:$0xff] }
 0x3ec   : > { %4845 = vst [vmem:[%s9067_s17 + $0x30] sm:$0xff] %v4813_v39  ;;  %v4814_v10 = vmax.f32 %v4782_v50, 0.0 }
 0x3ed   : > { %4843 = vst [vmem:[%s9067_s17 + $0x20] sm:$0xff] %v4811_v46  ;;  %v4812_v9 = vmax.f32 %v4780_v3, 0.0  ;;  %v6323_v52 = vpop.f32.mrb[8].mxu1  ;;  %v6515_v3 = vld [vmem:[%s6697_s15 + $0x90] sm:$0xff] }
 0x3ee   : > { %4846 = vst [vmem:[%s9067_s17 + $0x38] sm:$0xff] %v4814_v10  ;;  %v4689_v20 = vadd.f32 %v6323_v52, %v8999_v22  ;;  %v4680_v30 = vpop.f32.mrb[9].mxu1 }
 0x3ef   : > { %4844 = vst [vmem:[%s9067_s17 + $0x28] sm:$0xff] %v4812_v9  ;;  %v4681_v4 = vadd.f32 %v4680_v30, %v8993_v14  ;;  %v6324_v47 = vpop.f32.mrb[10].mxu1 }
 0x3f0   : > { %v4785_v19 = vadd.f32 %v6507_v16, %v4689_v20  ;;  %v4692_v37 = vadd.f32 %v6324_v47, %v9002_v5  ;;  %v4683_v8 = vpop.f32.mrb[11].mxu1  ;;  %v6516_v20 = vld [vmem:[%s6697_s15 + $0x80] sm:$0xff]  ;;  %v6517_v47 = vld [vmem:[%s6697_s15 + $0x98] sm:$0xff] }
 0x3f1   : > { %v4783_v35 = vadd.f32 %v6508_v62, %v4681_v4  ;;  %v4684_v25 = vadd.f32 %v4683_v8, %v8996_v17 }
 0x3f2   : > { %v4817_v22 = vmax.f32 %v4785_v19, 0.0  ;;  %v4786_v41 = vadd.f32 %v6509_v38, %v4692_v37  ;;  %v6518_v37 = vld [vmem:[%s6697_s15 + $0x88] sm:$0xff]  ;;  %v6519_v38 = vld [vmem:[%s6697_s15 + $0xb0] sm:$0xff] }
 0x3f3   : > { %v4815_v33 = vmax.f32 %v4783_v35, 0.0  ;;  %v4784_v14 = vadd.f32 %v6510_v32, %v4684_v25 }
 0x3f4   : > { %4849 = vst [vmem:[%s9067_s17 + $0x50] sm:$0xff] %v4817_v22  ;;  %v4818_v21 = vmax.f32 %v4786_v41, 0.0 }
 0x3f5   : > { %4847 = vst [vmem:[%s9067_s17 + $0x40] sm:$0xff] %v4815_v33  ;;  %v4816_v15 = vmax.f32 %v4784_v14, 0.0  ;;  %v6327_v5 = vpop.f32.mrb[12].mxu1  ;;  %v6520_v14 = vld [vmem:[%s6697_s15 + $0xa0] sm:$0xff] }
 0x3f6   : > { %4850 = vst [vmem:[%s9067_s17 + $0x58] sm:$0xff] %v4818_v21  ;;  %v4705_v54 = vadd.f32 %v6327_v5, %v9011_v43  ;;  %v4696_v60 = vpop.f32.mrb[13].mxu1  ;;  %v6521_v5 = vld [vmem:[%s6697_s15 + $0xb8] sm:$0xff] }
 0x3f7   : > { %4848 = vst [vmem:[%s9067_s17 + $0x48] sm:$0xff] %v4816_v15  ;;  %v4697_v17 = vadd.f32 %v4696_v60, %v9005_v63  ;;  %v6328_v12 = vpop.f32.mrb[14].mxu1 }
 0x3f8   : > { %v4789_v42 = vadd.f32 %v6511_v18, %v4705_v54  ;;  %v4708_v26 = vadd.f32 %v6328_v12, %v9014_v24  ;;  %v4699_v55 = vpop.f32.mrb[15].mxu1 }
 0x3f9   : > { %v4787_v58 = vadd.f32 %v6512_v49, %v4697_v17  ;;  %v4700_v57 = vadd.f32 %v4699_v55, %v9008_v44  ;;  %v6522_v17 = vld [vmem:[%s6697_s15 + $0xa8] sm:$0xff]  ;;  %v6523_v49 = vld [vmem:[%s6697_s15 + $0xd0] sm:$0xff] }
 0x3fa   : > { %v4821_v43 = vmax.f32 %v4789_v42, 0.0  ;;  %v4790_v7 = vadd.f32 %v6513_v40, %v4708_v26  ;;  %v6524_v40 = vld [vmem:[%s6697_s15 + $0xc0] sm:$0xff] }
 0x3fb   : > { %v4819_v27 = vmax.f32 %v4787_v58, 0.0  ;;  %v4788_v63 = vadd.f32 %v6514_v61, %v4700_v57  ;;  %v6525_v61 = vld [vmem:[%s6697_s15 + $0xd8] sm:$0xff] }
 0x3fc   : > { %4853 = vst [vmem:[%s9067_s17 + $0x70] sm:$0xff] %v4821_v43  ;;  %v4822_v39 = vmax.f32 %v4790_v7, 0.0 }
 0x3fd   : > { %4851 = vst [vmem:[%s9067_s17 + $0x60] sm:$0xff] %v4819_v27  ;;  %v4820_v11 = vmax.f32 %v4788_v63, 0.0  ;;  %v6331_v24 = vpop.f32.mrb[16].mxu1 }
 0x3fe   : > { %4854 = vst [vmem:[%s9067_s17 + $0x78] sm:$0xff] %v4822_v39  ;;  %v4721_v50 = vadd.f32 %v6331_v24, %v9023_v28  ;;  %v4712_v46 = vpop.f32.mrb[17].mxu1 }
 0x3ff   : > { %4852 = vst [vmem:[%s9067_s17 + $0x68] sm:$0xff] %v4820_v11  ;;  %v4713_v44 = vadd.f32 %v4712_v46, %v9017_v1  ;;  %v6332_v23 = vpop.f32.mrb[18].mxu1  ;;  %v6526_v11 = vld [vmem:[%s6697_s15 + $0xc8] sm:$0xff] }
 0x400   : > { %v4793_v10 = vadd.f32 %v6515_v3, %v4721_v50  ;;  %v4724_v9 = vadd.f32 %v6332_v23, %v9026_v56  ;;  %v4715_v52 = vpop.f32.mrb[19].mxu1  ;;  %v6527_v3 = vld [vmem:[%s6697_s15 + $0xf0] sm:$0xff] }
 0x401   : > { %v4791_v30 = vadd.f32 %v6516_v20, %v4713_v44  ;;  %v4716_v4 = vadd.f32 %v4715_v52, %v9020_v6  ;;  %v6528_v20 = vld [vmem:[%s6697_s15 + $0xe0] sm:$0xff] }
 0x402   : > { %v4825_v28 = vmax.f32 %v4793_v10, 0.0  ;;  %v4794_v16 = vadd.f32 %v6517_v47, %v4724_v9 }
 0x403   : > { %v4823_v19 = vmax.f32 %v4791_v30, 0.0  ;;  %v4792_v1 = vadd.f32 %v6518_v37, %v4716_v4 }
 0x404   : > { %4857 = vst [vmem:[%s9067_s17 + $0x90] sm:$0xff] %v4825_v28  ;;  %v4826_v8 = vmax.f32 %v4794_v16, 0.0  ;;  %v6529_v28 = vld [vmem:[%s6697_s15 + $0xf8] sm:$0xff] }
 0x405   : > { %4855 = vst [vmem:[%s9067_s17 + $0x80] sm:$0xff] %v4823_v19  ;;  %v4824_v62 = vmax.f32 %v4792_v1, 0.0  ;;  %v6335_v56 = vpop.f32.mrb[20].mxu1  ;;  %v6530_v19 = vld [vmem:[%s6697_s15 + $0xe8] sm:$0xff] }
 0x406   : > { %4858 = vst [vmem:[%s9067_s17 + $0x98] sm:$0xff] %v4826_v8  ;;  %v4737_v35 = vadd.f32 %v6335_v56, %v9035_v2  ;;  %v4728_v25 = vpop.f32.mrb[21].mxu1 }
 0x407   : > { %4856 = vst [vmem:[%s9067_s17 + $0x88] sm:$0xff] %v4824_v62  ;;  %v4729_v6 = vadd.f32 %v4728_v25, %v9029_v29  ;;  %v6336_v22 = vpop.f32.mrb[22].mxu1 }
 0x408   : > { %v4797_v41 = vadd.f32 %v6519_v38, %v4737_v35  ;;  %v4740_v33 = vadd.f32 %v6336_v22, %v9038_v34  ;;  %v4731_v32 = vpop.f32.mrb[23].mxu1 }
 0x409   : > { %v4795_v21 = vadd.f32 %v6520_v14, %v4729_v6  ;;  %v4732_v15 = vadd.f32 %v4731_v32, %v9032_v36 }
 0x40a   : > { %v4829_v2 = vmax.f32 %v4797_v41, 0.0  ;;  %v4798_v54 = vadd.f32 %v6521_v5, %v4740_v33 }
 0x40b   : > { %v4827_v60 = vmax.f32 %v4795_v21, 0.0  ;;  %v4796_v29 = vadd.f32 %v6522_v17, %v4732_v15 }
 0x40c   : > { %4861 = vst [vmem:[%s9067_s17 + $0xb0] sm:$0xff] %v4829_v2  ;;  %v4830_v12 = vmax.f32 %v4798_v54, 0.0 }
 0x40d   : > { %4859 = vst [vmem:[%s9067_s17 + $0xa0] sm:$0xff] %v4827_v60  ;;  %v4828_v18 = vmax.f32 %v4796_v29, 0.0  ;;  %v6339_v34 = vpop.f32.mrb[24].mxu1 }
 0x40e   : > { %4862 = vst [vmem:[%s9067_s17 + $0xb8] sm:$0xff] %v4830_v12  ;;  %v4753_v42 = vadd.f32 %v6339_v34, %v9047_v59  ;;  %v4744_v26 = vpop.f32.mrb[25].mxu1 }
 0x40f   : > { %4860 = vst [vmem:[%s9067_s17 + $0xa8] sm:$0xff] %v4828_v18  ;;  %v4745_v36 = vadd.f32 %v4744_v26, %v9041_v48  ;;  %v6340_v55 = vpop.f32.mrb[26].mxu1 }
 0x410   : > { %v4801_v58 = vadd.f32 %v6523_v49, %v4753_v42  ;;  %v4756_v57 = vadd.f32 %v6340_v55, %v9050_v53  ;;  %v4747_v43 = vpop.f32.mrb[27].mxu1 }
 0x411   : > { %v4799_v7 = vadd.f32 %v6524_v40, %v4745_v36  ;;  %v4748_v27 = vadd.f32 %v4747_v43, %v9044_v13 }
 0x412   : > { %v4833_v59 = vmax.f32 %v4801_v58, 0.0  ;;  %v4802_v63 = vadd.f32 %v6525_v61, %v4756_v57 }
 0x413   : > { %v4831_v39 = vmax.f32 %v4799_v7, 0.0  ;;  %v4800_v48 = vadd.f32 %v6526_v11, %v4748_v27 }
 0x414   : > { %4865 = vst [vmem:[%s9067_s17 + $0xd0] sm:$0xff] %v4833_v59  ;;  %v4834_v24 = vmax.f32 %v4802_v63, 0.0 }
 0x415   : > { %4863 = vst [vmem:[%s9067_s17 + $0xc0] sm:$0xff] %v4831_v39  ;;  %v4832_v50 = vmax.f32 %v4800_v48, 0.0  ;;  %v6343_v53 = vpop.f32.mrb[28].mxu1 }
 0x416   : > { %4866 = vst [vmem:[%s9067_s17 + $0xd8] sm:$0xff] %v4834_v24  ;;  %v4769_v46 = vadd.f32 %v6343_v53, %v9072_v45  ;;  %v4760_v44 = vpop.f32.mrb[29].mxu1 }
 0x417   : > { %4864 = vst [vmem:[%s9067_s17 + $0xc8] sm:$0xff] %v4832_v50  ;;  %v4761_v13 = vadd.f32 %v4760_v44, %v9053_v0  ;;  %v6344_v23 = vpop.f32.mrb[30].mxu1 }
 0x418   : > { %v4805_v10 = vadd.f32 %v6527_v3, %v4769_v46  ;;  %v4772_v9 = vadd.f32 %v6344_v23, %v9076_v31  ;;  %v4763_v52 = vpop.f32.mrb[31].mxu1 }
 0x419   : > { %v4803_v30 = vadd.f32 %v6528_v20, %v4761_v13  ;;  %v4764_v4 = vadd.f32 %v4763_v52, %v9056_v51 }
 0x41a   : > { %v4837_v45 = vmax.f32 %v4805_v10, 0.0  ;;  %v4806_v47 = vadd.f32 %v6529_v28, %v4772_v9 }
 0x41b   : > { %v4835_v16 = vmax.f32 %v4803_v30, 0.0  ;;  %v4804_v37 = vadd.f32 %v6530_v19, %v4764_v4 }
 0x41c   : > { %4869 = vst [vmem:[%s9067_s17 + $0xf0] sm:$0xff] %v4837_v45  ;;  %v4838_v0 = vmax.f32 %v4806_v47, 0.0 }
 0x41d   : > { %4867 = vst [vmem:[%s9067_s17 + $0xe0] sm:$0xff] %v4835_v16  ;;  %v4836_v1 = vmax.f32 %v4804_v37, 0.0 }
 0x41e   : > { %4870 = vst [vmem:[%s9067_s17 + $0xf8] sm:$0xff] %v4838_v0 }
 0x41f   : > { %4868 = vst [vmem:[%s9067_s17 + $0xe8] sm:$0xff] %v4836_v1 }
 0x420 PF: > { %s15_s18 = sadd.s32 1, %s6537_s18  }
 0x421   : > { %p12_p4 = scmp.ge.s32.totalorder %s15_s18, 4  }
 0x423   :  { %14 = sbr.rel (!%p12_p4) target bundleno = 1 (0x1), region = 70 }

</bundles_post_ra>
